<compile_context>
chip_gen: v7x
topology: tpu7x:2x2x1
jax: 0.10.0
libtpu: 0.0.40
codegen_flags: <defaults>
</compile_context>

<pallas_src>
import functools

import jax
import jax.numpy as jnp
from jax.experimental import pallas as pl
from jax.experimental.pallas import tpu as pltpu

LEAKY = 0.2
BN_EPS = 1e-5


def _leaky(v):
    return jnp.where(v >= 0, v, LEAKY * v)


# ----------------------------------------------------------------------------
# Conv1d(k=4, s=2, p=1) kernel on a channels-last "pairs" view.
#   input  : (1, P, 2*Cin)  pairs of the previous layer's RAW output
#   prenorm: leaky(x * scale + shift)   (folds the previous layer's BN + act)
#   output : (1, Lout, Cout) raw conv output  + per-channel sum / sumsq
# ----------------------------------------------------------------------------
def _conv_pair_kernel(x_ref, s_ref, t_ref, wa_ref, wb_ref, b_ref,
                      o_ref, sum_ref, ssq_ref, *, cin, lin_real, lout, act):
    p = x_ref.shape[1]
    two_cin = 2 * cin

    x = x_ref[0].astype(jnp.float32)                 # (P, 2*Cin)
    a = x * s_ref[...] + t_ref[...]                  # previous layer's BN-apply
    if act == "leaky":
        a = _leaky(a)

    # The conv's zero padding applies to the post-BN/post-activation signal,
    # but we store raw activations -> zero the pad positions after the prenorm.
    col = jax.lax.broadcasted_iota(jnp.int32, (p, two_cin), 1)
    row = (2 * jax.lax.broadcasted_iota(jnp.int32, (p, two_cin), 0)
           + jnp.where(col >= cin, 1, 0))            # padded-position index
    a = jnp.where((row >= 1) & (row <= lin_real), a, 0.0)

    # output t consumes pairs t and t+1 -> two GEMMs (taps 0,1 | taps 2,3)
    a_lo = a[0:lout, :].astype(jnp.bfloat16)
    a_hi = a[1:lout + 1, :].astype(jnp.bfloat16)
    y = (jnp.dot(a_lo, wa_ref[...], preferred_element_type=jnp.float32)
         + jnp.dot(a_hi, wb_ref[...], preferred_element_type=jnp.float32)
         + b_ref[...])                               # (Lout, Cout) f32, raw

    o_ref[0] = y.astype(o_ref.dtype)
    # BatchNorm partial statistics of this layer's raw output (per batch elem).
    sum_ref[0] = jnp.sum(y, axis=0, keepdims=True)
    ssq_ref[0] = jnp.sum(y * y, axis=0, keepdims=True)


def conv_pair_layer(x_pairs, lin_real, cin, w, b, scale, shift, act):
    """x_pairs: (B, P, 2*Cin).  w: PyTorch layout (Cout, Cin, 4)."""
    B, P, two_cin = x_pairs.shape
    cout = w.shape[0]
    lout = lin_real // 2

    # pack the 4 taps into two (2*Cin, Cout) GEMM operands, bf16 for the MXU
    wa = jnp.concatenate([w[:, :, 0].T, w[:, :, 1].T], axis=0).astype(jnp.bfloat16)
    wb = jnp.concatenate([w[:, :, 2].T, w[:, :, 3].T], axis=0).astype(jnp.bfloat16)
    bias = b.reshape(1, cout).astype(jnp.float32)
    s2 = jnp.tile(scale.astype(jnp.float32), 2).reshape(1, two_cin)
    t2 = jnp.tile(shift.astype(jnp.float32), 2).reshape(1, two_cin)

    kernel = functools.partial(_conv_pair_kernel, cin=cin, lin_real=lin_real,
                               lout=lout, act=act)
    y, psum, pssq = pl.pallas_call(
        kernel,
        out_shape=(
            jax.ShapeDtypeStruct((B, lout, cout), jnp.float32),
            jax.ShapeDtypeStruct((B, 1, cout), jnp.float32),
            jax.ShapeDtypeStruct((B, 1, cout), jnp.float32),
        ),
        grid=(B,),
        in_specs=[
            pl.BlockSpec((1, P, two_cin), lambda i: (i, 0, 0)),
            pl.BlockSpec((1, two_cin), lambda i: (0, 0)),
            pl.BlockSpec((1, two_cin), lambda i: (0, 0)),
            pl.BlockSpec((two_cin, cout), lambda i: (0, 0)),
            pl.BlockSpec((two_cin, cout), lambda i: (0, 0)),
            pl.BlockSpec((1, cout), lambda i: (0, 0)),
        ],
        out_specs=(
            pl.BlockSpec((1, lout, cout), lambda i: (i, 0, 0)),
            pl.BlockSpec((1, 1, cout), lambda i: (i, 0, 0)),
            pl.BlockSpec((1, 1, cout), lambda i: (i, 0, 0)),
        ),
        compiler_params=pltpu.CompilerParams(
            dimension_semantics=("parallel",),
            vmem_limit_bytes=32 * 1024 * 1024),
    )(x_pairs, s2, t2, wa, wb, bias)
    return y, psum, pssq


def _to_pairs(y):
    """(B, L, C) raw activations -> (B, PadL/2, 2*C) pairs view.  A single
    cheap pad supplies the physical leading zero row so each stride-2 window
    becomes two aligned contiguous slices inside the next conv kernel."""
    B, L, C = y.shape
    padl = L + 2 if L % 2 == 0 else L + 3
    yp = jnp.pad(y, ((0, 0), (1, padl - L - 1), (0, 0)))
    return yp.reshape(B, padl // 2, 2 * C)


def _bn_fold(psum, pssq, count, gamma, beta):
    """Fold training-mode BatchNorm1d (biased variance) into scale/shift."""
    mean = jnp.sum(psum, axis=(0, 1)) / count
    ex2 = jnp.sum(pssq, axis=(0, 1)) / count
    var = jnp.maximum(ex2 - mean * mean, 0.0)
    scale = gamma / jnp.sqrt(var + BN_EPS)
    return scale, beta - mean * scale


# ----------------------------------------------------------------------------
# Fully-connected head: BN4+LeakyReLU prenorm, K-tiled fc1 GEMM (bf16/f32 acc),
# metadata folded in (no concat), LeakyReLU + fc2 (512->1) fused in epilogue.
# Grid = (N tiles, K tiles); N axis "parallel" (v7x megacore), K "arbitrary".
# ----------------------------------------------------------------------------
def _fc_head_kernel(x_ref, s_ref, t_ref, w1_ref, meta_ref, w1m_ref, b1_ref,
                    w2_ref, o_ref, acc_ref):
    k = pl.program_id(1)

    @pl.when(k == 0)
    def _init():
        acc_ref[...] = jnp.zeros_like(acc_ref)

    a = _leaky(x_ref[...] * s_ref[...] + t_ref[...])          # BN4 + LeakyReLU
    acc_ref[...] += jnp.dot(a.astype(jnp.bfloat16), w1_ref[...],
                            preferred_element_type=jnp.float32)

    @pl.when(k == pl.num_programs(1) - 1)
    def _finish():
        h = acc_ref[...] + b1_ref[...]
        h = h + jnp.dot(meta_ref[...], w1m_ref[...],
                        preferred_element_type=jnp.float32)   # metadata, no concat
        h = _leaky(h)
        # fc2 slice as a VPU/XLU reduction (no 1-wide MXU pass, no (B,512) HBM trip)
        o_ref[0] = jnp.sum(h * w2_ref[...], axis=1, keepdims=True)


def _pick_k_tile(k_total):
    for t in (2048, 1024, 512, 256, 128):
        if k_total % t == 0:
            return t
    return k_total


def fc_head(y4, metadata, scale4, shift4, fc1_w, fc1_b, fc2_w, fc2_b):
    B, L4, C4 = y4.shape
    K1 = L4 * C4
    N = fc1_w.shape[1]                              # 512
    NT = 256 if N % 256 == 0 else N
    n_n = N // NT

    # Reorder fc1's conv-feature rows from PyTorch's (c, l) flatten order to our
    # channels-last (l, c) order -> no activation transpose needed.  bf16 weight
    # halves the HBM stream of the dominant tensor.
    w1c = (fc1_w[:K1].reshape(C4, L4, N).transpose(1, 0, 2)
           .reshape(K1, N).astype(jnp.bfloat16))
    w1m = fc1_w[K1:].astype(jnp.float32)            # (meta_dim, N)
    mdim = w1m.shape[0]
    s_flat = jnp.tile(scale4.astype(jnp.float32), L4).reshape(1, K1)
    t_flat = jnp.tile(shift4.astype(jnp.float32), L4).reshape(1, K1)
    x_flat = y4.reshape(B, K1)                      # free reshape (l, c) order

    tk = _pick_k_tile(K1)
    n_k = K1 // tk

    partial = pl.pallas_call(
        _fc_head_kernel,
        out_shape=jax.ShapeDtypeStruct((n_n, B, 1), jnp.float32),
        grid=(n_n, n_k),
        in_specs=[
            pl.BlockSpec((B, tk), lambda n, k: (0, k)),
            pl.BlockSpec((1, tk), lambda n, k: (0, k)),
            pl.BlockSpec((1, tk), lambda n, k: (0, k)),
            pl.BlockSpec((tk, NT), lambda n, k: (k, n)),
            pl.BlockSpec((B, mdim), lambda n, k: (0, 0)),
            pl.BlockSpec((mdim, NT), lambda n, k: (0, n)),
            pl.BlockSpec((1, NT), lambda n, k: (0, n)),
            pl.BlockSpec((1, NT), lambda n, k: (0, n)),
        ],
        out_specs=pl.BlockSpec((1, B, 1), lambda n, k: (n, 0, 0)),
        scratch_shapes=[pltpu.VMEM((B, NT), jnp.float32)],
        compiler_params=pltpu.CompilerParams(
            dimension_semantics=("parallel", "arbitrary"),
            vmem_limit_bytes=32 * 1024 * 1024),
    )(x_flat, s_flat, t_flat, w1c, metadata.astype(jnp.float32), w1m,
      fc1_b.reshape(1, N).astype(jnp.float32),
      fc2_w.reshape(1, N).astype(jnp.float32))

    logit = jnp.sum(partial, axis=0) + fc2_b.reshape(1, 1)    # (B, 1)
    return jax.nn.sigmoid(logit)


# ----------------------------------------------------------------------------
# Discriminator forward
# ----------------------------------------------------------------------------
def discriminator_forward(params, signal_ncl, metadata):
    B, C, L = signal_ncl.shape
    assert L % 16 == 0, "signal_length must be divisible by 16"
    L1, L2, L3, L4 = L // 2, L // 4, L // 8, L // 16

    x = jnp.transpose(signal_ncl, (0, 2, 1)).astype(jnp.float32)   # (B, L, C)
    x_pairs = jnp.pad(x, ((0, 0), (1, 1), (0, 0))).reshape(B, (L + 2) // 2, 2 * C)

    ones = lambda c: jnp.ones((c,), jnp.float32)
    zeros = lambda c: jnp.zeros((c,), jnp.float32)

    # conv1 (raw signal in, no prenorm)
    y1, _, _ = conv_pair_layer(x_pairs, L, C, params["w1"], params["b1"],
                               ones(C), zeros(C), act="none")
    # conv2 (prenorm = LeakyReLU of conv1); emits BN2 partial stats
    y2, s2, q2 = conv_pair_layer(_to_pairs(y1), L1, 32, params["w2"], params["b2"],
                                 ones(32), zeros(32), act="leaky")
    sc2, sh2 = _bn_fold(s2, q2, B * L2, params["g2"], params["be2"])
    # conv3 (prenorm = BN2 + LeakyReLU)
    y3, s3, q3 = conv_pair_layer(_to_pairs(y2), L2, 64, params["w3"], params["b3"],
                                 sc2, sh2, act="leaky")
    sc3, sh3 = _bn_fold(s3, q3, B * L3, params["g3"], params["be3"])
    # conv4 (prenorm = BN3 + LeakyReLU)
    y4, s4, q4 = conv_pair_layer(_to_pairs(y3), L3, 128, params["w4"], params["b4"],
                                 sc3, sh3, act="leaky")
    sc4, sh4 = _bn_fold(s4, q4, B * L4, params["g4"], params["be4"])
    # fc head (BN4 + LeakyReLU prenorm, fc1 + LeakyReLU + fc2 + sigmoid)
    return fc_head(y4, metadata, sc4, sh4, params["fc1_w"], params["fc1_b"],
                   params["fc2_w"], params["fc2_b"])


# ----------------------------------------------------------------------------
# Pure-JAX f32 reference (for validation)
# ----------------------------------------------------------------------------
def _reference_forward(params, signal_ncl, metadata):
    def conv(x_blc, w, b):
        B, L, Cin = x_blc.shape
        Lout = L // 2
        xp = jnp.pad(x_blc, ((0, 0), (1, 1), (0, 0)))
        cols = jnp.stack([xp[:, k:k + 2 * Lout:2, :] for k in range(4)], axis=2)
        x2d = cols.reshape(B * Lout, 4 * Cin)
        w2d = jnp.transpose(w, (2, 1, 0)).reshape(4 * Cin, -1)
        return (x2d @ w2d + b).reshape(B, Lout, -1)

    def bn(v, g, be):
        m = jnp.mean(v, axis=(0, 1))
        va = jnp.mean((v - m) ** 2, axis=(0, 1))
        return (v - m) / jnp.sqrt(va + BN_EPS) * g + be

    h = jnp.transpose(signal_ncl, (0, 2, 1)).astype(jnp.float32)
    h = _leaky(conv(h, params["w1"], params["b1"]))
    h = _leaky(bn(conv(h, params["w2"], params["b2"]), params["g2"], params["be2"]))
    h = _leaky(bn(conv(h, params["w3"], params["b3"]), params["g3"], params["be3"]))
    h = _leaky(bn(conv(h, params["w4"], params["b4"]), params["g4"], params["be4"]))
    B = h.shape[0]
    flat = jnp.transpose(h, (0, 2, 1)).reshape(B, -1)          # PyTorch (c, l) order
    z = jnp.concatenate([flat, metadata.astype(jnp.float32)], axis=1)
    z = _leaky(z @ params["fc1_w"] + params["fc1_b"])
    return jax.nn.sigmoid(z @ params["fc2_w"] + params["fc2_b"])


# ----------------------------------------------------------------------------
# Deterministic synthetic parameter init (PyTorch tensor layouts)
# ----------------------------------------------------------------------------
def init_params(key, num_channels, signal_length, metadata_dim):
    conv_output_size = 256 * (signal_length // 16)
    ks = jax.random.split(key, 12)

    def cw(k, cout, cin):
        return jax.random.normal(k, (cout, cin, 4), jnp.float32) * 0.05

    def cb(k, cout):
        return jax.random.normal(k, (cout,), jnp.float32) * 0.01

    return {
        "w1": cw(ks[0], 32, num_channels), "b1": cb(ks[1], 32),
        "w2": cw(ks[2], 64, 32), "b2": cb(ks[3], 64),
        "g2": jnp.ones((64,), jnp.float32), "be2": jnp.zeros((64,), jnp.float32),
        "w3": cw(ks[4], 128, 64), "b3": cb(ks[5], 128),
        "g3": jnp.ones((128,), jnp.float32), "be3": jnp.zeros((128,), jnp.float32),
        "w4": cw(ks[6], 256, 128), "b4": cb(ks[7], 256),
        "g4": jnp.ones((256,), jnp.float32), "be4": jnp.zeros((256,), jnp.float32),
        "fc1_w": jax.random.normal(ks[8], (conv_output_size + metadata_dim, 512),
                                   jnp.float32) * 0.02,
        "fc1_b": jax.random.normal(ks[9], (512,), jnp.float32) * 0.01,
        "fc2_w": jax.random.normal(ks[10], (512, 1), jnp.float32) * 0.02,
        "fc2_b": jax.random.normal(ks[11], (1,), jnp.float32) * 0.01,
    }


if __name__ == "__main__":
    batch = 2
    num_channels = 12
    metadata_dim = 10
    signal_length = 64   # small, divisible by 16 (reference model uses 1000)

    key = jax.random.PRNGKey(0)
    kp, ksig, kmeta = jax.random.split(key, 3)
    params = init_params(kp, num_channels, signal_length, metadata_dim)

    signal = jax.random.normal(ksig, (batch, num_channels, signal_length),
                               jnp.float32)
    metadata = jax.random.normal(kmeta, (batch, metadata_dim), jnp.float32)

    fwd = jax.jit(functools.partial(discriminator_forward, params))
    out = jax.block_until_ready(fwd(signal, metadata))

    assert out.shape == (batch, 1), out.shape
    assert bool(jnp.all(jnp.isfinite(out)))
    assert bool(jnp.all((out >= 0.0) & (out <= 1.0)))

    # validate against a pure-JAX f32 reference (bf16 MXU path -> loose tol)
    ref = _reference_forward(params, signal, metadata)
    max_diff = float(jnp.max(jnp.abs(out - ref)))
    assert max_diff < 5e-2, f"kernel vs reference max diff {max_diff}"

    print("KERNEL_OK")
</pallas_src>

<mosaic_0001>
module attributes {stable_mosaic.version = 11 : i64} {
  func.func @_conv_pair_kernel(%arg0: i32, %arg1: memref<1x33x24xf32, #tpu.memory_space<vmem>>, %arg2: memref<1x24xf32, #tpu.memory_space<vmem>>, %arg3: memref<1x24xf32, #tpu.memory_space<vmem>>, %arg4: memref<24x32xbf16, #tpu.memory_space<vmem>>, %arg5: memref<24x32xbf16, #tpu.memory_space<vmem>>, %arg6: memref<1x32xf32, #tpu.memory_space<vmem>>, %arg7: memref<1x32x32xf32, #tpu.memory_space<vmem>>, %arg8: memref<1x1x32xf32, #tpu.memory_space<vmem>>, %arg9: memref<1x1x32xf32, #tpu.memory_space<vmem>>) attributes {dimension_semantics = [#tpu.dimension_semantics<parallel>], iteration_bounds = array<i64: 2>, scalar_prefetch = 0 : i64, scratch_operands = 0 : i64, tpu.core_type = #tpu.core_type<tc>, window_params = [{transform_indices = @transform_0, window_bounds = array<i64: 1, 33, 24>}, {pipeline_mode = #tpu.pipeline_mode<synchronous>, transform_indices = @transform_1, window_bounds = array<i64: 1, 24>}, {pipeline_mode = #tpu.pipeline_mode<synchronous>, transform_indices = @transform_2, window_bounds = array<i64: 1, 24>}, {pipeline_mode = #tpu.pipeline_mode<synchronous>, transform_indices = @transform_3, window_bounds = array<i64: 24, 32>}, {pipeline_mode = #tpu.pipeline_mode<synchronous>, transform_indices = @transform_4, window_bounds = array<i64: 24, 32>}, {pipeline_mode = #tpu.pipeline_mode<synchronous>, transform_indices = @transform_5, window_bounds = array<i64: 1, 32>}, {transform_indices = @transform_6, window_bounds = array<i64: 1, 32, 32>}, {transform_indices = @transform_7, window_bounds = array<i64: 1, 1, 32>}, {transform_indices = @transform_8, window_bounds = array<i64: 1, 1, 32>}]} {
    %c0 = arith.constant 0 : index
    %c0_0 = arith.constant 0 : index
    %c0_1 = arith.constant 0 : index
    %0 = vector.load %arg1[%c0, %c0_0, %c0_1] : memref<1x33x24xf32, #tpu.memory_space<vmem>>, vector<1x33x24xf32>
    %1 = vector.shape_cast %0 : vector<1x33x24xf32> to vector<33x24xf32>
    %c0_2 = arith.constant 0 : index
    %c0_3 = arith.constant 0 : index
    %2 = vector.load %arg2[%c0_2, %c0_3] : memref<1x24xf32, #tpu.memory_space<vmem>>, vector<1x24xf32>
    %3 = vector.broadcast %2 : vector<1x24xf32> to vector<33x24xf32>
    %4 = arith.mulf %1, %3 : vector<33x24xf32>
    %c0_4 = arith.constant 0 : index
    %c0_5 = arith.constant 0 : index
    %5 = vector.load %arg3[%c0_4, %c0_5] : memref<1x24xf32, #tpu.memory_space<vmem>>, vector<1x24xf32>
    %6 = vector.broadcast %5 : vector<1x24xf32> to vector<33x24xf32>
    %7 = arith.addf %4, %6 : vector<33x24xf32>
    %8 = tpu.iota {dimensions = array<i32: 1>} : vector<33x24xi32>
    %9 = tpu.iota {dimensions = array<i32: 0>} : vector<33x24xi32>
    %c2_i32 = arith.constant 2 : i32
    %10 = vector.broadcast %c2_i32 : i32 to vector<33x24xi32>
    %11 = arith.muli %10, %9 : vector<33x24xi32>
    %c12_i32 = arith.constant 12 : i32
    %12 = vector.broadcast %c12_i32 : i32 to vector<33x24xi32>
    %13 = arith.cmpi sge, %8, %12 : vector<33x24xi32>
    %c1_i32 = arith.constant 1 : i32
    %c0_i32 = arith.constant 0 : i32
    %14 = vector.broadcast %c1_i32 : i32 to vector<33x24xi32>
    %15 = vector.broadcast %c0_i32 : i32 to vector<33x24xi32>
    %16 = arith.select %13, %14, %15 : vector<33x24xi1>, vector<33x24xi32>
    %17 = arith.addi %11, %16 : vector<33x24xi32>
    %c1_i32_6 = arith.constant 1 : i32
    %18 = vector.broadcast %c1_i32_6 : i32 to vector<33x24xi32>
    %19 = arith.cmpi sge, %17, %18 : vector<33x24xi32>
    %c64_i32 = arith.constant 64 : i32
    %20 = vector.broadcast %c64_i32 : i32 to vector<33x24xi32>
    %21 = arith.cmpi sle, %17, %20 : vector<33x24xi32>
    %22 = arith.andi %19, %21 : vector<33x24xi1>
    %cst = arith.constant 0.000000e+00 : f32
    %23 = vector.broadcast %cst : f32 to vector<33x24xf32>
    %24 = arith.select %22, %7, %23 : vector<33x24xi1>, vector<33x24xf32>
    %25 = vector.extract_strided_slice %24 {offsets = [0, 0], sizes = [32, 24], strides = [1, 1]} : vector<33x24xf32> to vector<32x24xf32>
    %26 = arith.truncf %25 : vector<32x24xf32> to vector<32x24xbf16>
    %27 = vector.extract_strided_slice %24 {offsets = [1, 0], sizes = [32, 24], strides = [1, 1]} : vector<33x24xf32> to vector<32x24xf32>
    %28 = arith.truncf %27 : vector<32x24xf32> to vector<32x24xbf16>
    %c0_7 = arith.constant 0 : index
    %c0_8 = arith.constant 0 : index
    %29 = vector.load %arg4[%c0_7, %c0_8] : memref<24x32xbf16, #tpu.memory_space<vmem>>, vector<24x32xbf16>
    %cst_9 = arith.constant dense<0.000000e+00> : vector<32x32xf32>
    %30 = tpu.matmul %26, %29, %cst_9 {dimension_numbers = #tpu.dot_dimension_numbers<[1], [0], [0], [1], [0, 0, 1, 1], [], []>} : vector<32x24xbf16>, vector<24x32xbf16>, vector<32x32xf32> -> vector<32x32xf32>
    %c0_10 = arith.constant 0 : index
    %c0_11 = arith.constant 0 : index
    %31 = vector.load %arg5[%c0_10, %c0_11] : memref<24x32xbf16, #tpu.memory_space<vmem>>, vector<24x32xbf16>
    %cst_12 = arith.constant dense<0.000000e+00> : vector<32x32xf32>
    %32 = tpu.matmul %28, %31, %cst_12 {dimension_numbers = #tpu.dot_dimension_numbers<[1], [0], [0], [1], [0, 0, 1, 1], [], []>} : vector<32x24xbf16>, vector<24x32xbf16>, vector<32x32xf32> -> vector<32x32xf32>
    %33 = arith.addf %30, %32 : vector<32x32xf32>
    %c0_13 = arith.constant 0 : index
    %c0_14 = arith.constant 0 : index
    %34 = vector.load %arg6[%c0_13, %c0_14] : memref<1x32xf32, #tpu.memory_space<vmem>>, vector<1x32xf32>
    %35 = vector.broadcast %34 : vector<1x32xf32> to vector<32x32xf32>
    %36 = arith.addf %33, %35 : vector<32x32xf32>
    %c0_15 = arith.constant 0 : index
    %c0_16 = arith.constant 0 : index
    %c0_17 = arith.constant 0 : index
    %37 = vector.load %arg7[%c0_15, %c0_16, %c0_17] : memref<1x32x32xf32, #tpu.memory_space<vmem>>, vector<1x32x32xf32>
    %38 = vector.shape_cast %37 : vector<1x32x32xf32> to vector<32x32xf32>
    %39 = vector.shape_cast %36 : vector<32x32xf32> to vector<1x32x32xf32>
    tpu.vector_store %arg7[%c0_15, %c0_16, %c0_17], %39 {strides = array<i32>} : memref<1x32x32xf32, #tpu.memory_space<vmem>>, vector<1x32x32xf32>,
    %cst_18 = arith.constant dense<0.000000e+00> : vector<32xf32>
    %40 = vector.multi_reduction <add>, %36, %cst_18 [0] : vector<32x32xf32> to vector<32xf32>
    %41 = vector.shape_cast %40 : vector<32xf32> to vector<1x32xf32>
    %c0_19 = arith.constant 0 : index
    %c0_20 = arith.constant 0 : index
    %c0_21 = arith.constant 0 : index
    %42 = vector.load %arg8[%c0_19, %c0_20, %c0_21] : memref<1x1x32xf32, #tpu.memory_space<vmem>>, vector<1x1x32xf32>
    %43 = vector.shape_cast %42 : vector<1x1x32xf32> to vector<1x32xf32>
    %44 = vector.shape_cast %41 : vector<1x32xf32> to vector<1x1x32xf32>
    tpu.vector_store %arg8[%c0_19, %c0_20, %c0_21], %44 {strides = array<i32>} : memref<1x1x32xf32, #tpu.memory_space<vmem>>, vector<1x1x32xf32>,
    %45 = arith.mulf %36, %36 : vector<32x32xf32>
    %cst_22 = arith.constant dense<0.000000e+00> : vector<32xf32>
    %46 = vector.multi_reduction <add>, %45, %cst_22 [0] : vector<32x32xf32> to vector<32xf32>
    %47 = vector.shape_cast %46 : vector<32xf32> to vector<1x32xf32>
    %c0_23 = arith.constant 0 : index
    %c0_24 = arith.constant 0 : index
    %c0_25 = arith.constant 0 : index
    %48 = vector.load %arg9[%c0_23, %c0_24, %c0_25] : memref<1x1x32xf32, #tpu.memory_space<vmem>>, vector<1x1x32xf32>
    %49 = vector.shape_cast %48 : vector<1x1x32xf32> to vector<1x32xf32>
    %50 = vector.shape_cast %47 : vector<1x32xf32> to vector<1x1x32xf32>
    tpu.vector_store %arg9[%c0_23, %c0_24, %c0_25], %50 {strides = array<i32>} : memref<1x1x32xf32, #tpu.memory_space<vmem>>, vector<1x1x32xf32>,
    return
  }
  func.func @transform_0(%arg0: i32) -> (i32, i32, i32) {
    %c0_i32 = arith.constant 0 : i32
    %c0_i32_0 = arith.constant 0 : i32
    %c0_i32_1 = arith.constant 0 : i32
    return %arg0, %c0_i32, %c0_i32_0 : i32, i32, i32
  }
  func.func @transform_1(%arg0: i32) -> (i32, i32) {
    %c0_i32 = arith.constant 0 : i32
    %c0_i32_0 = arith.constant 0 : i32
    %c0_i32_1 = arith.constant 0 : i32
    return %c0_i32, %c0_i32_0 : i32, i32
  }
  func.func @transform_2(%arg0: i32) -> (i32, i32) {
    %c0_i32 = arith.constant 0 : i32
    %c0_i32_0 = arith.constant 0 : i32
    %c0_i32_1 = arith.constant 0 : i32
    return %c0_i32, %c0_i32_0 : i32, i32
  }
  func.func @transform_3(%arg0: i32) -> (i32, i32) {
    %c0_i32 = arith.constant 0 : i32
    %c0_i32_0 = arith.constant 0 : i32
    %c0_i32_1 = arith.constant 0 : i32
    return %c0_i32, %c0_i32_0 : i32, i32
  }
  func.func @transform_4(%arg0: i32) -> (i32, i32) {
    %c0_i32 = arith.constant 0 : i32
    %c0_i32_0 = arith.constant 0 : i32
    %c0_i32_1 = arith.constant 0 : i32
    return %c0_i32, %c0_i32_0 : i32, i32
  }
  func.func @transform_5(%arg0: i32) -> (i32, i32) {
    %c0_i32 = arith.constant 0 : i32
    %c0_i32_0 = arith.constant 0 : i32
    %c0_i32_1 = arith.constant 0 : i32
    return %c0_i32, %c0_i32_0 : i32, i32
  }
  func.func @transform_6(%arg0: i32) -> (i32, i32, i32) {
    %c0_i32 = arith.constant 0 : i32
    %c0_i32_0 = arith.constant 0 : i32
    %c0_i32_1 = arith.constant 0 : i32
    return %arg0, %c0_i32, %c0_i32_0 : i32, i32, i32
  }
  func.func @transform_7(%arg0: i32) -> (i32, i32, i32) {
    %c0_i32 = arith.constant 0 : i32
    %c0_i32_0 = arith.constant 0 : i32
    %c0_i32_1 = arith.constant 0 : i32
    return %arg0, %c0_i32, %c0_i32_0 : i32, i32, i32
  }
  func.func @transform_8(%arg0: i32) -> (i32, i32, i32) {
    %c0_i32 = arith.constant 0 : i32
    %c0_i32_0 = arith.constant 0 : i32
    %c0_i32_1 = arith.constant 0 : i32
    return %arg0, %c0_i32, %c0_i32_0 : i32, i32, i32
  }
}

module attributes {stable_mosaic.version = 11 : i64} {
  func.func @_conv_pair_kernel(%arg0: i32, %arg1: memref<1x17x64xf32, #tpu.memory_space<vmem>>, %arg2: memref<1x64xf32, #tpu.memory_space<vmem>>, %arg3: memref<1x64xf32, #tpu.memory_space<vmem>>, %arg4: memref<64x64xbf16, #tpu.memory_space<vmem>>, %arg5: memref<64x64xbf16, #tpu.memory_space<vmem>>, %arg6: memref<1x64xf32, #tpu.memory_space<vmem>>, %arg7: memref<1x16x64xf32, #tpu.memory_space<vmem>>, %arg8: memref<1x1x64xf32, #tpu.memory_space<vmem>>, %arg9: memref<1x1x64xf32, #tpu.memory_space<vmem>>) attributes {dimension_semantics = [#tpu.dimension_semantics<parallel>], iteration_bounds = array<i64: 2>, scalar_prefetch = 0 : i64, scratch_operands = 0 : i64, tpu.core_type = #tpu.core_type<tc>, window_params = [{transform_indices = @transform_0, window_bounds = array<i64: 1, 17, 64>}, {pipeline_mode = #tpu.pipeline_mode<synchronous>, transform_indices = @transform_1, window_bounds = array<i64: 1, 64>}, {pipeline_mode = #tpu.pipeline_mode<synchronous>, transform_indices = @transform_2, window_bounds = array<i64: 1, 64>}, {pipeline_mode = #tpu.pipeline_mode<synchronous>, transform_indices = @transform_3, window_bounds = array<i64: 64, 64>}, {pipeline_mode = #tpu.pipeline_mode<synchronous>, transform_indices = @transform_4, window_bounds = array<i64: 64, 64>}, {pipeline_mode = #tpu.pipeline_mode<synchronous>, transform_indices = @transform_5, window_bounds = array<i64: 1, 64>}, {transform_indices = @transform_6, window_bounds = array<i64: 1, 16, 64>}, {transform_indices = @transform_7, window_bounds = array<i64: 1, 1, 64>}, {transform_indices = @transform_8, window_bounds = array<i64: 1, 1, 64>}]} {
    %c0 = arith.constant 0 : index
    %c0_0 = arith.constant 0 : index
    %c0_1 = arith.constant 0 : index
    %0 = vector.load %arg1[%c0, %c0_0, %c0_1] : memref<1x17x64xf32, #tpu.memory_space<vmem>>, vector<1x17x64xf32>
    %1 = vector.shape_cast %0 : vector<1x17x64xf32> to vector<17x64xf32>
    %c0_2 = arith.constant 0 : index
    %c0_3 = arith.constant 0 : index
    %2 = vector.load %arg2[%c0_2, %c0_3] : memref<1x64xf32, #tpu.memory_space<vmem>>, vector<1x64xf32>
    %3 = vector.broadcast %2 : vector<1x64xf32> to vector<17x64xf32>
    %4 = arith.mulf %1, %3 : vector<17x64xf32>
    %c0_4 = arith.constant 0 : index
    %c0_5 = arith.constant 0 : index
    %5 = vector.load %arg3[%c0_4, %c0_5] : memref<1x64xf32, #tpu.memory_space<vmem>>, vector<1x64xf32>
    %6 = vector.broadcast %5 : vector<1x64xf32> to vector<17x64xf32>
    %7 = arith.addf %4, %6 : vector<17x64xf32>
    %cst = arith.constant 0.000000e+00 : f32
    %8 = vector.broadcast %cst : f32 to vector<17x64xf32>
    %9 = arith.cmpf oge, %7, %8 : vector<17x64xf32>
    %cst_6 = arith.constant 2.000000e-01 : f32
    %10 = vector.broadcast %cst_6 : f32 to vector<17x64xf32>
    %11 = arith.mulf %10, %7 : vector<17x64xf32>
    %12 = arith.select %9, %7, %11 : vector<17x64xi1>, vector<17x64xf32>
    %13 = tpu.iota {dimensions = array<i32: 1>} : vector<17x64xi32>
    %14 = tpu.iota {dimensions = array<i32: 0>} : vector<17x64xi32>
    %c2_i32 = arith.constant 2 : i32
    %15 = vector.broadcast %c2_i32 : i32 to vector<17x64xi32>
    %16 = arith.muli %15, %14 : vector<17x64xi32>
    %c32_i32 = arith.constant 32 : i32
    %17 = vector.broadcast %c32_i32 : i32 to vector<17x64xi32>
    %18 = arith.cmpi sge, %13, %17 : vector<17x64xi32>
    %c1_i32 = arith.constant 1 : i32
    %c0_i32 = arith.constant 0 : i32
    %19 = vector.broadcast %c1_i32 : i32 to vector<17x64xi32>
    %20 = vector.broadcast %c0_i32 : i32 to vector<17x64xi32>
    %21 = arith.select %18, %19, %20 : vector<17x64xi1>, vector<17x64xi32>
    %22 = arith.addi %16, %21 : vector<17x64xi32>
    %c1_i32_7 = arith.constant 1 : i32
    %23 = vector.broadcast %c1_i32_7 : i32 to vector<17x64xi32>
    %24 = arith.cmpi sge, %22, %23 : vector<17x64xi32>
    %c32_i32_8 = arith.constant 32 : i32
    %25 = vector.broadcast %c32_i32_8 : i32 to vector<17x64xi32>
    %26 = arith.cmpi sle, %22, %25 : vector<17x64xi32>
    %27 = arith.andi %24, %26 : vector<17x64xi1>
    %cst_9 = arith.constant 0.000000e+00 : f32
    %28 = vector.broadcast %cst_9 : f32 to vector<17x64xf32>
    %29 = arith.select %27, %12, %28 : vector<17x64xi1>, vector<17x64xf32>
    %30 = vector.extract_strided_slice %29 {offsets = [0, 0], sizes = [16, 64], strides = [1, 1]} : vector<17x64xf32> to vector<16x64xf32>
    %31 = arith.truncf %30 : vector<16x64xf32> to vector<16x64xbf16>
    %32 = vector.extract_strided_slice %29 {offsets = [1, 0], sizes = [16, 64], strides = [1, 1]} : vector<17x64xf32> to vector<16x64xf32>
    %33 = arith.truncf %32 : vector<16x64xf32> to vector<16x64xbf16>
    %c0_10 = arith.constant 0 : index
    %c0_11 = arith.constant 0 : index
    %34 = vector.load %arg4[%c0_10, %c0_11] : memref<64x64xbf16, #tpu.memory_space<vmem>>, vector<64x64xbf16>
    %cst_12 = arith.constant dense<0.000000e+00> : vector<16x64xf32>
    %35 = tpu.matmul %31, %34, %cst_12 {dimension_numbers = #tpu.dot_dimension_numbers<[1], [0], [0], [1], [0, 0, 1, 1], [], []>} : vector<16x64xbf16>, vector<64x64xbf16>, vector<16x64xf32> -> vector<16x64xf32>
    %c0_13 = arith.constant 0 : index
    %c0_14 = arith.constant 0 : index
    %36 = vector.load %arg5[%c0_13, %c0_14] : memref<64x64xbf16, #tpu.memory_space<vmem>>, vector<64x64xbf16>
    %cst_15 = arith.constant dense<0.000000e+00> : vector<16x64xf32>
    %37 = tpu.matmul %33, %36, %cst_15 {dimension_numbers = #tpu.dot_dimension_numbers<[1], [0], [0], [1], [0, 0, 1, 1], [], []>} : vector<16x64xbf16>, vector<64x64xbf16>, vector<16x64xf32> -> vector<16x64xf32>
    %38 = arith.addf %35, %37 : vector<16x64xf32>
    %c0_16 = arith.constant 0 : index
    %c0_17 = arith.constant 0 : index
    %39 = vector.load %arg6[%c0_16, %c0_17] : memref<1x64xf32, #tpu.memory_space<vmem>>, vector<1x64xf32>
    %40 = vector.broadcast %39 : vector<1x64xf32> to vector<16x64xf32>
    %41 = arith.addf %38, %40 : vector<16x64xf32>
    %c0_18 = arith.constant 0 : index
    %c0_19 = arith.constant 0 : index
    %c0_20 = arith.constant 0 : index
    %42 = vector.load %arg7[%c0_18, %c0_19, %c0_20] : memref<1x16x64xf32, #tpu.memory_space<vmem>>, vector<1x16x64xf32>
    %43 = vector.shape_cast %42 : vector<1x16x64xf32> to vector<16x64xf32>
    %44 = vector.shape_cast %41 : vector<16x64xf32> to vector<1x16x64xf32>
    tpu.vector_store %arg7[%c0_18, %c0_19, %c0_20], %44 {strides = array<i32>} : memref<1x16x64xf32, #tpu.memory_space<vmem>>, vector<1x16x64xf32>,
    %cst_21 = arith.constant dense<0.000000e+00> : vector<64xf32>
    %45 = vector.multi_reduction <add>, %41, %cst_21 [0] : vector<16x64xf32> to vector<64xf32>
    %46 = vector.shape_cast %45 : vector<64xf32> to vector<1x64xf32>
    %c0_22 = arith.constant 0 : index
    %c0_23 = arith.constant 0 : index
    %c0_24 = arith.constant 0 : index
    %47 = vector.load %arg8[%c0_22, %c0_23, %c0_24] : memref<1x1x64xf32, #tpu.memory_space<vmem>>, vector<1x1x64xf32>
    %48 = vector.shape_cast %47 : vector<1x1x64xf32> to vector<1x64xf32>
    %49 = vector.shape_cast %46 : vector<1x64xf32> to vector<1x1x64xf32>
    tpu.vector_store %arg8[%c0_22, %c0_23, %c0_24], %49 {strides = array<i32>} : memref<1x1x64xf32, #tpu.memory_space<vmem>>, vector<1x1x64xf32>,
    %50 = arith.mulf %41, %41 : vector<16x64xf32>
    %cst_25 = arith.constant dense<0.000000e+00> : vector<64xf32>
    %51 = vector.multi_reduction <add>, %50, %cst_25 [0] : vector<16x64xf32> to vector<64xf32>
    %52 = vector.shape_cast %51 : vector<64xf32> to vector<1x64xf32>
    %c0_26 = arith.constant 0 : index
    %c0_27 = arith.constant 0 : index
    %c0_28 = arith.constant 0 : index
    %53 = vector.load %arg9[%c0_26, %c0_27, %c0_28] : memref<1x1x64xf32, #tpu.memory_space<vmem>>, vector<1x1x64xf32>
    %54 = vector.shape_cast %53 : vector<1x1x64xf32> to vector<1x64xf32>
    %55 = vector.shape_cast %52 : vector<1x64xf32> to vector<1x1x64xf32>
    tpu.vector_store %arg9[%c0_26, %c0_27, %c0_28], %55 {strides = array<i32>} : memref<1x1x64xf32, #tpu.memory_space<vmem>>, vector<1x1x64xf32>,
    return
  }
  func.func @transform_0(%arg0: i32) -> (i32, i32, i32) {
    %c0_i32 = arith.constant 0 : i32
    %c0_i32_0 = arith.constant 0 : i32
    %c0_i32_1 = arith.constant 0 : i32
    return %arg0, %c0_i32, %c0_i32_0 : i32, i32, i32
  }
  func.func @transform_1(%arg0: i32) -> (i32, i32) {
    %c0_i32 = arith.constant 0 : i32
    %c0_i32_0 = arith.constant 0 : i32
    %c0_i32_1 = arith.constant 0 : i32
    return %c0_i32, %c0_i32_0 : i32, i32
  }
  func.func @transform_2(%arg0: i32) -> (i32, i32) {
    %c0_i32 = arith.constant 0 : i32
    %c0_i32_0 = arith.constant 0 : i32
    %c0_i32_1 = arith.constant 0 : i32
    return %c0_i32, %c0_i32_0 : i32, i32
  }
  func.func @transform_3(%arg0: i32) -> (i32, i32) {
    %c0_i32 = arith.constant 0 : i32
    %c0_i32_0 = arith.constant 0 : i32
    %c0_i32_1 = arith.constant 0 : i32
    return %c0_i32, %c0_i32_0 : i32, i32
  }
  func.func @transform_4(%arg0: i32) -> (i32, i32) {
    %c0_i32 = arith.constant 0 : i32
    %c0_i32_0 = arith.constant 0 : i32
    %c0_i32_1 = arith.constant 0 : i32
    return %c0_i32, %c0_i32_0 : i32, i32
  }
  func.func @transform_5(%arg0: i32) -> (i32, i32) {
    %c0_i32 = arith.constant 0 : i32
    %c0_i32_0 = arith.constant 0 : i32
    %c0_i32_1 = arith.constant 0 : i32
    return %c0_i32, %c0_i32_0 : i32, i32
  }
  func.func @transform_6(%arg0: i32) -> (i32, i32, i32) {
    %c0_i32 = arith.constant 0 : i32
    %c0_i32_0 = arith.constant 0 : i32
    %c0_i32_1 = arith.constant 0 : i32
    return %arg0, %c0_i32, %c0_i32_0 : i32, i32, i32
  }
  func.func @transform_7(%arg0: i32) -> (i32, i32, i32) {
    %c0_i32 = arith.constant 0 : i32
    %c0_i32_0 = arith.constant 0 : i32
    %c0_i32_1 = arith.constant 0 : i32
    return %arg0, %c0_i32, %c0_i32_0 : i32, i32, i32
  }
  func.func @transform_8(%arg0: i32) -> (i32, i32, i32) {
    %c0_i32 = arith.constant 0 : i32
    %c0_i32_0 = arith.constant 0 : i32
    %c0_i32_1 = arith.constant 0 : i32
    return %arg0, %c0_i32, %c0_i32_0 : i32, i32, i32
  }
}

module attributes {stable_mosaic.version = 11 : i64} {
  func.func @_conv_pair_kernel(%arg0: i32, %arg1: memref<1x9x128xf32, #tpu.memory_space<vmem>>, %arg2: memref<1x128xf32, #tpu.memory_space<vmem>>, %arg3: memref<1x128xf32, #tpu.memory_space<vmem>>, %arg4: memref<128x128xbf16, #tpu.memory_space<vmem>>, %arg5: memref<128x128xbf16, #tpu.memory_space<vmem>>, %arg6: memref<1x128xf32, #tpu.memory_space<vmem>>, %arg7: memref<1x8x128xf32, #tpu.memory_space<vmem>>, %arg8: memref<1x1x128xf32, #tpu.memory_space<vmem>>, %arg9: memref<1x1x128xf32, #tpu.memory_space<vmem>>) attributes {dimension_semantics = [#tpu.dimension_semantics<parallel>], iteration_bounds = array<i64: 2>, scalar_prefetch = 0 : i64, scratch_operands = 0 : i64, tpu.core_type = #tpu.core_type<tc>, window_params = [{transform_indices = @transform_0, window_bounds = array<i64: 1, 9, 128>}, {pipeline_mode = #tpu.pipeline_mode<synchronous>, transform_indices = @transform_1, window_bounds = array<i64: 1, 128>}, {pipeline_mode = #tpu.pipeline_mode<synchronous>, transform_indices = @transform_2, window_bounds = array<i64: 1, 128>}, {pipeline_mode = #tpu.pipeline_mode<synchronous>, transform_indices = @transform_3, window_bounds = array<i64: 128, 128>}, {pipeline_mode = #tpu.pipeline_mode<synchronous>, transform_indices = @transform_4, window_bounds = array<i64: 128, 128>}, {pipeline_mode = #tpu.pipeline_mode<synchronous>, transform_indices = @transform_5, window_bounds = array<i64: 1, 128>}, {transform_indices = @transform_6, window_bounds = array<i64: 1, 8, 128>}, {transform_indices = @transform_7, window_bounds = array<i64: 1, 1, 128>}, {transform_indices = @transform_8, window_bounds = array<i64: 1, 1, 128>}]} {
    %c0 = arith.constant 0 : index
    %c0_0 = arith.constant 0 : index
    %c0_1 = arith.constant 0 : index
    %0 = vector.load %arg1[%c0, %c0_0, %c0_1] : memref<1x9x128xf32, #tpu.memory_space<vmem>>, vector<1x9x128xf32>
    %1 = vector.shape_cast %0 : vector<1x9x128xf32> to vector<9x128xf32>
    %c0_2 = arith.constant 0 : index
    %c0_3 = arith.constant 0 : index
    %2 = vector.load %arg2[%c0_2, %c0_3] : memref<1x128xf32, #tpu.memory_space<vmem>>, vector<1x128xf32>
    %3 = vector.broadcast %2 : vector<1x128xf32> to vector<9x128xf32>
    %4 = arith.mulf %1, %3 : vector<9x128xf32>
    %c0_4 = arith.constant 0 : index
    %c0_5 = arith.constant 0 : index
    %5 = vector.load %arg3[%c0_4, %c0_5] : memref<1x128xf32, #tpu.memory_space<vmem>>, vector<1x128xf32>
    %6 = vector.broadcast %5 : vector<1x128xf32> to vector<9x128xf32>
    %7 = arith.addf %4, %6 : vector<9x128xf32>
    %cst = arith.constant 0.000000e+00 : f32
    %8 = vector.broadcast %cst : f32 to vector<9x128xf32>
    %9 = arith.cmpf oge, %7, %8 : vector<9x128xf32>
    %cst_6 = arith.constant 2.000000e-01 : f32
    %10 = vector.broadcast %cst_6 : f32 to vector<9x128xf32>
    %11 = arith.mulf %10, %7 : vector<9x128xf32>
    %12 = arith.select %9, %7, %11 : vector<9x128xi1>, vector<9x128xf32>
    %13 = tpu.iota {dimensions = array<i32: 1>} : vector<9x128xi32>
    %14 = tpu.iota {dimensions = array<i32: 0>} : vector<9x128xi32>
    %c2_i32 = arith.constant 2 : i32
    %15 = vector.broadcast %c2_i32 : i32 to vector<9x128xi32>
    %16 = arith.muli %15, %14 : vector<9x128xi32>
    %c64_i32 = arith.constant 64 : i32
    %17 = vector.broadcast %c64_i32 : i32 to vector<9x128xi32>
    %18 = arith.cmpi sge, %13, %17 : vector<9x128xi32>
    %c1_i32 = arith.constant 1 : i32
    %c0_i32 = arith.constant 0 : i32
    %19 = vector.broadcast %c1_i32 : i32 to vector<9x128xi32>
    %20 = vector.broadcast %c0_i32 : i32 to vector<9x128xi32>
    %21 = arith.select %18, %19, %20 : vector<9x128xi1>, vector<9x128xi32>
    %22 = arith.addi %16, %21 : vector<9x128xi32>
    %c1_i32_7 = arith.constant 1 : i32
    %23 = vector.broadcast %c1_i32_7 : i32 to vector<9x128xi32>
    %24 = arith.cmpi sge, %22, %23 : vector<9x128xi32>
    %c16_i32 = arith.constant 16 : i32
    %25 = vector.broadcast %c16_i32 : i32 to vector<9x128xi32>
    %26 = arith.cmpi sle, %22, %25 : vector<9x128xi32>
    %27 = arith.andi %24, %26 : vector<9x128xi1>
    %cst_8 = arith.constant 0.000000e+00 : f32
    %28 = vector.broadcast %cst_8 : f32 to vector<9x128xf32>
    %29 = arith.select %27, %12, %28 : vector<9x128xi1>, vector<9x128xf32>
    %30 = vector.extract_strided_slice %29 {offsets = [0, 0], sizes = [8, 128], strides = [1, 1]} : vector<9x128xf32> to vector<8x128xf32>
    %31 = arith.truncf %30 : vector<8x128xf32> to vector<8x128xbf16>
    %32 = vector.extract_strided_slice %29 {offsets = [1, 0], sizes = [8, 128], strides = [1, 1]} : vector<9x128xf32> to vector<8x128xf32>
    %33 = arith.truncf %32 : vector<8x128xf32> to vector<8x128xbf16>
    %c0_9 = arith.constant 0 : index
    %c0_10 = arith.constant 0 : index
    %34 = vector.load %arg4[%c0_9, %c0_10] : memref<128x128xbf16, #tpu.memory_space<vmem>>, vector<128x128xbf16>
    %cst_11 = arith.constant dense<0.000000e+00> : vector<8x128xf32>
    %35 = tpu.matmul %31, %34, %cst_11 {dimension_numbers = #tpu.dot_dimension_numbers<[1], [0], [0], [1], [0, 0, 1, 1], [], []>} : vector<8x128xbf16>, vector<128x128xbf16>, vector<8x128xf32> -> vector<8x128xf32>
    %c0_12 = arith.constant 0 : index
    %c0_13 = arith.constant 0 : index
    %36 = vector.load %arg5[%c0_12, %c0_13] : memref<128x128xbf16, #tpu.memory_space<vmem>>, vector<128x128xbf16>
    %cst_14 = arith.constant dense<0.000000e+00> : vector<8x128xf32>
    %37 = tpu.matmul %33, %36, %cst_14 {dimension_numbers = #tpu.dot_dimension_numbers<[1], [0], [0], [1], [0, 0, 1, 1], [], []>} : vector<8x128xbf16>, vector<128x128xbf16>, vector<8x128xf32> -> vector<8x128xf32>
    %38 = arith.addf %35, %37 : vector<8x128xf32>
    %c0_15 = arith.constant 0 : index
    %c0_16 = arith.constant 0 : index
    %39 = vector.load %arg6[%c0_15, %c0_16] : memref<1x128xf32, #tpu.memory_space<vmem>>, vector<1x128xf32>
    %40 = vector.broadcast %39 : vector<1x128xf32> to vector<8x128xf32>
    %41 = arith.addf %38, %40 : vector<8x128xf32>
    %c0_17 = arith.constant 0 : index
    %c0_18 = arith.constant 0 : index
    %c0_19 = arith.constant 0 : index
    %42 = vector.load %arg7[%c0_17, %c0_18, %c0_19] : memref<1x8x128xf32, #tpu.memory_space<vmem>>, vector<1x8x128xf32>
    %43 = vector.shape_cast %42 : vector<1x8x128xf32> to vector<8x128xf32>
    %44 = vector.shape_cast %41 : vector<8x128xf32> to vector<1x8x128xf32>
    tpu.vector_store %arg7[%c0_17, %c0_18, %c0_19], %44 {strides = array<i32>} : memref<1x8x128xf32, #tpu.memory_space<vmem>>, vector<1x8x128xf32>,
    %cst_20 = arith.constant dense<0.000000e+00> : vector<128xf32>
    %45 = vector.multi_reduction <add>, %41, %cst_20 [0] : vector<8x128xf32> to vector<128xf32>
    %46 = vector.shape_cast %45 : vector<128xf32> to vector<1x128xf32>
    %c0_21 = arith.constant 0 : index
    %c0_22 = arith.constant 0 : index
    %c0_23 = arith.constant 0 : index
    %47 = vector.load %arg8[%c0_21, %c0_22, %c0_23] : memref<1x1x128xf32, #tpu.memory_space<vmem>>, vector<1x1x128xf32>
    %48 = vector.shape_cast %47 : vector<1x1x128xf32> to vector<1x128xf32>
    %49 = vector.shape_cast %46 : vector<1x128xf32> to vector<1x1x128xf32>
    tpu.vector_store %arg8[%c0_21, %c0_22, %c0_23], %49 {strides = array<i32>} : memref<1x1x128xf32, #tpu.memory_space<vmem>>, vector<1x1x128xf32>,
    %50 = arith.mulf %41, %41 : vector<8x128xf32>
    %cst_24 = arith.constant dense<0.000000e+00> : vector<128xf32>
    %51 = vector.multi_reduction <add>, %50, %cst_24 [0] : vector<8x128xf32> to vector<128xf32>
    %52 = vector.shape_cast %51 : vector<128xf32> to vector<1x128xf32>
    %c0_25 = arith.constant 0 : index
    %c0_26 = arith.constant 0 : index
    %c0_27 = arith.constant 0 : index
    %53 = vector.load %arg9[%c0_25, %c0_26, %c0_27] : memref<1x1x128xf32, #tpu.memory_space<vmem>>, vector<1x1x128xf32>
    %54 = vector.shape_cast %53 : vector<1x1x128xf32> to vector<1x128xf32>
    %55 = vector.shape_cast %52 : vector<1x128xf32> to vector<1x1x128xf32>
    tpu.vector_store %arg9[%c0_25, %c0_26, %c0_27], %55 {strides = array<i32>} : memref<1x1x128xf32, #tpu.memory_space<vmem>>, vector<1x1x128xf32>,
    return
  }
  func.func @transform_0(%arg0: i32) -> (i32, i32, i32) {
    %c0_i32 = arith.constant 0 : i32
    %c0_i32_0 = arith.constant 0 : i32
    %c0_i32_1 = arith.constant 0 : i32
    return %arg0, %c0_i32, %c0_i32_0 : i32, i32, i32
  }
  func.func @transform_1(%arg0: i32) -> (i32, i32) {
    %c0_i32 = arith.constant 0 : i32
    %c0_i32_0 = arith.constant 0 : i32
    %c0_i32_1 = arith.constant 0 : i32
    return %c0_i32, %c0_i32_0 : i32, i32
  }
  func.func @transform_2(%arg0: i32) -> (i32, i32) {
    %c0_i32 = arith.constant 0 : i32
    %c0_i32_0 = arith.constant 0 : i32
    %c0_i32_1 = arith.constant 0 : i32
    return %c0_i32, %c0_i32_0 : i32, i32
  }
  func.func @transform_3(%arg0: i32) -> (i32, i32) {
    %c0_i32 = arith.constant 0 : i32
    %c0_i32_0 = arith.constant 0 : i32
    %c0_i32_1 = arith.constant 0 : i32
    return %c0_i32, %c0_i32_0 : i32, i32
  }
  func.func @transform_4(%arg0: i32) -> (i32, i32) {
    %c0_i32 = arith.constant 0 : i32
    %c0_i32_0 = arith.constant 0 : i32
    %c0_i32_1 = arith.constant 0 : i32
    return %c0_i32, %c0_i32_0 : i32, i32
  }
  func.func @transform_5(%arg0: i32) -> (i32, i32) {
    %c0_i32 = arith.constant 0 : i32
    %c0_i32_0 = arith.constant 0 : i32
    %c0_i32_1 = arith.constant 0 : i32
    return %c0_i32, %c0_i32_0 : i32, i32
  }
  func.func @transform_6(%arg0: i32) -> (i32, i32, i32) {
    %c0_i32 = arith.constant 0 : i32
    %c0_i32_0 = arith.constant 0 : i32
    %c0_i32_1 = arith.constant 0 : i32
    return %arg0, %c0_i32, %c0_i32_0 : i32, i32, i32
  }
  func.func @transform_7(%arg0: i32) -> (i32, i32, i32) {
    %c0_i32 = arith.constant 0 : i32
    %c0_i32_0 = arith.constant 0 : i32
    %c0_i32_1 = arith.constant 0 : i32
    return %arg0, %c0_i32, %c0_i32_0 : i32, i32, i32
  }
  func.func @transform_8(%arg0: i32) -> (i32, i32, i32) {
    %c0_i32 = arith.constant 0 : i32
    %c0_i32_0 = arith.constant 0 : i32
    %c0_i32_1 = arith.constant 0 : i32
    return %arg0, %c0_i32, %c0_i32_0 : i32, i32, i32
  }
}

module attributes {stable_mosaic.version = 11 : i64} {
  func.func @_conv_pair_kernel(%arg0: i32, %arg1: memref<1x5x256xf32, #tpu.memory_space<vmem>>, %arg2: memref<1x256xf32, #tpu.memory_space<vmem>>, %arg3: memref<1x256xf32, #tpu.memory_space<vmem>>, %arg4: memref<256x256xbf16, #tpu.memory_space<vmem>>, %arg5: memref<256x256xbf16, #tpu.memory_space<vmem>>, %arg6: memref<1x256xf32, #tpu.memory_space<vmem>>, %arg7: memref<1x4x256xf32, #tpu.memory_space<vmem>>, %arg8: memref<1x1x256xf32, #tpu.memory_space<vmem>>, %arg9: memref<1x1x256xf32, #tpu.memory_space<vmem>>) attributes {dimension_semantics = [#tpu.dimension_semantics<parallel>], iteration_bounds = array<i64: 2>, scalar_prefetch = 0 : i64, scratch_operands = 0 : i64, tpu.core_type = #tpu.core_type<tc>, window_params = [{transform_indices = @transform_0, window_bounds = array<i64: 1, 5, 256>}, {pipeline_mode = #tpu.pipeline_mode<synchronous>, transform_indices = @transform_1, window_bounds = array<i64: 1, 256>}, {pipeline_mode = #tpu.pipeline_mode<synchronous>, transform_indices = @transform_2, window_bounds = array<i64: 1, 256>}, {pipeline_mode = #tpu.pipeline_mode<synchronous>, transform_indices = @transform_3, window_bounds = array<i64: 256, 256>}, {pipeline_mode = #tpu.pipeline_mode<synchronous>, transform_indices = @transform_4, window_bounds = array<i64: 256, 256>}, {pipeline_mode = #tpu.pipeline_mode<synchronous>, transform_indices = @transform_5, window_bounds = array<i64: 1, 256>}, {transform_indices = @transform_6, window_bounds = array<i64: 1, 4, 256>}, {transform_indices = @transform_7, window_bounds = array<i64: 1, 1, 256>}, {transform_indices = @transform_8, window_bounds = array<i64: 1, 1, 256>}]} {
    %c0 = arith.constant 0 : index
    %c0_0 = arith.constant 0 : index
    %c0_1 = arith.constant 0 : index
    %0 = vector.load %arg1[%c0, %c0_0, %c0_1] : memref<1x5x256xf32, #tpu.memory_space<vmem>>, vector<1x5x256xf32>
    %1 = vector.shape_cast %0 : vector<1x5x256xf32> to vector<5x256xf32>
    %c0_2 = arith.constant 0 : index
    %c0_3 = arith.constant 0 : index
    %2 = vector.load %arg2[%c0_2, %c0_3] : memref<1x256xf32, #tpu.memory_space<vmem>>, vector<1x256xf32>
    %3 = vector.broadcast %2 : vector<1x256xf32> to vector<5x256xf32>
    %4 = arith.mulf %1, %3 : vector<5x256xf32>
    %c0_4 = arith.constant 0 : index
    %c0_5 = arith.constant 0 : index
    %5 = vector.load %arg3[%c0_4, %c0_5] : memref<1x256xf32, #tpu.memory_space<vmem>>, vector<1x256xf32>
    %6 = vector.broadcast %5 : vector<1x256xf32> to vector<5x256xf32>
    %7 = arith.addf %4, %6 : vector<5x256xf32>
    %cst = arith.constant 0.000000e+00 : f32
    %8 = vector.broadcast %cst : f32 to vector<5x256xf32>
    %9 = arith.cmpf oge, %7, %8 : vector<5x256xf32>
    %cst_6 = arith.constant 2.000000e-01 : f32
    %10 = vector.broadcast %cst_6 : f32 to vector<5x256xf32>
    %11 = arith.mulf %10, %7 : vector<5x256xf32>
    %12 = arith.select %9, %7, %11 : vector<5x256xi1>, vector<5x256xf32>
    %13 = tpu.iota {dimensions = array<i32: 1>} : vector<5x256xi32>
    %14 = tpu.iota {dimensions = array<i32: 0>} : vector<5x256xi32>
    %c2_i32 = arith.constant 2 : i32
    %15 = vector.broadcast %c2_i32 : i32 to vector<5x256xi32>
    %16 = arith.muli %15, %14 : vector<5x256xi32>
    %c128_i32 = arith.constant 128 : i32
    %17 = vector.broadcast %c128_i32 : i32 to vector<5x256xi32>
    %18 = arith.cmpi sge, %13, %17 : vector<5x256xi32>
    %c1_i32 = arith.constant 1 : i32
    %c0_i32 = arith.constant 0 : i32
    %19 = vector.broadcast %c1_i32 : i32 to vector<5x256xi32>
    %20 = vector.broadcast %c0_i32 : i32 to vector<5x256xi32>
    %21 = arith.select %18, %19, %20 : vector<5x256xi1>, vector<5x256xi32>
    %22 = arith.addi %16, %21 : vector<5x256xi32>
    %c1_i32_7 = arith.constant 1 : i32
    %23 = vector.broadcast %c1_i32_7 : i32 to vector<5x256xi32>
    %24 = arith.cmpi sge, %22, %23 : vector<5x256xi32>
    %c8_i32 = arith.constant 8 : i32
    %25 = vector.broadcast %c8_i32 : i32 to vector<5x256xi32>
    %26 = arith.cmpi sle, %22, %25 : vector<5x256xi32>
    %27 = arith.andi %24, %26 : vector<5x256xi1>
    %cst_8 = arith.constant 0.000000e+00 : f32
    %28 = vector.broadcast %cst_8 : f32 to vector<5x256xf32>
    %29 = arith.select %27, %12, %28 : vector<5x256xi1>, vector<5x256xf32>
    %30 = vector.extract_strided_slice %29 {offsets = [0, 0], sizes = [4, 256], strides = [1, 1]} : vector<5x256xf32> to vector<4x256xf32>
    %31 = arith.truncf %30 : vector<4x256xf32> to vector<4x256xbf16>
    %32 = vector.extract_strided_slice %29 {offsets = [1, 0], sizes = [4, 256], strides = [1, 1]} : vector<5x256xf32> to vector<4x256xf32>
    %33 = arith.truncf %32 : vector<4x256xf32> to vector<4x256xbf16>
    %c0_9 = arith.constant 0 : index
    %c0_10 = arith.constant 0 : index
    %34 = vector.load %arg4[%c0_9, %c0_10] : memref<256x256xbf16, #tpu.memory_space<vmem>>, vector<256x256xbf16>
    %cst_11 = arith.constant dense<0.000000e+00> : vector<4x256xf32>
    %35 = tpu.matmul %31, %34, %cst_11 {dimension_numbers = #tpu.dot_dimension_numbers<[1], [0], [0], [1], [0, 0, 1, 1], [], []>} : vector<4x256xbf16>, vector<256x256xbf16>, vector<4x256xf32> -> vector<4x256xf32>
    %c0_12 = arith.constant 0 : index
    %c0_13 = arith.constant 0 : index
    %36 = vector.load %arg5[%c0_12, %c0_13] : memref<256x256xbf16, #tpu.memory_space<vmem>>, vector<256x256xbf16>
    %cst_14 = arith.constant dense<0.000000e+00> : vector<4x256xf32>
    %37 = tpu.matmul %33, %36, %cst_14 {dimension_numbers = #tpu.dot_dimension_numbers<[1], [0], [0], [1], [0, 0, 1, 1], [], []>} : vector<4x256xbf16>, vector<256x256xbf16>, vector<4x256xf32> -> vector<4x256xf32>
    %38 = arith.addf %35, %37 : vector<4x256xf32>
    %c0_15 = arith.constant 0 : index
    %c0_16 = arith.constant 0 : index
    %39 = vector.load %arg6[%c0_15, %c0_16] : memref<1x256xf32, #tpu.memory_space<vmem>>, vector<1x256xf32>
    %40 = vector.broadcast %39 : vector<1x256xf32> to vector<4x256xf32>
    %41 = arith.addf %38, %40 : vector<4x256xf32>
    %c0_17 = arith.constant 0 : index
    %c0_18 = arith.constant 0 : index
    %c0_19 = arith.constant 0 : index
    %42 = vector.load %arg7[%c0_17, %c0_18, %c0_19] : memref<1x4x256xf32, #tpu.memory_space<vmem>>, vector<1x4x256xf32>
    %43 = vector.shape_cast %42 : vector<1x4x256xf32> to vector<4x256xf32>
    %44 = vector.shape_cast %41 : vector<4x256xf32> to vector<1x4x256xf32>
    tpu.vector_store %arg7[%c0_17, %c0_18, %c0_19], %44 {strides = array<i32>} : memref<1x4x256xf32, #tpu.memory_space<vmem>>, vector<1x4x256xf32>,
    %cst_20 = arith.constant dense<0.000000e+00> : vector<256xf32>
    %45 = vector.multi_reduction <add>, %41, %cst_20 [0] : vector<4x256xf32> to vector<256xf32>
    %46 = vector.shape_cast %45 : vector<256xf32> to vector<1x256xf32>
    %c0_21 = arith.constant 0 : index
    %c0_22 = arith.constant 0 : index
    %c0_23 = arith.constant 0 : index
    %47 = vector.load %arg8[%c0_21, %c0_22, %c0_23] : memref<1x1x256xf32, #tpu.memory_space<vmem>>, vector<1x1x256xf32>
    %48 = vector.shape_cast %47 : vector<1x1x256xf32> to vector<1x256xf32>
    %49 = vector.shape_cast %46 : vector<1x256xf32> to vector<1x1x256xf32>
    tpu.vector_store %arg8[%c0_21, %c0_22, %c0_23], %49 {strides = array<i32>} : memref<1x1x256xf32, #tpu.memory_space<vmem>>, vector<1x1x256xf32>,
    %50 = arith.mulf %41, %41 : vector<4x256xf32>
    %cst_24 = arith.constant dense<0.000000e+00> : vector<256xf32>
    %51 = vector.multi_reduction <add>, %50, %cst_24 [0] : vector<4x256xf32> to vector<256xf32>
    %52 = vector.shape_cast %51 : vector<256xf32> to vector<1x256xf32>
    %c0_25 = arith.constant 0 : index
    %c0_26 = arith.constant 0 : index
    %c0_27 = arith.constant 0 : index
    %53 = vector.load %arg9[%c0_25, %c0_26, %c0_27] : memref<1x1x256xf32, #tpu.memory_space<vmem>>, vector<1x1x256xf32>
    %54 = vector.shape_cast %53 : vector<1x1x256xf32> to vector<1x256xf32>
    %55 = vector.shape_cast %52 : vector<1x256xf32> to vector<1x1x256xf32>
    tpu.vector_store %arg9[%c0_25, %c0_26, %c0_27], %55 {strides = array<i32>} : memref<1x1x256xf32, #tpu.memory_space<vmem>>, vector<1x1x256xf32>,
    return
  }
  func.func @transform_0(%arg0: i32) -> (i32, i32, i32) {
    %c0_i32 = arith.constant 0 : i32
    %c0_i32_0 = arith.constant 0 : i32
    %c0_i32_1 = arith.constant 0 : i32
    return %arg0, %c0_i32, %c0_i32_0 : i32, i32, i32
  }
  func.func @transform_1(%arg0: i32) -> (i32, i32) {
    %c0_i32 = arith.constant 0 : i32
    %c0_i32_0 = arith.constant 0 : i32
    %c0_i32_1 = arith.constant 0 : i32
    return %c0_i32, %c0_i32_0 : i32, i32
  }
  func.func @transform_2(%arg0: i32) -> (i32, i32) {
    %c0_i32 = arith.constant 0 : i32
    %c0_i32_0 = arith.constant 0 : i32
    %c0_i32_1 = arith.constant 0 : i32
    return %c0_i32, %c0_i32_0 : i32, i32
  }
  func.func @transform_3(%arg0: i32) -> (i32, i32) {
    %c0_i32 = arith.constant 0 : i32
    %c0_i32_0 = arith.constant 0 : i32
    %c0_i32_1 = arith.constant 0 : i32
    return %c0_i32, %c0_i32_0 : i32, i32
  }
  func.func @transform_4(%arg0: i32) -> (i32, i32) {
    %c0_i32 = arith.constant 0 : i32
    %c0_i32_0 = arith.constant 0 : i32
    %c0_i32_1 = arith.constant 0 : i32
    return %c0_i32, %c0_i32_0 : i32, i32
  }
  func.func @transform_5(%arg0: i32) -> (i32, i32) {
    %c0_i32 = arith.constant 0 : i32
    %c0_i32_0 = arith.constant 0 : i32
    %c0_i32_1 = arith.constant 0 : i32
    return %c0_i32, %c0_i32_0 : i32, i32
  }
  func.func @transform_6(%arg0: i32) -> (i32, i32, i32) {
    %c0_i32 = arith.constant 0 : i32
    %c0_i32_0 = arith.constant 0 : i32
    %c0_i32_1 = arith.constant 0 : i32
    return %arg0, %c0_i32, %c0_i32_0 : i32, i32, i32
  }
  func.func @transform_7(%arg0: i32) -> (i32, i32, i32) {
    %c0_i32 = arith.constant 0 : i32
    %c0_i32_0 = arith.constant 0 : i32
    %c0_i32_1 = arith.constant 0 : i32
    return %arg0, %c0_i32, %c0_i32_0 : i32, i32, i32
  }
  func.func @transform_8(%arg0: i32) -> (i32, i32, i32) {
    %c0_i32 = arith.constant 0 : i32
    %c0_i32_0 = arith.constant 0 : i32
    %c0_i32_1 = arith.constant 0 : i32
    return %arg0, %c0_i32, %c0_i32_0 : i32, i32, i32
  }
}

module attributes {stable_mosaic.version = 11 : i64} {
  func.func @_fc_head_kernel(%arg0: i32, %arg1: i32, %arg2: memref<2x1024xf32, #tpu.memory_space<vmem>>, %arg3: memref<1x1024xf32, #tpu.memory_space<vmem>>, %arg4: memref<1x1024xf32, #tpu.memory_space<vmem>>, %arg5: memref<1024x256xbf16, #tpu.memory_space<vmem>>, %arg6: memref<2x10xf32, #tpu.memory_space<vmem>>, %arg7: memref<10x256xf32, #tpu.memory_space<vmem>>, %arg8: memref<1x256xf32, #tpu.memory_space<vmem>>, %arg9: memref<1x256xf32, #tpu.memory_space<vmem>>, %arg10: memref<1x2x1xf32, #tpu.memory_space<vmem>>, %arg11: memref<2x256xf32, #tpu.memory_space<vmem>>) attributes {dimension_semantics = [#tpu.dimension_semantics<parallel>, #tpu.dimension_semantics<arbitrary>], iteration_bounds = array<i64: 2, 1>, scalar_prefetch = 0 : i64, scratch_operands = 1 : i64, tpu.core_type = #tpu.core_type<tc>, window_params = [{transform_indices = @transform_0, window_bounds = array<i64: 2, 1024>}, {transform_indices = @transform_1, window_bounds = array<i64: 1, 1024>}, {transform_indices = @transform_2, window_bounds = array<i64: 1, 1024>}, {transform_indices = @transform_3, window_bounds = array<i64: 1024, 256>}, {pipeline_mode = #tpu.pipeline_mode<synchronous>, transform_indices = @transform_4, window_bounds = array<i64: 2, 10>}, {transform_indices = @transform_5, window_bounds = array<i64: 10, 256>}, {transform_indices = @transform_6, window_bounds = array<i64: 1, 256>}, {transform_indices = @transform_7, window_bounds = array<i64: 1, 256>}, {transform_indices = @transform_8, window_bounds = array<i64: 1, 2, 1>}]} {
    %c0_i32 = arith.constant 0 : i32
    %0 = arith.cmpi eq, %arg1, %c0_i32 : i32
    %1 = arith.extui %0 : i1 to i32
    %c0_i32_0 = arith.constant 0 : i32
    %2 = arith.cmpi ne, %1, %c0_i32_0 : i32
    scf.if %2 {
      %cst_16 = arith.constant 0.000000e+00 : f32
      %24 = vector.broadcast %cst_16 : f32 to vector<2x256xf32>
      %c0_17 = arith.constant 0 : index
      %c0_18 = arith.constant 0 : index
      %25 = vector.load %arg11[%c0_17, %c0_18] : memref<2x256xf32, #tpu.memory_space<vmem>>, vector<2x256xf32>
      tpu.vector_store %arg11[%c0_17, %c0_18], %24 {strides = array<i32>} : memref<2x256xf32, #tpu.memory_space<vmem>>, vector<2x256xf32>,
    } else {
    }
    %c0 = arith.constant 0 : index
    %c0_1 = arith.constant 0 : index
    %3 = vector.load %arg2[%c0, %c0_1] : memref<2x1024xf32, #tpu.memory_space<vmem>>, vector<2x1024xf32>
    %c0_2 = arith.constant 0 : index
    %c0_3 = arith.constant 0 : index
    %4 = vector.load %arg3[%c0_2, %c0_3] : memref<1x1024xf32, #tpu.memory_space<vmem>>, vector<1x1024xf32>
    %5 = vector.broadcast %4 : vector<1x1024xf32> to vector<2x1024xf32>
    %6 = arith.mulf %3, %5 : vector<2x1024xf32>
    %c0_4 = arith.constant 0 : index
    %c0_5 = arith.constant 0 : index
    %7 = vector.load %arg4[%c0_4, %c0_5] : memref<1x1024xf32, #tpu.memory_space<vmem>>, vector<1x1024xf32>
    %8 = vector.broadcast %7 : vector<1x1024xf32> to vector<2x1024xf32>
    %9 = arith.addf %6, %8 : vector<2x1024xf32>
    %cst = arith.constant 0.000000e+00 : f32
    %10 = vector.broadcast %cst : f32 to vector<2x1024xf32>
    %11 = arith.cmpf oge, %9, %10 : vector<2x1024xf32>
    %cst_6 = arith.constant 2.000000e-01 : f32
    %12 = vector.broadcast %cst_6 : f32 to vector<2x1024xf32>
    %13 = arith.mulf %12, %9 : vector<2x1024xf32>
    %14 = arith.select %11, %9, %13 : vector<2x1024xi1>, vector<2x1024xf32>
    %c0_7 = arith.constant 0 : index
    %c0_8 = arith.constant 0 : index
    %15 = vector.load %arg11[%c0_7, %c0_8] : memref<2x256xf32, #tpu.memory_space<vmem>>, vector<2x256xf32>
    %16 = arith.truncf %14 : vector<2x1024xf32> to vector<2x1024xbf16>
    %c0_9 = arith.constant 0 : index
    %c0_10 = arith.constant 0 : index
    %17 = vector.load %arg5[%c0_9, %c0_10] : memref<1024x256xbf16, #tpu.memory_space<vmem>>, vector<1024x256xbf16>
    %cst_11 = arith.constant dense<0.000000e+00> : vector<2x256xf32>
    %18 = tpu.matmul %16, %17, %cst_11 {dimension_numbers = #tpu.dot_dimension_numbers<[1], [0], [0], [1], [0, 0, 1, 1], [], []>} : vector<2x1024xbf16>, vector<1024x256xbf16>, vector<2x256xf32> -> vector<2x256xf32>
    %19 = arith.addf %15, %18 : vector<2x256xf32>
    %c0_12 = arith.constant 0 : index
    %c0_13 = arith.constant 0 : index
    %20 = vector.load %arg11[%c0_12, %c0_13] : memref<2x256xf32, #tpu.memory_space<vmem>>, vector<2x256xf32>
    tpu.vector_store %arg11[%c0_12, %c0_13], %19 {strides = array<i32>} : memref<2x256xf32, #tpu.memory_space<vmem>>, vector<2x256xf32>,
    %c0_i32_14 = arith.constant 0 : i32
    %21 = arith.cmpi eq, %arg1, %c0_i32_14 : i32
    %22 = arith.extui %21 : i1 to i32
    %c0_i32_15 = arith.constant 0 : i32
    %23 = arith.cmpi ne, %22, %c0_i32_15 : i32
    scf.if %23 {
      %c0_16 = arith.constant 0 : index
      %c0_17 = arith.constant 0 : index
      %24 = vector.load %arg11[%c0_16, %c0_17] : memref<2x256xf32, #tpu.memory_space<vmem>>, vector<2x256xf32>
      %c0_18 = arith.constant 0 : index
      %c0_19 = arith.constant 0 : index
      %25 = vector.load %arg8[%c0_18, %c0_19] : memref<1x256xf32, #tpu.memory_space<vmem>>, vector<1x256xf32>
      %26 = vector.broadcast %25 : vector<1x256xf32> to vector<2x256xf32>
      %27 = arith.addf %24, %26 : vector<2x256xf32>
      %c0_20 = arith.constant 0 : index
      %c0_21 = arith.constant 0 : index
      %28 = vector.load %arg6[%c0_20, %c0_21] : memref<2x10xf32, #tpu.memory_space<vmem>>, vector<2x10xf32>
      %c0_22 = arith.constant 0 : index
      %c0_23 = arith.constant 0 : index
      %29 = vector.load %arg7[%c0_22, %c0_23] : memref<10x256xf32, #tpu.memory_space<vmem>>, vector<10x256xf32>
      %cst_24 = arith.constant dense<0.000000e+00> : vector<2x256xf32>
      %30 = tpu.matmul %28, %29, %cst_24 {dimension_numbers = #tpu.dot_dimension_numbers<[1], [0], [0], [1], [0, 0, 1, 1], [], []>} : vector<2x10xf32>, vector<10x256xf32>, vector<2x256xf32> -> vector<2x256xf32>
      %31 = arith.addf %27, %30 : vector<2x256xf32>
      %cst_25 = arith.constant 0.000000e+00 : f32
      %32 = vector.broadcast %cst_25 : f32 to vector<2x256xf32>
      %33 = arith.cmpf oge, %31, %32 : vector<2x256xf32>
      %cst_26 = arith.constant 2.000000e-01 : f32
      %34 = vector.broadcast %cst_26 : f32 to vector<2x256xf32>
      %35 = arith.mulf %34, %31 : vector<2x256xf32>
      %36 = arith.select %33, %31, %35 : vector<2x256xi1>, vector<2x256xf32>
      %c0_27 = arith.constant 0 : index
      %c0_28 = arith.constant 0 : index
      %37 = vector.load %arg9[%c0_27, %c0_28] : memref<1x256xf32, #tpu.memory_space<vmem>>, vector<1x256xf32>
      %38 = vector.broadcast %37 : vector<1x256xf32> to vector<2x256xf32>
      %39 = arith.mulf %36, %38 : vector<2x256xf32>
      %cst_29 = arith.constant dense<0.000000e+00> : vector<2xf32>
      %40 = vector.multi_reduction <add>, %39, %cst_29 [1] : vector<2x256xf32> to vector<2xf32>
      %41 = vector.shape_cast %40 : vector<2xf32> to vector<2x1xf32>
      %c0_30 = arith.constant 0 : index
      %c0_31 = arith.constant 0 : index
      %c0_32 = arith.constant 0 : index
      %42 = vector.load %arg10[%c0_30, %c0_31, %c0_32] : memref<1x2x1xf32, #tpu.memory_space<vmem>>, vector<1x2x1xf32>
      %43 = vector.shape_cast %42 : vector<1x2x1xf32> to vector<2x1xf32>
      %44 = vector.shape_cast %41 : vector<2x1xf32> to vector<1x2x1xf32>
      tpu.vector_store %arg10[%c0_30, %c0_31, %c0_32], %44 {strides = array<i32>} : memref<1x2x1xf32, #tpu.memory_space<vmem>>, vector<1x2x1xf32>,
    } else {
    }
    return
  }
  func.func @transform_0(%arg0: i32, %arg1: i32) -> (i32, i32) {
    %c0_i32 = arith.constant 0 : i32
    %c0_i32_0 = arith.constant 0 : i32
    return %c0_i32, %arg1 : i32, i32
  }
  func.func @transform_1(%arg0: i32, %arg1: i32) -> (i32, i32) {
    %c0_i32 = arith.constant 0 : i32
    %c0_i32_0 = arith.constant 0 : i32
    return %c0_i32, %arg1 : i32, i32
  }
  func.func @transform_2(%arg0: i32, %arg1: i32) -> (i32, i32) {
    %c0_i32 = arith.constant 0 : i32
    %c0_i32_0 = arith.constant 0 : i32
    return %c0_i32, %arg1 : i32, i32
  }
  func.func @transform_3(%arg0: i32, %arg1: i32) -> (i32, i32) {
    %c0_i32 = arith.constant 0 : i32
    return %arg1, %arg0 : i32, i32
  }
  func.func @transform_4(%arg0: i32, %arg1: i32) -> (i32, i32) {
    %c0_i32 = arith.constant 0 : i32
    %c0_i32_0 = arith.constant 0 : i32
    %c0_i32_1 = arith.constant 0 : i32
    return %c0_i32, %c0_i32_0 : i32, i32
  }
  func.func @transform_5(%arg0: i32, %arg1: i32) -> (i32, i32) {
    %c0_i32 = arith.constant 0 : i32
    %c0_i32_0 = arith.constant 0 : i32
    return %c0_i32, %arg0 : i32, i32
  }
  func.func @transform_6(%arg0: i32, %arg1: i32) -> (i32, i32) {
    %c0_i32 = arith.constant 0 : i32
    %c0_i32_0 = arith.constant 0 : i32
    return %c0_i32, %arg0 : i32, i32
  }
  func.func @transform_7(%arg0: i32, %arg1: i32) -> (i32, i32) {
    %c0_i32 = arith.constant 0 : i32
    %c0_i32_0 = arith.constant 0 : i32
    return %c0_i32, %arg0 : i32, i32
  }
  func.func @transform_8(%arg0: i32, %arg1: i32) -> (i32, i32, i32) {
    %c0_i32 = arith.constant 0 : i32
    %c0_i32_0 = arith.constant 0 : i32
    %c0_i32_1 = arith.constant 0 : i32
    return %arg0, %c0_i32, %c0_i32_0 : i32, i32, i32
  }
}

</mosaic_0001>

<bundles_post_ra>
// kernel: tile.33
= control target key start
LH: loop header
LB: loop body
LE: loop exit
PB: predicated region body
PF: predicated region fallthrough
CT: control target
= control target key end

     0   :  { %s20_s0 = inlined_call_operand.<no memory space> [shape: f32[], index: 0, kind: input, shape index: {}]   ;;  %s21_s1 = inlined_call_operand.vmem [shape: f32[1,64], index: 1, kind: output, shape index: {}]  }
   0x1   :  { %v2_v0 = vstv %s20_s0 }
   0x2   :  { %3 = vst [vmem:[%s21_s1] sm:$0x1] %v2_v0 }

// kernel: tile.42
= control target key start
LH: loop header
LB: loop body
LE: loop exit
PB: predicated region body
PF: predicated region fallthrough
CT: control target
= control target key end

     0   :  { %s22_s0 = inlined_call_operand.vmem [shape: f32[64], index: 0, kind: input, shape index: {}]   ;;  %s23_s1 = inlined_call_operand.vmem [shape: f32[2,64], index: 1, kind: output, shape index: {}]  }
   0x1   :  { %v4_v0 = vld [vmem:[%s22_s0] ss:$0 sm:$0xff] }
   0x2   :  { %5 = vst [vmem:[%s23_s1] sm:$0x3] %v4_v0 }

// kernel: tile.43
= control target key start
LH: loop header
LB: loop body
LE: loop exit
PB: predicated region body
PF: predicated region fallthrough
CT: control target
= control target key end

     0   :  { %vm7_vm0 = vcmask 523264   ;;  %vm13_vm1 = vcmask 1048064   ;;  %s39_s0 = inlined_call_operand.vmem [shape: f32[2,64], index: 0, kind: input, shape index: {}]   ;;  %s40_s1 = inlined_call_operand.vmem [shape: f32[1,128], index: 1, kind: output, shape index: {}]  }
   0x1   :  { %v4_v0 = vld [vmem:[%s39_s0] sm:$0x3]  ;;  %s22_s0 = smov 64  }
   0x2   :  { %5 = vst [vmem:[#allocation1] sm:$0x3] %v4_v0 }
   0x9   :  { %v10_v1 = vld [vmem:[#allocation1 + $0x1] sm:$0x1]   ;;  %v6_v2 = vld [vmem:[#allocation1] sm:$0x1]  }
   0xa   :  { %11 = vrot.lane.b32.xlu0 %v10_v1, %s22_s0  ;;  %8 = vst.msk [vmem:[#allocation0] sm:$0x1] %vm7_vm0, %v6_v2  }
  0x7c   :  { %v12_v3 = vpop.permute.xlu0 %11  }
  0x7d   :  { %14 = vst.msk [vmem:[#allocation0] sm:$0x1] %vm13_vm1, %v12_v3  }
  0x84   :  { %v18_v4 = vld [vmem:[#allocation0] sm:$0x1] }
  0x85   :  { %20 = vst [vmem:[%s40_s1] sm:$0x1] %v18_v4 }

// kernel: tile.52
= control target key start
LH: loop header
LB: loop body
LE: loop exit
PB: predicated region body
PF: predicated region fallthrough
CT: control target
= control target key end

     0   :  { %s22_s0 = inlined_call_operand.vmem [shape: f32[128], index: 0, kind: input, shape index: {}]   ;;  %s23_s1 = inlined_call_operand.vmem [shape: f32[2,128], index: 1, kind: output, shape index: {}]  }
   0x1   :  { %v4_v0 = vld [vmem:[%s22_s0] ss:$0 sm:$0xff] }
   0x2   :  { %5 = vst [vmem:[%s23_s1] sm:$0x3] %v4_v0 }

// kernel: discriminator_forward.6
= control target key start
LH: loop header
LB: loop body
LE: loop exit
PB: predicated region body
PF: predicated region fallthrough
CT: control target
= control target key end

     0   :  { %s822_s27 = smov 0   ;;  %s892_s0 = inlined_call_operand.vmem [shape: f32[2,17,64], index: 0, kind: input, shape index: {}]   ;;  %s893_s1 = inlined_call_operand.vmem [shape: f32[1,64], index: 1, kind: input, shape index: {}]   ;;  %s894_s2 = inlined_call_operand.vmem [shape: f32[1,64], index: 2, kind: input, shape index: {}]   ;;  %s895_s3 = inlined_call_operand.vmem [shape: bf16[64,64], index: 3, kind: input, shape index: {}]   ;;  %s896_s4 = inlined_call_operand.vmem [shape: bf16[64,64], index: 4, kind: input, shape index: {}]   ;;  %s897_s5 = inlined_call_operand.vmem [shape: f32[1,64], index: 5, kind: input, shape index: {}]   ;;  %s898_s6 = inlined_call_operand.vmem [shape: f32[2,16,64], index: 6, kind: output, shape index: {0}]   ;;  %s899_s7 = inlined_call_operand.vmem [shape: f32[2,1,64], index: 7, kind: output, shape index: {1}]   ;;  %s900_s8 = inlined_call_operand.vmem [shape: f32[2,1,64], index: 8, kind: output, shape index: {2}]  }
   0x1 LB: > { %s688_s28 = sadd.s32 4294967295, %s772_s27   ;;  %p692_p0 = scmp.ge.s32.totalorder %s772_s27, 1  ;;  %s772_s27 = sphi %s822_s27, %s19_s27  }
   0x2   : > { %p267_p1 = scmp.lt.s32.totalorder %s772_s27, 3 }
   0x4   : > { %p268_p2 = pnand %p692_p0, %p267_p1 }
   0x5   : > { %v758_v0 = vld [vmem:[%s895_s3] sm:$0xff] (!%p268_p2)   ;;  %v774_v1 = vmov (!%p268_p2), 0.0   ;;  %v356_v3 = vlaneseq (!%p268_p2)  ;;  %v760_v4 = vld [vmem:[%s895_s3 + $0x8] sm:$0xff] (!%p268_p2)   ;;  %vm775_vm0 = vmmov (!%p268_p2), 0   ;;  %p307_p3 = scmp.lt.s32.totalorder (!%p268_p2), %s688_s28, 1  ;;  %v762_v8 = vld [vmem:[%s895_s3 + $0x10] sm:$0xff] (!%p268_p2)  }
   0x6   : > { %271 = sbr.rel (%p268_p2) target bundleno = 271 (0x10f), region = 44  ;;  %734 = vmatprep.subr.bf16.mxu1 (!%p268_p2), %v774_v1  ;;  %722 = vmatprep.subr.bf16.mxu0 (!%p268_p2), %v774_v1  ;;  %v759_v2 = vld [vmem:[%s896_s4] sm:$0xff] (!%p268_p2)   ;;  %v761_v5 = vld [vmem:[%s896_s4 + $0x8] sm:$0xff] (!%p268_p2)   ;;  %v763_v9 = vld [vmem:[%s896_s4 + $0x10] sm:$0xff] (!%p268_p2)   ;;  %v776_v21 = vmov (!%p268_p2), 0   ;;  %vm437_vm10 = vcmask (!%p268_p2), 523264  }
   0x7   : > { %735 = vmatpush3.bf16.msra.mxu1 (!%p268_p2), %v758_v0  ;;  %742 = vmatprep.mubr.msk.bf16.mxu1 (!%p268_p2), %vm775_vm0, %v774_v1  ;;  %v357_v6 = vand.u32 (!%p268_p2), 127, %v356_v3  ;;  %v359_v7 = vshrl.u32 (!%p268_p2), %v356_v3, 7  ;;  %v696_v11 = vld [vmem:[%s893_s1] ss:$0 sm:$0xff] (!%p268_p2)  ;;  %v764_v18 = vld [vmem:[%s895_s3 + $0x18] sm:$0xff] (!%p268_p2)  }
   0x8   : > { %723 = vmatpush3.bf16.msra.mxu0 (!%p268_p2), %v759_v2  ;;  %736 = vmatprep.subr.bf16.mxu1 (!%p268_p2), %v774_v1  ;;  %v697_v12 = vld [vmem:[%s894_s2] ss:$0 sm:$0xff] (!%p268_p2)  ;;  %v765_v24 = vld [vmem:[%s896_s4 + $0x18] sm:$0xff] (!%p268_p2)   ;;  %vm400_vm15 = vsmask.f32 (!%p268_p2), 7424 }
   0x9   : > { %724 = vmatprep.subr.bf16.mxu0 (!%p268_p2), %v774_v1  ;;  %730 = vmatprep.mubr.msk.bf16.mxu0 (!%p268_p2), %vm775_vm0, %v774_v1  ;;  %v360_v10 = vadd.s32 (!%p268_p2), 8, %v359_v7  ;;  %v362_v13 = vmul.u32 (!%p268_p2), 2, %v359_v7  ;;  %vm365_vm1 = vcmp.ge.s32.totalorder (!%p268_p2), %v357_v6, 32  ;;  %v361_v17 = vadd.s32 (!%p268_p2), 16, %v359_v7  ;;  %v708_v56 = vld [vmem:[%s897_s5] ss:$0 sm:$0xff] (!%p268_p2) }
   0xa   : > { %v366_v22 = vsel (!%p268_p2), %vm365_vm1, 1, %v776_v21  ;;  %vm569_vm0 = vcmask (!%p268_p2), 516096  }
   0xb   : > { %737 = vmatpush3.bf16.msra.mxu1 (!%p268_p2), %v760_v4  ;;  %v363_v16 = vmul.u32 (!%p268_p2), 2, %v360_v10  ;;  %v367_v25 = vadd.s32 (!%p268_p2), %v366_v22, %v362_v13  ;;  %v364_v28 = vmul.u32 (!%p268_p2), 2, %v361_v17 }
   0xc   : > { %725 = vmatpush3.bf16.msra.mxu0 (!%p268_p2), %v761_v5  ;;  %738 = vmatprep.subr.bf16.mxu1 (!%p268_p2), %v774_v1 }
   0xd   : > { %s902_s28 = smov (!%p307_p3, %s688_s28), 1  ;;  %726 = vmatprep.subr.bf16.mxu0 %v774_v1  ;;  %v368_v26 = vadd.s32 %v366_v22, %v363_v16  ;;  %vm370_vm2 = vcmp.ge.s32.totalorder %v367_v25, 1  ;;  %vm373_vm4 = vcmp.le.s32.totalorder %v367_v25, 32  ;;  %v369_v34 = vadd.s32 %v366_v22, %v364_v28 }
   0xe   : > { %s746_s17 = smul.u32 24, %s902_s28  ;;  %vm376_vm8 = vmand %vm370_vm2, %vm373_vm4  ;;  %s711_s11 = sshll.u32 %s902_s28, 4 }
   0xf   : > { %739 = vmatpush3.bf16.msra.mxu1 %v762_v8  ;;  %vm371_vm3 = vcmp.ge.s32.totalorder %v368_v26, 1  ;;  %vm374_vm5 = vcmp.le.s32.totalorder %v368_v26, 32  ;;  %vm372_vm12 = vcmp.ge.s32.totalorder %v369_v34, 1  ;;  %vm375_vm13 = vcmp.le.s32.totalorder %v369_v34, 32  ;;  %s316_s16 = scalar_lea.vmem %s898_s6, %s711_s11  ;;  %s319_s19 = scalar_lea.vmem %s899_s7, %s902_s28 }
  0x10   : > { %s311_s22 = scalar_lea.vmem %s892_s0, %s746_s17  ;;  %727 = vmatpush3.bf16.msra.mxu0 %v763_v9  ;;  %740 = vmatprep.subr.bf16.mxu1 %v774_v1  ;;  %vm377_vm9 = vmand %vm371_vm3, %vm374_vm5 }
  0x11   : > { %v324_v14 = vld [vmem:[%s311_s22] sm:$0xff]  ;;  %v325_v15 = vld [vmem:[%s311_s22 + $0x8] sm:$0xff]  ;;  %v326_v23 = vld [vmem:[%s311_s22 + $0x10] sm:$0x1]  ;;  %728 = vmatprep.subr.bf16.mxu0 %v774_v1  ;;  %s322_s22 = scalar_lea.vmem %s900_s8, %s902_s28 }
  0x12   : > { %v334_v19 = vmul.f32 %v696_v11, %v324_v14  ;;  %v335_v20 = vmul.f32 %v696_v11, %v325_v15  ;;  %v336_v27 = vmul.f32 %v696_v11, %v326_v23  ;;  %vm378_vm14 = vmand %vm372_vm12, %vm375_vm13 }
  0x13   : > { %741 = vmatpush3.bf16.msra.mxu1 %v764_v18 }
  0x14   : > { %v344_v29 = vadd.f32 %v697_v12, %v334_v19  ;;  %v345_v30 = vadd.f32 %v697_v12, %v335_v20  ;;  %729 = vmatpush3.bf16.msra.mxu0 %v765_v24  ;;  %v346_v33 = vadd.f32 %v697_v12, %v336_v27 }
  0x16   : > { %vm347_vm6 = vcmp.ge.f32.partialorder %v344_v29, 0.0  ;;  %vm348_vm7 = vcmp.ge.f32.partialorder %v345_v30, 0.0  ;;  %v350_v31 = vmul.f32 0.2, %v344_v29  ;;  %v351_v32 = vmul.f32 0.2, %v345_v30 }
  0x17   : > { %vm349_vm11 = vcmp.ge.f32.partialorder %v346_v33, 0.0  ;;  %v352_v39 = vmul.f32 0.2, %v346_v33 }
  0x18   : > { %v353_v35 = vsel %vm347_vm6, %v344_v29, %v350_v31  ;;  %v354_v36 = vsel %vm348_vm7, %v345_v30, %v351_v32 }
  0x19   : > { %v379_v37 = vsel %vm376_vm8, %v353_v35, 0.0  ;;  %v380_v38 = vsel %vm377_vm9, %v354_v36, 0.0  ;;  %v355_v41 = vsel %vm349_vm11, %v346_v33, %v352_v39 }
  0x1a   : > { %v382_v40 = vpack.c.bf16 %v380_v38, %v379_v37  ;;  %v381_v42 = vsel %vm378_vm14, %v355_v41, 0.0 }
  0x1b   : > { %v383_v45 = vpack.c.bf16 %v381_v42, %v381_v42 }
  0x1c   : > { %743 = vmatmul.mubr.msk.bf16.vlgmr.msra.gmra.mrb[0].mxu1 %vm437_vm10, %v382_v40  ;;  %v402_v43 = vshrl.u32 %v382_v40, 16  ;;  %v404_v44 = vshll.u32 %v382_v40, 16 }
  0x1d   : > { %v409_v47 = vshll.u32 %v383_v45, 16 }
  0x1e   : > { %v406_v46 = vrot.slane %v404_v44, 1 }
  0x1f   : > { %v411_v49 = vrot.slane %v409_v47, 1 }
  0x20   : > { %v407_v48 = vor.u32 %v406_v46, %v402_v43 }
  0x22   : > { %v412_v50 = vsel %vm400_vm15, %v407_v48, %v411_v49 }
  0x23   : > { %731 = vmatmul.mubr.msk.bf16.vlgmr.msra.gmra.mrb[0].mxu0 %vm437_vm10, %v412_v50 }
  0xef   : > { %v542_v51 = vpop.f32.mrb[0].mxu1 }
  0xf0   : > { %v744_v52 = vpop.f32.mrb[1].mxu1 }
  0xf1   : > { %v545_v53 = vpop.f32.mrb[2].mxu1 }
  0xf2   : > { %v745_v54 = vpop.f32.mrb[3].mxu1 }
  0xf6   : > { %v475_v55 = vpop.f32.mrb[0].mxu0 }
  0xf7   : > { %v543_v57 = vadd.f32 %v542_v51, %v475_v55  ;;  %v732_v58 = vpop.f32.mrb[1].mxu0 }
  0xf8   : > { %v478_v59 = vpop.f32.mrb[2].mxu0 }
  0xf9   : > { %v556_v60 = vadd.f32 %v708_v56, %v543_v57  ;;  %v546_v61 = vadd.f32 %v545_v53, %v478_v59  ;;  %v733_v62 = vpop.f32.mrb[3].mxu0 }
  0xfb   : > { %558 = vst.msk [vmem:[%s316_s16] sm:$0xff] %vm437_vm10, %v556_v60  ;;  %v571_v63 = vmul.f32 %v556_v60, %v556_v60  ;;  %v557_v0 = vadd.f32 %v708_v56, %v546_v61  ;;  %v560_v1 = vsel %vm437_vm10, %v556_v60, 0.0 }
  0xfd   : > { %559 = vst.msk [vmem:[%s316_s16 + $0x8] sm:$0xff] %vm437_vm10, %v557_v0  ;;  %v561_v2 = vsel %vm437_vm10, %v557_v0, 0.0  ;;  %v572_v3 = vmul.f32 %v557_v0, %v557_v0  ;;  %v573_v5 = vsel %vm437_vm10, %v571_v63, 0.0 }
  0xfe   : > { %v562_v4 = vadd.f32 %v561_v2, %v560_v1 }
  0xff   : > { %v574_v6 = vsel %vm437_vm10, %v572_v3, 0.0 }
 0x100   : > { %v563_v7 = vrot.slane %v562_v4, 4  ;;  %v575_v8 = vadd.f32 %v574_v6, %v573_v5 }
 0x102   : > { %v564_v9 = vadd.f32 %v563_v7, %v562_v4  ;;  %v576_v10 = vrot.slane %v575_v8, 4 }
 0x104   : > { %v565_v11 = vrot.slane %v564_v9, 2  ;;  %v577_v12 = vadd.f32 %v576_v10, %v575_v8 }
 0x106   : > { %v566_v13 = vadd.f32 %v565_v11, %v564_v9  ;;  %v578_v14 = vrot.slane %v577_v12, 2 }
 0x108   : > { %v567_v15 = vrot.slane %v566_v13, 1  ;;  %v579_v16 = vadd.f32 %v578_v14, %v577_v12 }
 0x10a   : > { %v568_v17 = vadd.f32 %v567_v15, %v566_v13  ;;  %v580_v18 = vrot.slane %v579_v16, 1 }
 0x10c   : > { %570 = vst.msk [vmem:[%s319_s19] sm:$0x1] %vm569_vm0, %v568_v17  ;;  %v581_v19 = vadd.f32 %v580_v18, %v579_v16 }
 0x10e   : > { %582 = vst.msk [vmem:[%s322_s22] sm:$0x1] %vm569_vm0, %v581_v19 }
 0x10f PF: > { %s19_s27 = sadd.s32 1, %s772_s27  }
 0x110   : > { %p16_p4 = scmp.ge.s32.totalorder %s19_s27, 4  }
 0x112   :  { %18 = sbr.rel (!%p16_p4) target bundleno = 1 (0x1), region = 98 }

// kernel: discriminator_forward.5
= control target key start
LH: loop header
LB: loop body
LE: loop exit
PB: predicated region body
PF: predicated region fallthrough
CT: control target
= control target key end

     0   :  { %14 = vsyncpa [#allocation3], 0  ;;  %s1195_s0 = inlined_call_operand.vmem [shape: f32[2,33,24], index: 0, kind: input, shape index: {}]   ;;  %s1196_s1 = inlined_call_operand.vmem [shape: f32[1,24], index: 1, kind: input, shape index: {}]   ;;  %s1197_s2 = inlined_call_operand.vmem [shape: f32[1,24], index: 2, kind: input, shape index: {}]   ;;  %s1198_s3 = inlined_call_operand.vmem [shape: bf16[24,32], index: 3, kind: input, shape index: {}]   ;;  %s1199_s4 = inlined_call_operand.vmem [shape: bf16[24,32], index: 4, kind: input, shape index: {}]   ;;  %s1200_s5 = inlined_call_operand.vmem [shape: f32[1,32], index: 5, kind: input, shape index: {}]   ;;  %s1201_s6 = inlined_call_operand.vmem [shape: f32[2,32,32], index: 6, kind: output, shape index: {0}]   ;;  %s1202_s7 = inlined_call_operand.hbm [shape: f32[2,1,32], index: 7, kind: output, shape index: {1}]   ;;  %s1203_s8 = inlined_call_operand.hbm [shape: f32[2,1,32], index: 8, kind: output, shape index: {2}]  }
   0x1   :  { %16 = vsyncpa [#allocation3 + $0x1], 0 }
   0x2   :  { %17 = vsyncpa [#allocation5], 0 }
   0x3   :  { %19 = vsyncpa [#allocation5 + $0x1], 0  ;;  %s1001_s27 = smov 0   ;;  %s1003_s28 = smov 0  }
   0x4   :  { %s1005_s29 = smov 0   ;;  %s1007_s30 = smov 0  }
   0x5 LB: > { %s1022_s9 = sadd.s32 4294967295, %s951_s30   ;;  %s754_s10 = sadd.s32 4294967294, %s951_s30   ;;  %s951_s30 = sphi %s1007_s30, %s1213_s30   ;;  %s947_s29 = sphi %s1005_s29, %s1212_s29   ;;  %s943_s28 = sphi %s1003_s28, %s1211_s28   ;;  %s939_s27 = sphi %s1001_s27, %s1210_s27  }
   0x6   : > { %s1026_s11 = sadd.s32 1, %s951_s30   ;;  %s189_s12 = sadd.s32 1, %s947_s29 }
   0x7   : > { %s186_s13 = ssub.s32 %s951_s30, %s1026_s11  ;;  %p199_p0 = scmp.ne.s32.totalorder %s947_s29, %s943_s28 }
   0x8   : > { %p187_p1 = scmp.eq.s32.totalorder %s186_s13, 0  ;;  %p200_p2 = scmp.eq.s32.totalorder %s1022_s9, 1 }
   0x9   : > { %p205_p3 = scmp.ne.s32.totalorder %s943_s28, %s939_s27  ;;  %p206_p4 = scmp.eq.s32.totalorder %s754_s10, 1 }
   0xa   : > { %s1037_s14 = scalar_select %p187_p1, %s947_s29, %s189_s12  }
   0xb   : > { %p1039_p5 = por %p200_p2, %p199_p0  ;;  %p1043_p6 = por %p206_p4, %p205_p3 }
   0xc   : > { %p757_p7 = scmp.ge.s32.totalorder %s951_s30, 1  ;;  %p273_p8 = scmp.lt.s32.totalorder %s951_s30, 3 }
   0xe   : > { %p274_p9 = pnand %p757_p7, %p273_p8 }
   0xf   : > { %v853_v0 = vld [vmem:[%s1198_s3] sm:$0xff] (!%p274_p9)   ;;  %vm441_vm0 = vcmask (!%p274_p9), 1043456   ;;  %v355_v1 = vlaneseq (!%p274_p9)  ;;  %p315_p10 = scmp.lt.s32.totalorder (!%p274_p9), %s1022_s9, 1  ;;  %v855_v3 = vld [vmem:[%s1198_s3 + $0x8] ss:$0 sps:$4 sm:$0xff] (!%p274_p9)   ;;  %v953_v12 = vmov (!%p274_p9), 0  }
  0x10   : > { %277 = sbr.rel (%p274_p9) target bundleno = 319 (0x13f), region = 44  ;;  %v854_v2 = vld [vmem:[%s1199_s4] sm:$0xff] (!%p274_p9)   ;;  %793 = vmatprep.subr.bf16.mxu0 (!%p274_p9), %v853_v0  ;;  %v856_v4 = vld [vmem:[%s1199_s4 + $0x8] ss:$0 sps:$4 sm:$0xff] (!%p274_p9)   ;;  %v508_v6 = vsel (!%p274_p9), %vm441_vm0, %v855_v3, 0  ;;  %vm434_vm2 = vcmask (!%p274_p9), 195584  }
  0x11   : > { %794 = vmatpush3.bf16.msra.mxu0 (!%p274_p9), %v853_v0  ;;  %785 = vmatprep.subr.bf16.mxu1 (!%p274_p9), %v854_v2  ;;  %v356_v5 = vand.u32 (!%p274_p9), 127, %v355_v1  ;;  %v358_v7 = vshrl.u32 (!%p274_p9), %v355_v1, 7  ;;  %v443_v8 = vsel (!%p274_p9), %vm441_vm0, %v856_v4, 0  ;;  %v761_v9 = vld [vmem:[%s1196_s1] ss:$0 sm:$0xff] (!%p274_p9)  ;;  %s772_s12 = sshll.u32 (!%p274_p9), %s1022_s9, 4 }
  0x12   : > { %786 = vmatpush3.bf16.msra.mxu1 (!%p274_p9), %v854_v2  ;;  %806 = vmatprep.subr.msk.bf16.mxu0 (!%p274_p9), %vm441_vm0, %v855_v3  ;;  %v762_v15 = vld [vmem:[%s1197_s2] ss:$0 sm:$0xff] (!%p274_p9)  ;;  %s1119_s22 = scalar_lea.hbm (!%p274_p9), %s1202_s7, %s772_s12  ;;  %s1127_s24 = scalar_lea.hbm (!%p274_p9), %s1203_s8, %s772_s12 }
  0x13   : > { %805 = vmatprep.subr.msk.bf16.mxu1 (!%p274_p9), %vm441_vm0, %v856_v4  ;;  %vm368_vm1 = vcmp.ge.s32.totalorder (!%p274_p9), %v356_v5, 12  ;;  %v359_v10 = vadd.s32 (!%p274_p9), 8, %v358_v7  ;;  %v363_v11 = vmul.u32 (!%p274_p9), 2, %v358_v7  ;;  %v360_v14 = vadd.s32 (!%p274_p9), 16, %v358_v7  ;;  %v771_v4 = vld [vmem:[%s1200_s5] ss:$0 sm:$0xff] (!%p274_p9) }
  0x14   : > { %v369_v13 = vsel (!%p274_p9), %vm368_vm1, 1, %v953_v12  ;;  %v361_v16 = vadd.s32 (!%p274_p9), 24, %v358_v7  ;;  %v362_v23 = vadd.s32 (!%p274_p9), 32, %v358_v7  ;;  %s954_s20 = smov (!%p274_p9), [#allocation2]  }
  0x15   : > { %796 = vmatpush3.bf16.msra.mxu0 (!%p274_p9), %v508_v6  ;;  %v364_v19 = vmul.u32 (!%p274_p9), 2, %v359_v10  ;;  %v370_v20 = vadd.s32 (!%p274_p9), %v369_v13, %v363_v11  ;;  %v365_v22 = vmul.u32 (!%p274_p9), 2, %v360_v14 }
  0x16   : > { %788 = vmatpush3.bf16.msra.mxu1 (!%p274_p9), %v443_v8  ;;  %v366_v28 = vmul.u32 (!%p274_p9), 2, %v361_v16  ;;  %v367_v42 = vmul.u32 (!%p274_p9), 2, %v362_v23 }
  0x17   : > { %s1063_s25 = scalar_select %p315_p10, %s1022_s9, 1  ;;  %v371_v29 = vadd.s32 %v369_v13, %v364_v19  ;;  %vm375_vm3 = vcmp.ge.s32.totalorder %v370_v20, 1  ;;  %vm380_vm4 = vcmp.le.s32.totalorder %v370_v20, 64  ;;  %v372_v36 = vadd.s32 %v369_v13, %v365_v22 }
  0x18   : > { %vm1079_vm5 = vmand %vm375_vm3, %vm380_vm4  ;;  %v373_v38 = vadd.s32 %v369_v13, %v366_v28  ;;  %v374_v47 = vadd.s32 %v369_v13, %v367_v42  ;;  %vm404_vm3 = vsmask.f32 7424  ;;  %vm570_vm4 = vcmask 261120  }
  0x19   : > { %s807_s26 = smul.u32 40, %s1063_s25  ;;  %vm376_vm6 = vcmp.ge.s32.totalorder %v371_v29, 1  ;;  %vm381_vm7 = vcmp.le.s32.totalorder %v371_v29, 64  ;;  %vm377_vm9 = vcmp.ge.s32.totalorder %v372_v36, 1  ;;  %vm382_vm10 = vcmp.le.s32.totalorder %v372_v36, 64  ;;  %s776_s21 = sshll.u32 %s1063_s25, 5 }
  0x1a   : > { %vm386_vm8 = vmand %vm376_vm6, %vm381_vm7  ;;  %vm378_vm11 = vcmp.ge.s32.totalorder %v373_v38, 1  ;;  %vm383_vm12 = vcmp.le.s32.totalorder %v373_v38, 64  ;;  %vm379_vm15 = vcmp.ge.s32.totalorder %v374_v47, 1  ;;  %vm384_vm0 = vcmp.le.s32.totalorder %v374_v47, 64  ;;  %s324_s10 = scalar_lea.vmem %s1201_s6, %s776_s21  ;;  %s1109_s25 = sand.u32 1, %s943_s28  }
  0x1b   : > { %s319_s18 = scalar_lea.vmem %s1195_s0, %s807_s26  ;;  %vm387_vm13 = vmand %vm377_vm9, %vm382_vm10  ;;  %s308_s13 = scalar_lea.vmem [#allocation2], %s1109_s25 }
  0x1c   : > { %v326_v17 = vld [vmem:[%s319_s18] sm:$0xff]  ;;  %v327_v18 = vld [vmem:[%s319_s18 + $0x8] sm:$0xff]  ;;  %v328_v21 = vld [vmem:[%s319_s18 + $0x10] sm:$0xff]  ;;  %s633_s17 = sshll.u32 %s308_s13, 4  ;;  %s614_s26 = scalar_lea.sflag [#allocation3], %s1109_s25  ;;  %s1121_s17 = int_to_ptr.vmem [resolvable:$true] %s633_s17 }
  0x1d   : > { %v338_v24 = vmul.f32 %v761_v9, %v326_v17  ;;  %v339_v25 = vmul.f32 %v761_v9, %v327_v18  ;;  %v329_v26 = vld [vmem:[%s319_s18 + $0x18] sm:$0xff]  ;;  %v340_v27 = vmul.f32 %v761_v9, %v328_v21  ;;  %v330_v31 = vld [vmem:[%s319_s18 + $0x20] sm:$0x1]  ;;  %vm388_vm14 = vmand %vm378_vm11, %vm383_vm12  ;;  %s1204_s18 = scalar_lea.vmem [#allocation4], %s1109_s25  ;;  %s861_s21 = sshll.u32 %s954_s20, 4  ;;  %s862_s21 = int_to_ptr.vmem [resolvable:$false] %s861_s21 }
  0x1e   : > { %v341_v30 = vmul.f32 %v761_v9, %v329_v26  ;;  %v342_v40 = vmul.f32 %v761_v9, %v330_v31  ;;  %vm389_vm1 = vmand %vm379_vm15, %vm384_vm0  ;;  %s646_s19 = sshll.u32 %s1204_s18, 4  ;;  %s863_s18 = scalar_lea.vmem %s862_s21, 32  ;;  %s1129_s19 = int_to_ptr.vmem [resolvable:$true] %s646_s19 }
  0x1f   : > { %v350_v32 = vadd.f32 %v762_v15, %v338_v24  ;;  %v351_v33 = vadd.f32 %v762_v15, %v339_v25  ;;  %v352_v35 = vadd.f32 %v762_v15, %v340_v27  ;;  %p864_p0 = scmp.lt.s32.totalorder %s1121_s17, %s862_s21 }
  0x20   : > { %v353_v37 = vadd.f32 %v762_v15, %v341_v30  ;;  %v354_v46 = vadd.f32 %v762_v15, %v342_v40 }
  0x21   : > { %v390_v39 = vsel %vm1079_vm5, %v350_v32, 0.0  ;;  %v391_v41 = vsel %vm386_vm8, %v351_v33, 0.0  ;;  %v392_v44 = vsel %vm387_vm13, %v352_v35, 0.0 }
  0x22   : > { %v395_v43 = vpack.c.bf16 %v391_v41, %v390_v39  ;;  %v393_v45 = vsel %vm388_vm14, %v353_v37, 0.0  ;;  %v394_v54 = vsel %vm389_vm1, %v354_v46, 0.0 }
  0x23   : > { %v396_v48 = vpack.c.bf16 %v393_v45, %v392_v44  ;;  %v397_v57 = vpack.c.bf16 %v394_v54, %v394_v54 }
  0x24   : > { %797 = vmatprep.mubr.msk.bf16.mxu0 %vm434_vm2, %v395_v43  ;;  %v406_v49 = vshrl.u32 %v395_v43, 16  ;;  %v408_v50 = vshll.u32 %v395_v43, 16 }
  0x25   : > { %798 = vmatmul.mubr.msk.bf16.vlgmr.msra.gmra.mrb[0].mxu0 %vm434_vm2, %v396_v48  ;;  %v413_v52 = vshll.u32 %v396_v48, 16  ;;  %v417_v53 = vshrl.u32 %v396_v48, 16  ;;  %v421_v60 = vshll.u32 %v397_v57, 16 }
  0x26   : > { %v410_v51 = vrot.slane %v408_v50, 1 }
  0x27   : > { %v415_v56 = vrot.slane %v413_v52, 1  ;;  %v423_v61 = vrot.slane %v421_v60, 1 }
  0x28   : > { %v411_v55 = vor.u32 %v410_v51, %v406_v49 }
  0x29   : > { %v419_v59 = vor.u32 %v417_v53, %v415_v56 }
  0x2a   : > { %v416_v58 = vsel %vm404_vm3, %v411_v55, %v415_v56 }
  0x2b   : > { %789 = vmatprep.mubr.msk.bf16.mxu1 %vm434_vm2, %v416_v58  ;;  %v424_v62 = vsel %vm404_vm3, %v419_v59, %v423_v61 }
  0x2c   : > { %790 = vmatmul.mubr.msk.bf16.vlgmr.msra.gmra.mrb[0].mxu1 %vm434_vm2, %v424_v62  ;;  %vm588_vm2 = vcmask 253952  }
  0xf8   : > { %v799_v63 = vpop.f32.mrb[0].mxu0 }
  0xf9   : > { %v544_v0 = vpop.f32.mrb[1].mxu0 }
  0xfa   : > { %v800_v1 = vpop.f32.mrb[2].mxu0 }
  0xfb   : > { %v547_v2 = vpop.f32.mrb[3].mxu0 }
  0xff   : > { %v791_v3 = vpop.f32.mrb[0].mxu1 }
 0x100   : > { %v553_v5 = vadd.f32 %v799_v63, %v791_v3  ;;  %v479_v6 = vpop.f32.mrb[1].mxu1 }
 0x101   : > { %v545_v7 = vadd.f32 %v544_v0, %v479_v6  ;;  %v792_v8 = vpop.f32.mrb[2].mxu1 }
 0x102   : > { %v568_v9 = vadd.f32 %v771_v4, %v553_v5  ;;  %v556_v10 = vadd.f32 %v800_v1, %v792_v8  ;;  %v482_v11 = vpop.f32.mrb[3].mxu1 }
 0x103   : > { %v566_v12 = vadd.f32 %v771_v4, %v545_v7  ;;  %v548_v13 = vadd.f32 %v547_v2, %v482_v11 }
 0x104   : > { %573 = vst.msk [vmem:[%s324_s10 + $0x10] sm:$0xff] %vm570_vm4, %v568_v9  ;;  %v569_v14 = vadd.f32 %v771_v4, %v556_v10  ;;  %v592_v17 = vmul.f32 %v568_v9, %v568_v9  ;;  %v578_v22 = vsel %vm570_vm4, %v568_v9, 0.0 }
 0x105   : > { %571 = vst.msk [vmem:[%s324_s10] sm:$0xff] %vm570_vm4, %v566_v12  ;;  %v590_v15 = vmul.f32 %v566_v12, %v566_v12  ;;  %v567_v16 = vadd.f32 %v771_v4, %v548_v13  ;;  %v575_v18 = vsel %vm570_vm4, %v566_v12, 0.0 }
 0x106   : > { %574 = vst.msk [vmem:[%s324_s10 + $0x18] sm:$0xff] %vm570_vm4, %v569_v14  ;;  %v593_v24 = vmul.f32 %v569_v14, %v569_v14  ;;  %v597_v28 = vsel %vm570_vm4, %v592_v17, 0.0  ;;  %v580_v29 = vsel %vm570_vm4, %v569_v14, 0.0 }
 0x107   : > { %572 = vst.msk [vmem:[%s324_s10 + $0x8] sm:$0xff] %vm570_vm4, %v567_v16  ;;  %v576_v19 = vsel %vm570_vm4, %v567_v16, 0.0  ;;  %v591_v20 = vmul.f32 %v567_v16, %v567_v16  ;;  %v594_v23 = vsel %vm570_vm4, %v590_v15, 0.0  ;;  %s857_s10 = scalar_lea.vmem %s1121_s17, 16 }
 0x108   : > { %v577_v21 = vadd.f32 %v576_v19, %v575_v18  ;;  %v599_v32 = vsel %vm570_vm4, %v593_v24, 0.0  ;;  %p858_p11 = scmp.ne.s32.totalorder %s1121_s17, %s857_s10  ;;  %p865_p1 = scmp.lt.s32.totalorder %s863_s18, %s857_s10 }
 0x109   : > { %v595_v25 = vsel %vm570_vm4, %v591_v20, 0.0 }
 0x10a   : > { %v579_v26 = vadd.f32 %v578_v22, %v577_v21  ;;  %v596_v27 = vadd.f32 %v595_v25, %v594_v23  ;;  %p859_p12 = pnand %p858_p11, %p1039_p5  ;;  %p866_p2 = por %p865_p1, %p864_p0 }
 0x10c   : > { %v581_v30 = vadd.f32 %v580_v29, %v579_v26  ;;  %v598_v31 = vadd.f32 %v597_v28, %v596_v27  ;;  %p860_p13 = pneg %p859_p12 }
 0x10e   : > { %v582_v33 = vrot.slane %v581_v30, 4  ;;  %v600_v34 = vadd.f32 %v599_v32, %v598_v31  ;;  %p867_p3 = pnand %p866_p2, %p860_p13 }
 0x110   : > { %v583_v35 = vadd.f32 %v582_v33, %v581_v30  ;;  %v601_v36 = vrot.slane %v600_v34, 4 }
 0x112   : > { %v584_v37 = vrot.slane %v583_v35, 2  ;;  %v602_v38 = vadd.f32 %v601_v36, %v600_v34 }
 0x114   : > { %v585_v39 = vadd.f32 %v584_v37, %v583_v35  ;;  %v603_v40 = vrot.slane %v602_v38, 2 }
 0x116   : > { %v586_v41 = vrot.slane %v585_v39, 1  ;;  %v604_v42 = vadd.f32 %v603_v40, %v602_v38 }
 0x118   : > { %v587_v43 = vadd.f32 %v586_v41, %v585_v39  ;;  %v605_v44 = vrot.slane %v604_v42, 1 }
 0x11a   : > { %589 = vst.msk [vmem:[%s308_s13] sm:$0x1] %vm588_vm2, %v587_v43  ;;  %v606_v45 = vadd.f32 %v605_v44, %v604_v42 }
 0x11b   : > { %870 = shalt.err (!%p867_p3)
}
 0x11c   : > { %s871_s12 = scalar_lea.hbm %s1119_s22, 16  ;;  %s875_s23 = scalar_lea.hbm %s1202_s7, 32 }
 0x11d   : > { %p872_p4 = scmp.ne.s32.totalorder %s1119_s22, %s871_s12  ;;  %p876_p9 = scmp.lt.u32.totalorder %s1119_s22, %s1202_s7 }
 0x11e   : > { %p877_p10 = scmp.lt.u32.totalorder %s875_s23, %s871_s12  ;;  %p879_p12 = scmp.lt.u32.totalorder %s871_s12, %s1119_s22 }
 0x11f   : > { %p873_p7 = pnand %p872_p4, %p1039_p5 }
 0x120   : > { %p878_p11 = por %p877_p10, %p876_p9 }
 0x121   : > { %p874_p8 = pneg %p873_p7 }
 0x122   : > { %p880_p13 = por %p879_p12, %p878_p11 }
 0x124   : > { %p881_p0 = pnand %p880_p13, %p874_p8 }
 0x126   : > { %884 = shalt.err (!%p881_p0)
}
 0x127   : > { %808 = dma.vmem_to_hbm [thread:$0]  (%p1039_p5), %s1121_s17, 16, %s1119_s22, %s614_s26  }
 0x128   : > { %s1209_s18 = scalar_lea.vmem [#allocation4], %s1109_s25  ;;  %s618_s10 = scalar_lea.sflag [#allocation5], %s1109_s25 }
 0x129   : > { %607 = vst.msk [vmem:[%s1209_s18] sm:$0x1] %vm588_vm2, %v606_v45  ;;  %s885_s13 = scalar_lea.vmem %s1129_s19, 16  ;;  %s955_s12 = smov [#allocation4]  }
 0x12a   : > { %p886_p1 = scmp.ne.s32.totalorder %s1129_s19, %s885_s13  ;;  %s889_s9 = sshll.u32 %s955_s12, 4  ;;  %s890_s9 = int_to_ptr.vmem [resolvable:$false] %s889_s9 }
 0x12b   : > { %s891_s23 = scalar_lea.vmem %s890_s9, 32  ;;  %p892_p4 = scmp.lt.s32.totalorder %s1129_s19, %s890_s9 }
 0x12c   : > { %p887_p2 = pnand %p886_p1, %p1039_p5  ;;  %p893_p7 = scmp.lt.s32.totalorder %s891_s23, %s885_s13 }
 0x12e   : > { %p888_p3 = pneg %p887_p2  ;;  %p894_p8 = por %p893_p7, %p892_p4 }
 0x130   : > { %p895_p9 = pnand %p894_p8, %p888_p3 }
 0x132   : > { %898 = shalt.err (!%p895_p9)
}
 0x133   : > { %s899_s25 = scalar_lea.hbm %s1127_s24, 16  ;;  %s903_s26 = scalar_lea.hbm %s1203_s8, 32 }
 0x134   : > { %p900_p10 = scmp.ne.s32.totalorder %s1127_s24, %s899_s25  ;;  %p904_p13 = scmp.lt.u32.totalorder %s1127_s24, %s1203_s8 }
 0x135   : > { %p905_p0 = scmp.lt.u32.totalorder %s903_s26, %s899_s25  ;;  %p907_p2 = scmp.lt.u32.totalorder %s899_s25, %s1127_s24 }
 0x136   : > { %p901_p11 = pnand %p900_p10, %p1039_p5 }
 0x137   : > { %p906_p1 = por %p905_p0, %p904_p13 }
 0x138   : > { %p902_p12 = pneg %p901_p11 }
 0x139   : > { %p908_p3 = por %p907_p2, %p906_p1 }
 0x13b   : > { %p909_p4 = pnand %p908_p3, %p902_p12 }
 0x13d   : > { %912 = shalt.err (!%p909_p4)
}
 0x13e   : > { %809 = dma.vmem_to_hbm [thread:$0]  (%p1039_p5), %s1129_s19, 16, %s1127_s24, %s618_s10  }
 0x13f PF: > { %p819_p7 = scmp.ge.s32.totalorder %s951_s30, 2  ;;  %s666_s18 = sand.u32 1, %s939_s27  }
 0x140   : > { %s667_s13 = scalar_lea.sflag [#allocation3], %s666_s18 }
 0x141   : > { %p813_p8 = pnand %p819_p7, %p1043_p6 }
 0x143   : > { %930 = dma.done.wait (!%p813_p8), %s667_s13, 16  }
 0x144   : > { %932 = vsyncadd (!%p813_p8), %s667_s13, 4294967280  ;;  %s675_s12 = scalar_lea.sflag [#allocation5], %s666_s18 }
 0x145   : > { %934 = dma.done.wait (!%p813_p8), %s675_s12, 16  }
 0x146   : > { %936 = vsyncadd (!%p813_p8), %s675_s12, 4294967280  ;;  %p22_p5 = scmp.ge.s32.totalorder %s1026_s11, 4   ;;  %s1210_s27 = smov %s943_s28 }
 0x147   : > { %s1211_s28 = smov %s947_s29  ;;  %s1212_s29 = smov %s1037_s14 }
 0x148   : > { %s1213_s30 = smov %s1026_s11  ;;  %24 = sbr.rel (!%p22_p5) target bundleno = 5 (0x5), region = 108 }
 0x14f   :  { %679 = vsyncpa [#allocation3], 1 }
 0x150   :  { %681 = vsyncpa [#allocation3 + $0x1], 1 }
 0x151   :  { %682 = vsyncpa [#allocation5], 1 }
 0x152   :  { %684 = vsyncpa [#allocation5 + $0x1], 1 }

// kernel: discriminator_forward.7
= control target key start
LH: loop header
LB: loop body
LE: loop exit
PB: predicated region body
PF: predicated region fallthrough
CT: control target
= control target key end

     0   :  { %s886_s27 = smov 0   ;;  %s999_s0 = inlined_call_operand.vmem [shape: f32[2,9,128], index: 0, kind: input, shape index: {}]   ;;  %s1000_s1 = inlined_call_operand.vmem [shape: f32[1,128], index: 1, kind: input, shape index: {}]   ;;  %s1001_s2 = inlined_call_operand.vmem [shape: f32[1,128], index: 2, kind: input, shape index: {}]   ;;  %s1002_s3 = inlined_call_operand.vmem [shape: bf16[128,128], index: 3, kind: input, shape index: {}]   ;;  %s1003_s4 = inlined_call_operand.vmem [shape: bf16[128,128], index: 4, kind: input, shape index: {}]   ;;  %s1004_s5 = inlined_call_operand.vmem [shape: f32[1,128], index: 5, kind: input, shape index: {}]   ;;  %s1005_s6 = inlined_call_operand.vmem [shape: f32[2,8,128], index: 6, kind: output, shape index: {0}]   ;;  %s1006_s7 = inlined_call_operand.vmem [shape: f32[2,1,128], index: 7, kind: output, shape index: {1}]   ;;  %s1007_s8 = inlined_call_operand.vmem [shape: f32[2,1,128], index: 8, kind: output, shape index: {2}]  }
   0x1 LB: > { %s712_s28 = sadd.s32 4294967295, %s836_s27   ;;  %p716_p0 = scmp.ge.s32.totalorder %s836_s27, 1  ;;  %s836_s27 = sphi %s886_s27, %s19_s27  }
   0x2   : > { %p267_p1 = scmp.lt.s32.totalorder %s836_s27, 3 }
   0x4   : > { %p268_p2 = pnand %p716_p0, %p267_p1 }
   0x5   : > { %v814_v0 = vld [vmem:[%s1003_s4] sm:$0xff] (!%p268_p2)   ;;  %v838_v1 = vmov (!%p268_p2), 0.0   ;;  %v348_v3 = vlaneseq (!%p268_p2)  ;;  %v816_v4 = vld [vmem:[%s1003_s4 + $0x8] sm:$0xff] (!%p268_p2)   ;;  %vm839_vm0 = vmmov (!%p268_p2), 0   ;;  %p306_p3 = scmp.lt.s32.totalorder (!%p268_p2), %s712_s28, 1  ;;  %v818_v7 = vld [vmem:[%s1003_s4 + $0x10] sm:$0xff] (!%p268_p2)  }
   0x6   : > { %271 = sbr.rel (%p268_p2) target bundleno = 270 (0x10e), region = 44  ;;  %763 = vmatprep.subr.bf16.mxu0 (!%p268_p2), %v838_v1  ;;  %783 = vmatprep.subr.bf16.mxu1 (!%p268_p2), %v838_v1  ;;  %v815_v2 = vld [vmem:[%s1002_s3] sm:$0xff] (!%p268_p2)   ;;  %v817_v5 = vld [vmem:[%s1002_s3 + $0x8] sm:$0xff] (!%p268_p2)   ;;  %v819_v9 = vld [vmem:[%s1002_s3 + $0x10] sm:$0xff] (!%p268_p2)   ;;  %v840_v15 = vmov (!%p268_p2), 0  }
   0x7   : > { %764 = vmatpush3.bf16.msra.mxu0 (!%p268_p2), %v814_v0  ;;  %779 = vmatprep.mubr.msk.bf16.mxu0 (!%p268_p2), %vm839_vm0, %v838_v1  ;;  %v351_v6 = vshrl.u32 (!%p268_p2), %v348_v3, 7  ;;  %v349_v8 = vand.u32 (!%p268_p2), 127, %v348_v3  ;;  %v820_v11 = vld [vmem:[%s1003_s4 + $0x18] sm:$0xff] (!%p268_p2)   ;;  %v822_v18 = vld [vmem:[%s1003_s4 + $0x20] sm:$0xff] (!%p268_p2)   ;;  %v824_v27 = vld [vmem:[%s1003_s4 + $0x28] sm:$0xff] (!%p268_p2)  }
   0x8   : > { %784 = vmatpush3.bf16.msra.mxu1 (!%p268_p2), %v815_v2  ;;  %765 = vmatprep.subr.bf16.mxu0 (!%p268_p2), %v838_v1  ;;  %v821_v14 = vld [vmem:[%s1002_s3 + $0x18] sm:$0xff] (!%p268_p2)   ;;  %v823_v20 = vld [vmem:[%s1002_s3 + $0x20] sm:$0xff] (!%p268_p2)   ;;  %v825_v28 = vld [vmem:[%s1002_s3 + $0x28] sm:$0xff] (!%p268_p2)  }
   0x9   : > { %785 = vmatprep.subr.bf16.mxu1 (!%p268_p2), %v838_v1  ;;  %799 = vmatprep.mubr.msk.bf16.mxu1 (!%p268_p2), %vm839_vm0, %v838_v1  ;;  %v352_v10 = vadd.s32 (!%p268_p2), 8, %v351_v6  ;;  %v353_v12 = vmul.u32 (!%p268_p2), 2, %v351_v6  ;;  %vm355_vm1 = vcmp.ge.s32.totalorder (!%p268_p2), %v349_v8, 64  ;;  %v720_v23 = vld [vmem:[%s1000_s1] ss:$0 sm:$0xff] (!%p268_p2)  ;;  %v826_v34 = vld [vmem:[%s1003_s4 + $0x30] sm:$0xff] (!%p268_p2)  }
   0xa   : > { %v356_v16 = vsel (!%p268_p2), %vm355_vm1, 1, %v840_v15  ;;  %v721_v26 = vld [vmem:[%s1001_s2] ss:$0 sm:$0xff] (!%p268_p2)  ;;  %v827_v35 = vld [vmem:[%s1002_s3 + $0x30] sm:$0xff] (!%p268_p2)   ;;  %v828_v41 = vld [vmem:[%s1003_s4 + $0x38] sm:$0xff] (!%p268_p2)  }
   0xb   : > { %766 = vmatpush3.bf16.msra.mxu0 (!%p268_p2), %v816_v4  ;;  %v354_v13 = vmul.u32 (!%p268_p2), 2, %v352_v10  ;;  %v357_v17 = vadd.s32 (!%p268_p2), %v356_v16, %v353_v12  ;;  %v829_v42 = vld [vmem:[%s1002_s3 + $0x38] sm:$0xff] (!%p268_p2)   ;;  %v741_v50 = vld [vmem:[%s1004_s5] ss:$0 sm:$0xff] (!%p268_p2) }
   0xc   : > { %786 = vmatpush3.bf16.msra.mxu1 (!%p268_p2), %v817_v5  ;;  %767 = vmatprep.subr.bf16.mxu0 (!%p268_p2), %v838_v1 }
   0xd   : > { %s1011_s28 = smov (!%p306_p3, %s712_s28), 1  ;;  %787 = vmatprep.subr.bf16.mxu1 %v838_v1  ;;  %v358_v19 = vadd.s32 %v356_v16, %v354_v13  ;;  %vm359_vm2 = vcmp.ge.s32.totalorder %v357_v17, 1  ;;  %vm361_vm3 = vcmp.le.s32.totalorder %v357_v17, 16 }
   0xe   : > { %s744_s21 = sshll.u32 %s1011_s28, 4  ;;  %vm956_vm6 = vmand %vm359_vm2, %vm361_vm3  ;;  %s719_s29 = sshll.u32 %s1011_s28, 3 }
   0xf   : > { %768 = vmatpush3.bf16.msra.mxu0 %v818_v7  ;;  %s310_s26 = scalar_lea.vmem %s999_s0, %s744_s21  ;;  %vm360_vm4 = vcmp.ge.s32.totalorder %v358_v19, 1  ;;  %vm362_vm5 = vcmp.le.s32.totalorder %v358_v19, 16  ;;  %vm738_vm10 = vmpackc.low %vm956_vm6, %vm956_vm6  ;;  %s314_s12 = scalar_lea.vmem %s1005_s6, %s719_s29 }
  0x10   : > { %788 = vmatpush3.bf16.msra.mxu1 %v819_v9  ;;  %769 = vmatprep.subr.bf16.mxu0 %v838_v1  ;;  %v322_v21 = vld [vmem:[%s310_s26] sm:$0xff]  ;;  %v323_v22 = vld [vmem:[%s310_s26 + $0x8] sm:$0x1]  ;;  %vm364_vm9 = vmand %vm360_vm4, %vm362_vm5  ;;  %s317_s15 = scalar_lea.vmem %s1006_s7, %s1011_s28  ;;  %s320_s18 = scalar_lea.vmem %s1007_s8, %s1011_s28 }
  0x11   : > { %789 = vmatprep.subr.bf16.mxu1 %v838_v1  ;;  %v331_v24 = vmul.f32 %v720_v23, %v322_v21  ;;  %v332_v25 = vmul.f32 %v720_v23, %v323_v22 }
  0x13   : > { %770 = vmatpush3.bf16.msra.mxu0 %v820_v11  ;;  %v340_v29 = vadd.f32 %v721_v26, %v331_v24  ;;  %v341_v30 = vadd.f32 %v721_v26, %v332_v25 }
  0x14   : > { %790 = vmatpush3.bf16.msra.mxu1 %v821_v14  ;;  %771 = vmatprep.subr.bf16.mxu0 %v838_v1 }
  0x15   : > { %791 = vmatprep.subr.bf16.mxu1 %v838_v1  ;;  %vm342_vm7 = vcmp.ge.f32.partialorder %v340_v29, 0.0  ;;  %vm343_vm8 = vcmp.ge.f32.partialorder %v341_v30, 0.0  ;;  %v344_v32 = vmul.f32 0.2, %v340_v29  ;;  %v345_v33 = vmul.f32 0.2, %v341_v30 }
  0x17   : > { %772 = vmatpush3.bf16.msra.mxu0 %v822_v18  ;;  %v346_v36 = vsel %vm342_vm7, %v340_v29, %v344_v32  ;;  %v347_v37 = vsel %vm343_vm8, %v341_v30, %v345_v33 }
  0x18   : > { %792 = vmatpush3.bf16.msra.mxu1 %v823_v20  ;;  %773 = vmatprep.subr.bf16.mxu0 %v838_v1  ;;  %v365_v38 = vsel %vm956_vm6, %v346_v36, 0.0  ;;  %v366_v39 = vsel %vm364_vm9, %v347_v37, 0.0  ;;  %v739_v46 = vpack.c.bf16 %v346_v36, %v346_v36 }
  0x19   : > { %793 = vmatprep.subr.bf16.mxu1 %v838_v1  ;;  %v368_v40 = vpack.c.bf16 %v366_v39, %v365_v38 }
  0x1b   : > { %774 = vmatpush3.bf16.msra.mxu0 %v824_v27  ;;  %v402_v43 = vshrl.u32 %v368_v40, 16  ;;  %v404_v44 = vshll.u32 %v368_v40, 16 }
  0x1c   : > { %794 = vmatpush3.bf16.msra.mxu1 %v825_v28  ;;  %775 = vmatprep.subr.bf16.mxu0 %v838_v1 }
  0x1d   : > { %795 = vmatprep.subr.bf16.mxu1 %v838_v1  ;;  %v406_v45 = vrot.slane %v404_v44, 1 }
  0x1f   : > { %776 = vmatpush3.bf16.msra.mxu0 %v826_v34  ;;  %v407_v47 = vor.u32 %v406_v45, %v402_v43 }
  0x20   : > { %796 = vmatpush3.bf16.msra.mxu1 %v827_v35  ;;  %777 = vmatprep.subr.bf16.mxu0 %v838_v1 }
  0x21   : > { %797 = vmatprep.subr.bf16.mxu1 %v838_v1 }
  0x23   : > { %778 = vmatpush3.bf16.msra.mxu0 %v828_v41 }
  0x24   : > { %798 = vmatpush3.bf16.msra.mxu1 %v829_v42 }
  0x26   : > { %780 = vmatmul.mubr.bf16.vlgmr.msra.gmra.mrb[0].mxu0 %v407_v47 }
  0x27   : > { %800 = vmatmul.mubr.msk.bf16.vlgmr.msra.gmra.mrb[0].mxu1 %vm738_vm10, %v739_v46 }
  0xf9   : > { %v491_v48 = vpop.f32.mrb[0].mxu0 }
  0xfa   : > { %v579_v49 = vpop.f32.mrb[0].mxu1  ;;  %v781_v51 = vpop.f32.mrb[1].mxu0 }
  0xfb   : > { %v580_v52 = vadd.f32 %v579_v49, %v491_v48  ;;  %v801_v53 = vpop.f32.mrb[1].mxu1  ;;  %v494_v54 = vpop.f32.mrb[2].mxu0 }
  0xfc   : > { %v582_v55 = vpop.f32.mrb[2].mxu1  ;;  %v782_v56 = vpop.f32.mrb[3].mxu0 }
  0xfd   : > { %v592_v57 = vadd.f32 %v741_v50, %v580_v52  ;;  %v802_v58 = vpop.f32.mrb[3].mxu1 }
  0xff   : > { %593 = vst [vmem:[%s314_s12] sm:$0xff] %v592_v57  ;;  %v594_v59 = vrot.slane %v592_v57, 4  ;;  %v601_v60 = vmul.f32 %v592_v57, %v592_v57 }
 0x101   : > { %v595_v61 = vadd.f32 %v594_v59, %v592_v57  ;;  %v602_v62 = vrot.slane %v601_v60, 4 }
 0x103   : > { %v596_v63 = vrot.slane %v595_v61, 2  ;;  %v603_v0 = vadd.f32 %v602_v62, %v601_v60 }
 0x105   : > { %v597_v1 = vadd.f32 %v596_v63, %v595_v61  ;;  %v604_v2 = vrot.slane %v603_v0, 2 }
 0x107   : > { %v598_v3 = vrot.slane %v597_v1, 1  ;;  %v605_v4 = vadd.f32 %v604_v2, %v603_v0 }
 0x109   : > { %v599_v5 = vadd.f32 %v598_v3, %v597_v1  ;;  %v606_v6 = vrot.slane %v605_v4, 1 }
 0x10b   : > { %600 = vst [vmem:[%s317_s15] sm:$0x1] %v599_v5  ;;  %v607_v7 = vadd.f32 %v606_v6, %v605_v4 }
 0x10d   : > { %608 = vst [vmem:[%s320_s18] sm:$0x1] %v607_v7 }
 0x10e PF: > { %s19_s27 = sadd.s32 1, %s836_s27  }
 0x10f   : > { %p16_p4 = scmp.ge.s32.totalorder %s19_s27, 4  }
 0x111   :  { %18 = sbr.rel (!%p16_p4) target bundleno = 1 (0x1), region = 98 }

// kernel: discriminator_forward.8
= control target key start
LH: loop header
LB: loop body
LE: loop exit
PB: predicated region body
PF: predicated region fallthrough
CT: control target
= control target key end

     0   :  { %14 = vsyncpa [#allocation3], 0  ;;  %s1391_s27 = smov 0   ;;  %s1699_s0 = inlined_call_operand.vmem [shape: f32[2,5,256], index: 0, kind: input, shape index: {}]   ;;  %s1700_s1 = inlined_call_operand.vmem [shape: f32[1,256], index: 1, kind: input, shape index: {}]   ;;  %s1701_s2 = inlined_call_operand.vmem [shape: f32[1,256], index: 2, kind: input, shape index: {}]   ;;  %s1702_s3 = inlined_call_operand.vmem [shape: bf16[256,256], index: 3, kind: input, shape index: {}]   ;;  %s1703_s4 = inlined_call_operand.vmem [shape: bf16[256,256], index: 4, kind: input, shape index: {}]   ;;  %s1704_s5 = inlined_call_operand.hbm [shape: f32[1,256], index: 5, kind: input, shape index: {}]   ;;  %s1705_s6 = inlined_call_operand.vmem [shape: f32[2,4,256], index: 6, kind: output, shape index: {0}]   ;;  %s1706_s7 = inlined_call_operand.vmem [shape: f32[2,1,256], index: 7, kind: output, shape index: {1}]   ;;  %s1707_s8 = inlined_call_operand.vmem [shape: f32[2,1,256], index: 8, kind: output, shape index: {2}]  }
   0x1 LB: > { %s1397_s28 = sadd.s32 4294967295, %s1342_s27   ;;  %p1103_p0 = scmp.ge.s32.totalorder %s1342_s27, 1  ;;  %s1342_s27 = sphi %s1391_s27, %s20_s27  }
   0x2   : > { %p234_p1 = scmp.lt.s32.totalorder %s1342_s27, 3  ;;  %p1708_p3 = scmp.eq.s32.totalorder %s1397_s28, 0 }
   0x3   : > { %s1344_s30 = smov [#allocation2]   ;;  %s1304_s13 = scalar_lea.hbm %s1704_s5, 32 }
   0x4   : > { %p1401_p2 = pnand %p1103_p0, %p234_p1  ;;  %s259_s9 = sshll.u32 %s1344_s30, 4  ;;  %s260_s9 = int_to_ptr.vmem [resolvable:$true] %s259_s9 }
   0x5   : > { %p1305_p6 = scmp.ne.s32.totalorder %s1704_s5, %s1304_s13  ;;  %p1311_p10 = scmp.lt.u32.totalorder %s1304_s13, %s1704_s5 }
   0x6   : > { %s1710_s29 = scalar_select %p1401_p2, 1, 0 }
   0x7   : > { %p1192_p4 = pneg %p1401_p2 }
   0x9   : > { %p1410_p5 = pnand %p1708_p3, %p1192_p4 }
   0xb   : > { %p1306_p7 = pneg %p1410_p5 }
   0xd   : > { %p1307_p8 = pnand %p1306_p7, %p1305_p6 }
   0xf   : > { %p1308_p9 = pneg %p1307_p8 }
  0x11   : > { %p1313_p11 = pnand %p1311_p10, %p1308_p9 }
  0x13   : > { %1316 = shalt.err (!%p1313_p11)
}
  0x14   : > { %s1317_s18 = scalar_lea.vmem %s260_s9, 32  ;;  %p1325_p1 = scmp.lt.s32.totalorder %s260_s9, %s260_s9 }
  0x15   : > { %p1318_p12 = scmp.ne.s32.totalorder %s260_s9, %s1317_s18  ;;  %p1326_p4 = scmp.lt.s32.totalorder %s1317_s18, %s1317_s18 }
  0x17   : > { %p1320_p13 = pnand %p1318_p12, %p1306_p7  ;;  %p1327_p3 = por %p1326_p4, %p1325_p1 }
  0x19   : > { %p1321_p0 = pneg %p1320_p13 }
  0x1b   : > { %p1328_p2 = pnand %p1327_p3, %p1321_p0 }
  0x1d   : > { %1331 = shalt.err (!%p1328_p2)
}
  0x1e   : > { %1195 = dma.hbm_to_vmem [thread:$0]  (!%p1410_p5), %s1704_s5, 32, %s260_s9, [#allocation3]  }
  0x1f   : > { %p1712_p6 = scmp.ne.s32.totalorder %s1710_s29, 0 }
  0x20   : > { %p1713_p8 = scmp.eq.s32.totalorder (!%p1712_p6), %s1397_s28, 0 }
  0x21   : > { %280 = sbr.rel (%p1712_p6) target bundleno = 346 (0x15a), region = 44 }
  0x28   : > { %1337 = dma.done.wait (%p1713_p8), [#allocation3], 32   ;;  %p1714_p7 = pmov %p1713_p8 }
  0x29   : > { %v1208_v0 = vld [vmem:[%s1703_s4 + $0x4] ss:$8 sps:$4 sm:$0xff]   ;;  %v1212_v2 = vld [vmem:[%s1703_s4] ss:$8 sps:$4 sm:$0xff]   ;;  %v1214_v4 = vld [vmem:[%s1703_s4 + $0x14] ss:$8 sps:$4 sm:$0xff]   ;;  %v344_v36 = vlaneseq }
  0x2a   : > { %1339 = vsyncadd (%p1714_p7), [#allocation3], 4294967264  ;;  %v1210_v1 = vld [vmem:[%s1702_s3 + $0x4] ss:$8 sps:$4 sm:$0xff]   ;;  %638 = vmatprep.subr.bf16.mxu0 %v1208_v0  ;;  %v1213_v3 = vld [vmem:[%s1702_s3] ss:$8 sps:$4 sm:$0xff]  }
  0x2b   : > { %839 = vmatprep.subr.bf16.mxu1 %v1210_v1  ;;  %639 = vmatpush1.bf16.msra.mxu0 %v1212_v2  ;;  %v1216_v5 = vld [vmem:[%s1702_s3 + $0x14] ss:$8 sps:$4 sm:$0xff]   ;;  %v1218_v6 = vld [vmem:[%s1703_s4 + $0x10] ss:$8 sps:$4 sm:$0xff]   ;;  %v1220_v8 = vld [vmem:[%s1703_s4 + $0x24] ss:$8 sps:$4 sm:$0xff]  }
  0x2c   : > { %840 = vmatpush1.bf16.msra.mxu1 %v1213_v3  ;;  %640 = vmatprep.subr.bf16.mxu0 %v1214_v4  ;;  %v1219_v7 = vld [vmem:[%s1702_s3 + $0x10] ss:$8 sps:$4 sm:$0xff]   ;;  %v1222_v9 = vld [vmem:[%s1702_s3 + $0x24] ss:$8 sps:$4 sm:$0xff]   ;;  %v1224_v10 = vld [vmem:[%s1703_s4 + $0x20] ss:$8 sps:$4 sm:$0xff]  }
  0x2d   : > { %841 = vmatprep.subr.bf16.mxu1 %v1216_v5  ;;  %v1225_v11 = vld [vmem:[%s1702_s3 + $0x20] ss:$8 sps:$4 sm:$0xff]   ;;  %v1226_v12 = vld [vmem:[%s1703_s4 + $0x34] ss:$8 sps:$4 sm:$0xff]   ;;  %v1230_v14 = vld [vmem:[%s1703_s4 + $0x30] ss:$8 sps:$4 sm:$0xff]  }
  0x2e   : > { %v1228_v13 = vld [vmem:[%s1702_s3 + $0x34] ss:$8 sps:$4 sm:$0xff]   ;;  %v1231_v15 = vld [vmem:[%s1702_s3 + $0x30] ss:$8 sps:$4 sm:$0xff]   ;;  %v1232_v16 = vld [vmem:[%s1703_s4 + $0x44] ss:$8 sps:$4 sm:$0xff]  }
  0x2f   : > { %641 = vmatpush1.bf16.msra.mxu0 %v1218_v6  ;;  %v1234_v17 = vld [vmem:[%s1702_s3 + $0x44] ss:$8 sps:$4 sm:$0xff]   ;;  %v1236_v18 = vld [vmem:[%s1703_s4 + $0x40] ss:$8 sps:$4 sm:$0xff]   ;;  %v1238_v20 = vld [vmem:[%s1703_s4 + $0x54] ss:$8 sps:$4 sm:$0xff]  }
  0x30   : > { %842 = vmatpush1.bf16.msra.mxu1 %v1219_v7  ;;  %642 = vmatprep.subr.bf16.mxu0 %v1220_v8  ;;  %v1237_v19 = vld [vmem:[%s1702_s3 + $0x40] ss:$8 sps:$4 sm:$0xff]   ;;  %v1240_v21 = vld [vmem:[%s1702_s3 + $0x54] ss:$8 sps:$4 sm:$0xff]   ;;  %v1242_v22 = vld [vmem:[%s1703_s4 + $0x50] ss:$8 sps:$4 sm:$0xff]  }
  0x31   : > { %843 = vmatprep.subr.bf16.mxu1 %v1222_v9  ;;  %v1243_v23 = vld [vmem:[%s1702_s3 + $0x50] ss:$8 sps:$4 sm:$0xff]   ;;  %v1244_v24 = vld [vmem:[%s1703_s4 + $0x64] ss:$8 sps:$4 sm:$0xff]   ;;  %v1248_v26 = vld [vmem:[%s1703_s4 + $0x60] ss:$8 sps:$4 sm:$0xff]  }
  0x32   : > { %v1246_v25 = vld [vmem:[%s1702_s3 + $0x64] ss:$8 sps:$4 sm:$0xff]   ;;  %v1249_v27 = vld [vmem:[%s1702_s3 + $0x60] ss:$8 sps:$4 sm:$0xff]   ;;  %v1250_v28 = vld [vmem:[%s1703_s4 + $0x74] ss:$8 sps:$4 sm:$0xff]  }
  0x33   : > { %643 = vmatpush1.bf16.msra.mxu0 %v1224_v10  ;;  %v1252_v29 = vld [vmem:[%s1702_s3 + $0x74] ss:$8 sps:$4 sm:$0xff]   ;;  %v1254_v30 = vld [vmem:[%s1703_s4 + $0x70] ss:$8 sps:$4 sm:$0xff]   ;;  %v1256_v32 = vld [vmem:[%s1703_s4 + $0x84] ss:$8 sps:$4 sm:$0xff]  }
  0x34   : > { %844 = vmatpush1.bf16.msra.mxu1 %v1225_v11  ;;  %644 = vmatprep.subr.bf16.mxu0 %v1226_v12  ;;  %v1255_v31 = vld [vmem:[%s1702_s3 + $0x70] ss:$8 sps:$4 sm:$0xff]   ;;  %p322_p2 = scmp.lt.s32.totalorder %s1397_s28, 1  ;;  %v1258_v33 = vld [vmem:[%s1702_s3 + $0x84] ss:$8 sps:$4 sm:$0xff]   ;;  %v1558_v40 = vshrl.u32 %v344_v36, 7 }
  0x35   : > { %845 = vmatprep.subr.bf16.mxu1 %v1228_v13  ;;  %v1260_v34 = vld [vmem:[%s1703_s4 + $0x80] ss:$8 sps:$4 sm:$0xff]   ;;  %v1262_v37 = vld [vmem:[%s1703_s4 + $0x94] ss:$8 sps:$4 sm:$0xff]   ;;  %v1266_v39 = vld [vmem:[%s1703_s4 + $0x90] ss:$8 sps:$4 sm:$0xff]  }
  0x36   : > { %v1261_v35 = vld [vmem:[%s1702_s3 + $0x80] ss:$8 sps:$4 sm:$0xff]   ;;  %s1720_s28 = smov (!%p322_p2, %s1397_s28), 1  ;;  %v1264_v38 = vld [vmem:[%s1702_s3 + $0x94] ss:$8 sps:$4 sm:$0xff]   ;;  %v381_v44 = vmul.u32 2, %v1558_v40 }
  0x37   : > { %645 = vmatpush1.bf16.msra.mxu0 %v1230_v14  ;;  %v1267_v41 = vld [vmem:[%s1702_s3 + $0x90] ss:$8 sps:$4 sm:$0xff]   ;;  %v1268_v42 = vld [vmem:[%s1703_s4 + $0xa4] ss:$8 sps:$4 sm:$0xff]   ;;  %s1186_s23 = sshll.u32 %s1720_s28, 4  ;;  %v1584_v48 = vsub.s32 0, %v1558_v40 }
  0x38   : > { %846 = vmatpush1.bf16.msra.mxu1 %v1231_v15  ;;  %646 = vmatprep.subr.bf16.mxu0 %v1232_v16  ;;  %v1270_v43 = vld [vmem:[%s1702_s3 + $0xa4] ss:$8 sps:$4 sm:$0xff]   ;;  %v1272_v45 = vld [vmem:[%s1703_s4 + $0xa0] ss:$8 sps:$4 sm:$0xff]   ;;  %s326_s12 = scalar_lea.vmem %s1699_s0, %s1186_s23  ;;  %v1274_v47 = vld [vmem:[%s1703_s4 + $0xb4] ss:$8 sps:$4 sm:$0xff]  }
  0x39   : > { %847 = vmatprep.subr.bf16.mxu1 %v1234_v17  ;;  %v1273_v46 = vld [vmem:[%s1702_s3 + $0xa0] ss:$8 sps:$4 sm:$0xff]   ;;  %v1587_v49 = vsub.s32 1, %v1558_v40  ;;  %v1276_v50 = vld [vmem:[%s1702_s3 + $0xb4] ss:$8 sps:$4 sm:$0xff]   ;;  %v387_v52 = vadd.s32 1, %v381_v44 }
  0x3a   : > { %v340_v51 = vld [vmem:[%s326_s12] sm:$0x1f]  ;;  %v341_v53 = vld [vmem:[%s326_s12 + $0x8] sm:$0x1f]  ;;  %v1278_v56 = vld [vmem:[%s1703_s4 + $0xb0] ss:$8 sps:$4 sm:$0xff]  }
  0x3b   : > { %647 = vmatpush1.bf16.msra.mxu0 %v1236_v18  ;;  %v342_v54 = vld [vmem:[%s1700_s1] sm:$0x3]  ;;  %v1279_v57 = vld [vmem:[%s1702_s3 + $0xb0] ss:$8 sps:$4 sm:$0xff]   ;;  %v1280_v61 = vld [vmem:[%s1703_s4 + $0xc4] ss:$8 sps:$4 sm:$0xff]  }
  0x3c   : > { %848 = vmatpush1.bf16.msra.mxu1 %v1237_v19  ;;  %648 = vmatprep.subr.bf16.mxu0 %v1238_v20  ;;  %v356_v55 = vld [vmem:[%s1701_s2] sm:$0x3]  ;;  %v347_v58 = vrot.slane %v342_v54, %v1584_v48  ;;  %v351_v59 = vrot.slane %v342_v54, %v1587_v49  ;;  %v1282_v62 = vld [vmem:[%s1702_s3 + $0xc4] ss:$8 sps:$4 sm:$0xff]   ;;  %vm389_vm0 = vcmp.ge.s32.totalorder %v387_v52, 1  ;;  %vm391_vm1 = vcmp.le.s32.totalorder %v387_v52, 8 }
  0x3d   : > { %849 = vmatprep.subr.bf16.mxu1 %v1240_v21  ;;  %v361_v60 = vrot.slane %v356_v55, %v1584_v48  ;;  %v365_v63 = vrot.slane %v356_v55, %v1587_v49  ;;  %vm388_vm2 = vcmp.ge.s32.totalorder %v381_v44, 1  ;;  %vm390_vm3 = vcmp.le.s32.totalorder %v381_v44, 8  ;;  %v1284_v2 = vld [vmem:[%s1703_s4 + $0xc0] ss:$8 sps:$4 sm:$0xff]   ;;  %v1286_v6 = vld [vmem:[%s1703_s4 + $0xd4] ss:$8 sps:$4 sm:$0xff]   ;;  %vm1627_vm4 = vmand %vm389_vm0, %vm391_vm1 }
  0x3e   : > { %v355_v0 = vmul.f32 %v351_v59, %v341_v53  ;;  %v354_v1 = vmul.f32 %v347_v58, %v340_v51  ;;  %v1285_v3 = vld [vmem:[%s1702_s3 + $0xc0] ss:$8 sps:$4 sm:$0xff]   ;;  %v1288_v7 = vld [vmem:[%s1702_s3 + $0xd4] ss:$8 sps:$4 sm:$0xff]   ;;  %vm1633_vm7 = vmand %vm388_vm2, %vm390_vm3  ;;  %vm899_vm10 = vcmask 1043456   ;;  %s1187_s17 = sshll.u32 %s1720_s28, 3 }
  0x3f   : > { %649 = vmatpush1.bf16.msra.mxu0 %v1242_v22  ;;  %v1290_v12 = vld [vmem:[%s1703_s4 + $0xd0] ss:$8 sps:$4 sm:$0xff]   ;;  %vm1178_vm8 = vmpackc.low %vm1627_vm4, %vm1627_vm4  ;;  %v1292_v16 = vld [vmem:[%s1703_s4 + $0xe4] ss:$8 sps:$4 sm:$0xff]   ;;  %s331_s20 = scalar_lea.vmem %s1705_s6, %s1187_s17  ;;  %s1112_s21 = sshll.u32 %s1720_s28, 1  ;;  %vm934_vm11 = vcmp.lt.s32.totalorder %v344_v36, 256 }
  0x40   : > { %850 = vmatpush1.bf16.msra.mxu1 %v1243_v23  ;;  %650 = vmatprep.subr.bf16.mxu0 %v1244_v24  ;;  %v369_v4 = vadd.f32 %v365_v63, %v355_v0  ;;  %v368_v5 = vadd.f32 %v361_v60, %v354_v1  ;;  %v1291_v13 = vld [vmem:[%s1702_s3 + $0xd0] ss:$8 sps:$4 sm:$0xff]   ;;  %v1294_v17 = vld [vmem:[%s1702_s3 + $0xe4] ss:$8 sps:$4 sm:$0xff]   ;;  %v1296_v23 = vld [vmem:[%s1703_s4 + $0xe0] ss:$8 sps:$4 sm:$0xff]   ;;  %s335_s24 = scalar_lea.vmem %s1706_s7, %s1112_s21  ;;  %s339_s29 = scalar_lea.vmem %s1707_s8, %s1112_s21 }
  0x41   : > { %851 = vmatprep.subr.bf16.mxu1 %v1246_v25  ;;  %v1297_v24 = vld [vmem:[%s1702_s3 + $0xe0] ss:$8 sps:$4 sm:$0xff]   ;;  %vm1181_vm9 = vmpackc.low %vm1633_vm7, %vm1633_vm7 }
  0x42   : > { %vm371_vm5 = vcmp.ge.f32.partialorder %v369_v4, 0.0  ;;  %v373_v9 = vmul.f32 0.2, %v369_v4  ;;  %vm370_vm6 = vcmp.ge.f32.partialorder %v368_v5, 0.0  ;;  %v372_v10 = vmul.f32 0.2, %v368_v5 }
  0x43   : > { %651 = vmatpush1.bf16.msra.mxu0 %v1248_v26 }
  0x44   : > { %852 = vmatpush1.bf16.msra.mxu1 %v1249_v27  ;;  %652 = vmatprep.subr.bf16.mxu0 %v1250_v28  ;;  %v375_v14 = vsel %vm371_vm5, %v369_v4, %v373_v9  ;;  %v374_v15 = vsel %vm370_vm6, %v368_v5, %v372_v10  ;;  %v1298_v28 = vld [vmem:[%s1703_s4 + $0xf4] ss:$8 sps:$4 sm:$0xff]  }
  0x45   : > { %853 = vmatprep.subr.bf16.mxu1 %v1252_v29  ;;  %v395_v18 = vsel %vm1627_vm4, %v375_v14, 0.0  ;;  %v1179_v19 = vpack.c.bf16 %v375_v14, %v375_v14  ;;  %v394_v20 = vsel %vm1633_vm7, %v374_v15, 0.0  ;;  %v1300_v29 = vld [vmem:[%s1702_s3 + $0xf4] ss:$8 sps:$4 sm:$0xff]  }
  0x46   : > { %v397_v21 = vpack.c.bf16 %v395_v18, %v395_v18  ;;  %v396_v22 = vpack.c.bf16 %v394_v20, %v394_v20 }
  0x47   : > { %653 = vmatpush1.bf16.msra.mxu0 %v1254_v30  ;;  %1180 = vmatprep.mubr.msk.bf16.mxu1 %vm1178_vm8, %v1179_v19 }
  0x48   : > { %854 = vmatpush1.bf16.msra.mxu1 %v1255_v31  ;;  %654 = vmatprep.subr.bf16.mxu0 %v1256_v32  ;;  %v470_v25 = vshrl.u32 %v397_v21, 16  ;;  %v472_v26 = vshll.u32 %v397_v21, 16  ;;  %v465_v27 = vshll.u32 %v396_v22, 16  ;;  %v463_v31 = vshrl.u32 %v396_v22, 16 }
  0x49   : > { %855 = vmatprep.subr.bf16.mxu1 %v1258_v33  ;;  %v1302_v33 = vld [vmem:[%s1703_s4 + $0xf0] ss:$8 sps:$4 sm:$0xff]  }
  0x4a   : > { %v474_v30 = vrot.slane %v472_v26, 1  ;;  %v467_v32 = vrot.slane %v465_v27, 1 }
  0x4b   : > { %655 = vmatpush1.bf16.msra.mxu0 %v1260_v34  ;;  %v1303_v34 = vld [vmem:[%s1702_s3 + $0xf0] ss:$8 sps:$4 sm:$0xff]  }
  0x4c   : > { %856 = vmatpush1.bf16.msra.mxu1 %v1261_v35  ;;  %656 = vmatprep.subr.bf16.mxu0 %v1262_v37  ;;  %v475_v35 = vor.u32 %v474_v30, %v470_v25  ;;  %v468_v37 = vor.u32 %v467_v32, %v463_v31 }
  0x4d   : > { %857 = vmatprep.subr.bf16.mxu1 %v1264_v38  ;;  %v1182_v38 = vpack.c.bf16 %v374_v15, %v374_v15 }
  0x4e   : > { %670 = vmatprep.mubr.bf16.mxu0 %v475_v35 }
  0x4f   : > { %657 = vmatpush1.bf16.msra.mxu0 %v1266_v39  ;;  %v880_v39 = vld [vmem:[#allocation2] sm:$0x3] }
  0x50   : > { %858 = vmatpush1.bf16.msra.mxu1 %v1267_v41  ;;  %658 = vmatprep.subr.bf16.mxu0 %v1268_v42  ;;  %v885_v41 = vrot.slane %v880_v39, %v1584_v48  ;;  %v889_v44 = vrot.slane %v880_v39, %v1587_v49 }
  0x51   : > { %859 = vmatprep.subr.bf16.mxu1 %v1270_v43 }
  0x53   : > { %659 = vmatpush1.bf16.msra.mxu0 %v1272_v45 }
  0x54   : > { %860 = vmatpush1.bf16.msra.mxu1 %v1273_v46  ;;  %660 = vmatprep.subr.bf16.mxu0 %v1274_v47 }
  0x55   : > { %861 = vmatprep.subr.bf16.mxu1 %v1276_v50 }
  0x57   : > { %661 = vmatpush1.bf16.msra.mxu0 %v1278_v56 }
  0x58   : > { %862 = vmatpush1.bf16.msra.mxu1 %v1279_v57  ;;  %662 = vmatprep.subr.bf16.mxu0 %v1280_v61 }
  0x59   : > { %863 = vmatprep.subr.bf16.mxu1 %v1282_v62 }
  0x5b   : > { %663 = vmatpush1.bf16.msra.mxu0 %v1284_v2 }
  0x5c   : > { %864 = vmatpush1.bf16.msra.mxu1 %v1285_v3  ;;  %664 = vmatprep.subr.bf16.mxu0 %v1286_v6  ;;  %v1345_v3 = vmov 1966171168  }
  0x5d   : > { %865 = vmatprep.subr.bf16.mxu1 %v1288_v7  ;;  %v918_v4 = vunpack.c.l.s4 %v1345_v3 }
  0x5f   : > { %665 = vmatpush1.bf16.msra.mxu0 %v1290_v12 }
  0x60   : > { %866 = vmatpush1.bf16.msra.mxu1 %v1291_v13  ;;  %666 = vmatprep.subr.bf16.mxu0 %v1292_v16  ;;  %v919_v13 = vunpack.c.0.s8 %v918_v4 }
  0x61   : > { %867 = vmatprep.subr.bf16.mxu1 %v1294_v17 }
  0x62   : > { %v922_v22 = vsub.s32 %v919_v13, %v1558_v40 }
  0x63   : > { %667 = vmatpush1.bf16.msra.mxu0 %v1296_v23 }
  0x64   : > { %868 = vmatpush1.bf16.msra.mxu1 %v1297_v24  ;;  %668 = vmatprep.subr.bf16.mxu0 %v1298_v28 }
  0x65   : > { %869 = vmatprep.subr.bf16.mxu1 %v1300_v29 }
  0x67   : > { %669 = vmatpush1.bf16.msra.mxu0 %v1302_v33 }
  0x68   : > { %870 = vmatpush1.bf16.msra.mxu1 %v1303_v34 }
  0x6a   : > { %671 = vmatmul.mubr.bf16.vlgmr.msra.gmra.mrb[0].mxu0 %v468_v37 }
  0x6b   : > { %1183 = vmatmul.mubr.msk.bf16.vlgmr.msra.gmra.mrb[0].mxu1 %vm1181_vm9, %v1182_v38 }
 0x13d   : > { %v672_v42 = vpop.f32.mrb[0].mxu0 }
 0x13e   : > { %v873_v43 = vpop.f32.mrb[0].mxu1  ;;  %v674_v46 = vpop.f32.mrb[1].mxu0 }
 0x13f   : > { %v874_v45 = vadd.f32 %v873_v43, %v672_v42  ;;  %v875_v47 = vpop.f32.mrb[1].mxu1  ;;  %v676_v51 = vpop.f32.mrb[2].mxu0 }
 0x140   : > { %v876_v50 = vadd.f32 %v875_v47, %v674_v46  ;;  %v877_v52 = vpop.f32.mrb[2].mxu1  ;;  %v677_v54 = vpop.f32.mrb[3].mxu0 }
 0x141   : > { %v892_v53 = vadd.f32 %v885_v41, %v874_v45  ;;  %v878_v55 = vpop.f32.mrb[3].mxu1 }
 0x142   : > { %v893_v56 = vadd.f32 %v889_v44, %v876_v50 }
 0x143   : > { %v900_v57 = vsel %vm899_vm10, %v892_v53, 0.0  ;;  %v937_v58 = vmul.f32 %v892_v53, %v892_v53 }
 0x144   : > { %v901_v48 = vrot.slane %v900_v57, 4  ;;  %v896_v49 = vcombine.low %v892_v53, %v893_v56  ;;  %v907_v59 = vsel %vm899_vm10, %v893_v56, 0.0  ;;  %v938_v60 = vmul.f32 %v893_v56, %v893_v56 }
 0x145   : > { %v939_v61 = vsel %vm899_vm10, %v937_v58, 0.0  ;;  %v908_v62 = vrot.slane %v907_v59, 4 }
 0x146   : > { %v902_v63 = vadd.f32 %v901_v48, %v900_v57  ;;  %v940_v0 = vrot.slane %v939_v61, 4  ;;  %898 = vst [vmem:[%s331_s20] sm:$0xff] %v896_v49  ;;  %v946_v1 = vsel %vm899_vm10, %v938_v60, 0.0 }
 0x147   : > { %v909_v2 = vadd.f32 %v908_v62, %v907_v59  ;;  %v947_v5 = vrot.slane %v946_v1, 4 }
 0x148   : > { %v903_v6 = vrot.slane %v902_v63, 2  ;;  %v941_v7 = vadd.f32 %v940_v0, %v939_v61 }
 0x149   : > { %v910_v8 = vrot.slane %v909_v2, 2  ;;  %v948_v9 = vadd.f32 %v947_v5, %v946_v1 }
 0x14a   : > { %v904_v10 = vadd.f32 %v903_v6, %v902_v63  ;;  %v942_v11 = vrot.slane %v941_v7, 2 }
 0x14b   : > { %v911_v12 = vadd.f32 %v910_v8, %v909_v2  ;;  %v949_v14 = vrot.slane %v948_v9, 2 }
 0x14c   : > { %v905_v15 = vrot.slane %v904_v10, 1  ;;  %v943_v16 = vadd.f32 %v942_v11, %v941_v7 }
 0x14d   : > { %v912_v17 = vrot.slane %v911_v12, 1  ;;  %v950_v18 = vadd.f32 %v949_v14, %v948_v9 }
 0x14e   : > { %v906_v19 = vadd.f32 %v905_v15, %v904_v10  ;;  %v944_v20 = vrot.slane %v943_v16, 1 }
 0x14f   : > { %v913_v21 = vadd.f32 %v912_v17, %v911_v12  ;;  %v951_v23 = vrot.slane %v950_v18, 1 }
 0x150   : > { %v945_v24 = vadd.f32 %v944_v20, %v943_v16 }
 0x151   : > { %v916_v25 = vcombine.low %v906_v19, %v913_v21  ;;  %v952_v26 = vadd.f32 %v951_v23, %v950_v18 }
 0x153   : > { %v923_v27 = vrot.slane %v916_v25, %v922_v22  ;;  %v955_v28 = vcombine.low %v945_v24, %v952_v26 }
 0x155   : > { %v930_v29 = vrot.slane %v923_v27, %v922_v22  ;;  %v962_v30 = vrot.slane %v955_v28, %v922_v22 }
 0x157   : > { %936 = vst.msk [vmem:[%s335_s24] sm:$0x3] %vm934_vm11, %v930_v29  ;;  %v969_v40 = vrot.slane %v962_v30, %v922_v22 }
 0x159   : > { %971 = vst.msk [vmem:[%s339_s29] sm:$0x3] %vm934_vm11, %v969_v40 }
 0x15a PF: > { %s20_s27 = sadd.s32 1, %s1342_s27  }
 0x15b   : > { %p17_p3 = scmp.ge.s32.totalorder %s20_s27, 4  }
 0x15d   :  { %19 = sbr.rel (!%p17_p3) target bundleno = 1 (0x1), region = 103 }
 0x164   :  { %1021 = vsyncpa [#allocation3], 1 }
 0x165   :  { %1023 = vsyncpa [#allocation3 + $0x1], 1 }

// kernel: discriminator_forward.9
= control target key start
LH: loop header
LB: loop body
LE: loop exit
PB: predicated region body
PF: predicated region fallthrough
CT: control target
= control target key end

     0   :  { %s2969_s27 = smov 0   ;;  %s2971_s28 = smov 0   ;;  %s3555_s0 = inlined_call_operand.vmem [shape: f32[2,1024], index: 0, kind: input, shape index: {}]   ;;  %s3556_s1 = inlined_call_operand.vmem [shape: f32[1,1024], index: 1, kind: input, shape index: {}]   ;;  %s3557_s2 = inlined_call_operand.vmem [shape: f32[1,1024], index: 2, kind: input, shape index: {}]   ;;  %s3558_s3 = inlined_call_operand.vmem [shape: bf16[1024,512], index: 3, kind: input, shape index: {}]   ;;  %s3559_s4 = inlined_call_operand.vmem [shape: f32[2,10], index: 4, kind: input, shape index: {}]   ;;  %s3560_s5 = inlined_call_operand.vmem [shape: f32[10,512], index: 5, kind: input, shape index: {}]   ;;  %s3561_s6 = inlined_call_operand.vmem [shape: f32[1,512], index: 6, kind: input, shape index: {}]   ;;  %s3562_s7 = inlined_call_operand.vmem [shape: f32[1,512], index: 7, kind: input, shape index: {}]   ;;  %s3563_s8 = inlined_call_operand.vmem [shape: f32[2,2,1], index: 8, kind: output, shape index: {}]  }
   0x1   :  { %s2973_s29 = smov 0   ;;  %s2975_s30 = smov 0  }
   0x2   :  { %s2977_s9 = smov 0  }
   0x3 LB: > { %s30_s10 = sadd.s32 1, %s2915_s30  ;;  %p124_p1 = scmp.ne.s32.totalorder %s2907_s28, %s2903_s27  ;;  %s2919_s9 = sphi %s2977_s9, %s18_s9   ;;  %s2915_s30 = sphi %s2975_s30, %s3568_s30   ;;  %s2911_s29 = sphi %s2973_s29, %s3567_s29   ;;  %s2907_s28 = sphi %s2971_s28, %s3566_s28   ;;  %s2903_s27 = sphi %s2969_s27, %s3565_s27  }
   0x4   : > { %p32_p0 = scmp.ge.s32.totalorder %s30_s10, 2  ;;  %p125_p2 = scmp.eq.s32.totalorder %s2919_s9, 0 }
   0x5   : > { %s117_s13 = sadd.s32 1, %s2907_s28  ;;  %p2482_p5 = scmp.ge.s32.totalorder %s2919_s9, 2 }
   0x6   : > { %s3570_s10 = smov (%p32_p0, %s30_s10), 0  ;;  %p3000_p3 = por %p125_p2, %p124_p1 }
   0x7   : > { %s113_s12 = ssub.s32 %s2915_s30, %s3570_s10  ;;  %303 = sbr.rel (%p2482_p5) target bundleno = 89 (0x59), region = 32 }
   0x8   : > { %p115_p4 = scmp.eq.s32.totalorder %s113_s12, 0 }
   0xa   : > { %s3008_s14 = scalar_select %p115_p4, %s2907_s28, %s117_s13  }
   0xe   : > { %306 = sbr.rel (!%p3000_p3) target bundleno = 82 (0x52), region = 36  ;;  %s308_s15 = sand.u32 (%p3000_p3), 1, %s2907_s28  }
   0xf   : > { %s2628_s16 = sshll.u32 (%p3000_p3), %s2915_s30, 3  ;;  %s2483_s17 = sshll.u32 (%p3000_p3), %s308_s15, 10 }
  0x10   : > { %s3018_s20 = scalar_lea.vmem (%p3000_p3), %s3558_s3, %s2628_s16  ;;  %s3023_s21 = scalar_lea.vmem (%p3000_p3), [#allocation3], %s2483_s17 }
  0x11   : > { %v598_v0 = vld [vmem:[%s3018_s20] sm:$0xff] (%p3000_p3)  ;;  %v600_v1 = vld [vmem:[%s3018_s20 + $0x10] sm:$0xff] (%p3000_p3) }
  0x12   : > { %v602_v2 = vld [vmem:[%s3018_s20 + $0x20] sm:$0xff] (%p3000_p3)  ;;  %599 = vst [vmem:[%s3023_s21] sm:$0xff] (%p3000_p3), %v598_v0  ;;  %601 = vst [vmem:[%s3023_s21 + $0x8] sm:$0xff] (%p3000_p3), %v600_v1  ;;  %v604_v3 = vld [vmem:[%s3018_s20 + $0x30] sm:$0xff] (%p3000_p3) }
  0x13   : > { %603 = vst [vmem:[%s3023_s21 + $0x10] sm:$0xff] (%p3000_p3), %v602_v2  ;;  %v606_v4 = vld [vmem:[%s3018_s20 + $0x40] sm:$0xff] (%p3000_p3)  ;;  %v608_v5 = vld [vmem:[%s3018_s20 + $0x50] sm:$0xff] (%p3000_p3)  ;;  %605 = vst [vmem:[%s3023_s21 + $0x18] sm:$0xff] (%p3000_p3), %v604_v3 }
  0x14   : > { %607 = vst [vmem:[%s3023_s21 + $0x20] sm:$0xff] (%p3000_p3), %v606_v4  ;;  %609 = vst [vmem:[%s3023_s21 + $0x28] sm:$0xff] (%p3000_p3), %v608_v5  ;;  %v610_v6 = vld [vmem:[%s3018_s20 + $0x60] sm:$0xff] (%p3000_p3)  ;;  %v612_v7 = vld [vmem:[%s3018_s20 + $0x70] sm:$0xff] (%p3000_p3) }
  0x15   : > { %v614_v8 = vld [vmem:[%s3018_s20 + $0x80] sm:$0xff]  ;;  %611 = vst [vmem:[%s3023_s21 + $0x30] sm:$0xff] %v610_v6  ;;  %613 = vst [vmem:[%s3023_s21 + $0x38] sm:$0xff] %v612_v7  ;;  %v616_v9 = vld [vmem:[%s3018_s20 + $0x90] sm:$0xff] }
  0x16   : > { %615 = vst [vmem:[%s3023_s21 + $0x40] sm:$0xff] %v614_v8  ;;  %v618_v10 = vld [vmem:[%s3018_s20 + $0xa0] sm:$0xff]  ;;  %v620_v11 = vld [vmem:[%s3018_s20 + $0xb0] sm:$0xff]  ;;  %617 = vst [vmem:[%s3023_s21 + $0x48] sm:$0xff] %v616_v9 }
  0x17   : > { %619 = vst [vmem:[%s3023_s21 + $0x50] sm:$0xff] %v618_v10  ;;  %621 = vst [vmem:[%s3023_s21 + $0x58] sm:$0xff] %v620_v11  ;;  %v622_v12 = vld [vmem:[%s3018_s20 + $0xc0] sm:$0xff]  ;;  %v624_v13 = vld [vmem:[%s3018_s20 + $0xd0] sm:$0xff] }
  0x18   : > { %v626_v14 = vld [vmem:[%s3018_s20 + $0xe0] sm:$0xff]  ;;  %623 = vst [vmem:[%s3023_s21 + $0x60] sm:$0xff] %v622_v12  ;;  %625 = vst [vmem:[%s3023_s21 + $0x68] sm:$0xff] %v624_v13  ;;  %v628_v15 = vld [vmem:[%s3018_s20 + $0xf0] sm:$0xff] }
  0x19   : > { %627 = vst [vmem:[%s3023_s21 + $0x70] sm:$0xff] %v626_v14  ;;  %v630_v16 = vld [vmem:[%s3018_s20 + $0x100] sm:$0xff]  ;;  %v632_v17 = vld [vmem:[%s3018_s20 + $0x110] sm:$0xff]  ;;  %629 = vst [vmem:[%s3023_s21 + $0x78] sm:$0xff] %v628_v15 }
  0x1a   : > { %631 = vst [vmem:[%s3023_s21 + $0x80] sm:$0xff] %v630_v16  ;;  %633 = vst [vmem:[%s3023_s21 + $0x88] sm:$0xff] %v632_v17  ;;  %v634_v18 = vld [vmem:[%s3018_s20 + $0x120] sm:$0xff]  ;;  %v636_v19 = vld [vmem:[%s3018_s20 + $0x130] sm:$0xff] }
  0x1b   : > { %v638_v20 = vld [vmem:[%s3018_s20 + $0x140] sm:$0xff]  ;;  %635 = vst [vmem:[%s3023_s21 + $0x90] sm:$0xff] %v634_v18  ;;  %637 = vst [vmem:[%s3023_s21 + $0x98] sm:$0xff] %v636_v19  ;;  %v640_v21 = vld [vmem:[%s3018_s20 + $0x150] sm:$0xff] }
  0x1c   : > { %639 = vst [vmem:[%s3023_s21 + $0xa0] sm:$0xff] %v638_v20  ;;  %v642_v22 = vld [vmem:[%s3018_s20 + $0x160] sm:$0xff]  ;;  %v644_v23 = vld [vmem:[%s3018_s20 + $0x170] sm:$0xff]  ;;  %641 = vst [vmem:[%s3023_s21 + $0xa8] sm:$0xff] %v640_v21 }
  0x1d   : > { %643 = vst [vmem:[%s3023_s21 + $0xb0] sm:$0xff] %v642_v22  ;;  %645 = vst [vmem:[%s3023_s21 + $0xb8] sm:$0xff] %v644_v23  ;;  %v646_v24 = vld [vmem:[%s3018_s20 + $0x180] sm:$0xff]  ;;  %v648_v25 = vld [vmem:[%s3018_s20 + $0x190] sm:$0xff] }
  0x1e   : > { %v650_v26 = vld [vmem:[%s3018_s20 + $0x1a0] sm:$0xff]  ;;  %647 = vst [vmem:[%s3023_s21 + $0xc0] sm:$0xff] %v646_v24  ;;  %649 = vst [vmem:[%s3023_s21 + $0xc8] sm:$0xff] %v648_v25  ;;  %v652_v27 = vld [vmem:[%s3018_s20 + $0x1b0] sm:$0xff] }
  0x1f   : > { %651 = vst [vmem:[%s3023_s21 + $0xd0] sm:$0xff] %v650_v26  ;;  %v654_v28 = vld [vmem:[%s3018_s20 + $0x1c0] sm:$0xff]  ;;  %v656_v29 = vld [vmem:[%s3018_s20 + $0x1d0] sm:$0xff]  ;;  %653 = vst [vmem:[%s3023_s21 + $0xd8] sm:$0xff] %v652_v27 }
  0x20   : > { %655 = vst [vmem:[%s3023_s21 + $0xe0] sm:$0xff] %v654_v28  ;;  %657 = vst [vmem:[%s3023_s21 + $0xe8] sm:$0xff] %v656_v29  ;;  %v658_v30 = vld [vmem:[%s3018_s20 + $0x1e0] sm:$0xff]  ;;  %v660_v31 = vld [vmem:[%s3018_s20 + $0x1f0] sm:$0xff] }
  0x21   : > { %v662_v32 = vld [vmem:[%s3018_s20 + $0x200] sm:$0xff]  ;;  %659 = vst [vmem:[%s3023_s21 + $0xf0] sm:$0xff] %v658_v30  ;;  %661 = vst [vmem:[%s3023_s21 + $0xf8] sm:$0xff] %v660_v31  ;;  %v664_v33 = vld [vmem:[%s3018_s20 + $0x210] sm:$0xff] }
  0x22   : > { %663 = vst [vmem:[%s3023_s21 + $0x100] sm:$0xff] %v662_v32  ;;  %v666_v34 = vld [vmem:[%s3018_s20 + $0x220] sm:$0xff]  ;;  %v668_v35 = vld [vmem:[%s3018_s20 + $0x230] sm:$0xff]  ;;  %665 = vst [vmem:[%s3023_s21 + $0x108] sm:$0xff] %v664_v33 }
  0x23   : > { %667 = vst [vmem:[%s3023_s21 + $0x110] sm:$0xff] %v666_v34  ;;  %669 = vst [vmem:[%s3023_s21 + $0x118] sm:$0xff] %v668_v35  ;;  %v670_v36 = vld [vmem:[%s3018_s20 + $0x240] sm:$0xff]  ;;  %v672_v37 = vld [vmem:[%s3018_s20 + $0x250] sm:$0xff] }
  0x24   : > { %v674_v38 = vld [vmem:[%s3018_s20 + $0x260] sm:$0xff]  ;;  %671 = vst [vmem:[%s3023_s21 + $0x120] sm:$0xff] %v670_v36  ;;  %673 = vst [vmem:[%s3023_s21 + $0x128] sm:$0xff] %v672_v37  ;;  %v676_v39 = vld [vmem:[%s3018_s20 + $0x270] sm:$0xff] }
  0x25   : > { %675 = vst [vmem:[%s3023_s21 + $0x130] sm:$0xff] %v674_v38  ;;  %v678_v40 = vld [vmem:[%s3018_s20 + $0x280] sm:$0xff]  ;;  %v680_v41 = vld [vmem:[%s3018_s20 + $0x290] sm:$0xff]  ;;  %677 = vst [vmem:[%s3023_s21 + $0x138] sm:$0xff] %v676_v39 }
  0x26   : > { %679 = vst [vmem:[%s3023_s21 + $0x140] sm:$0xff] %v678_v40  ;;  %681 = vst [vmem:[%s3023_s21 + $0x148] sm:$0xff] %v680_v41  ;;  %v682_v42 = vld [vmem:[%s3018_s20 + $0x2a0] sm:$0xff]  ;;  %v684_v43 = vld [vmem:[%s3018_s20 + $0x2b0] sm:$0xff] }
  0x27   : > { %v686_v44 = vld [vmem:[%s3018_s20 + $0x2c0] sm:$0xff]  ;;  %683 = vst [vmem:[%s3023_s21 + $0x150] sm:$0xff] %v682_v42  ;;  %685 = vst [vmem:[%s3023_s21 + $0x158] sm:$0xff] %v684_v43  ;;  %v688_v45 = vld [vmem:[%s3018_s20 + $0x2d0] sm:$0xff] }
  0x28   : > { %687 = vst [vmem:[%s3023_s21 + $0x160] sm:$0xff] %v686_v44  ;;  %v690_v46 = vld [vmem:[%s3018_s20 + $0x2e0] sm:$0xff]  ;;  %v692_v47 = vld [vmem:[%s3018_s20 + $0x2f0] sm:$0xff]  ;;  %689 = vst [vmem:[%s3023_s21 + $0x168] sm:$0xff] %v688_v45 }
  0x29   : > { %691 = vst [vmem:[%s3023_s21 + $0x170] sm:$0xff] %v690_v46  ;;  %693 = vst [vmem:[%s3023_s21 + $0x178] sm:$0xff] %v692_v47  ;;  %v694_v48 = vld [vmem:[%s3018_s20 + $0x300] sm:$0xff]  ;;  %v696_v49 = vld [vmem:[%s3018_s20 + $0x310] sm:$0xff] }
  0x2a   : > { %v698_v50 = vld [vmem:[%s3018_s20 + $0x320] sm:$0xff]  ;;  %695 = vst [vmem:[%s3023_s21 + $0x180] sm:$0xff] %v694_v48  ;;  %697 = vst [vmem:[%s3023_s21 + $0x188] sm:$0xff] %v696_v49  ;;  %v700_v51 = vld [vmem:[%s3018_s20 + $0x330] sm:$0xff] }
  0x2b   : > { %699 = vst [vmem:[%s3023_s21 + $0x190] sm:$0xff] %v698_v50  ;;  %v702_v52 = vld [vmem:[%s3018_s20 + $0x340] sm:$0xff]  ;;  %v704_v53 = vld [vmem:[%s3018_s20 + $0x350] sm:$0xff]  ;;  %701 = vst [vmem:[%s3023_s21 + $0x198] sm:$0xff] %v700_v51 }
  0x2c   : > { %703 = vst [vmem:[%s3023_s21 + $0x1a0] sm:$0xff] %v702_v52  ;;  %705 = vst [vmem:[%s3023_s21 + $0x1a8] sm:$0xff] %v704_v53  ;;  %v706_v54 = vld [vmem:[%s3018_s20 + $0x360] sm:$0xff]  ;;  %v708_v55 = vld [vmem:[%s3018_s20 + $0x370] sm:$0xff] }
  0x2d   : > { %v710_v56 = vld [vmem:[%s3018_s20 + $0x380] sm:$0xff]  ;;  %707 = vst [vmem:[%s3023_s21 + $0x1b0] sm:$0xff] %v706_v54  ;;  %709 = vst [vmem:[%s3023_s21 + $0x1b8] sm:$0xff] %v708_v55  ;;  %v712_v57 = vld [vmem:[%s3018_s20 + $0x390] sm:$0xff] }
  0x2e   : > { %711 = vst [vmem:[%s3023_s21 + $0x1c0] sm:$0xff] %v710_v56  ;;  %v714_v58 = vld [vmem:[%s3018_s20 + $0x3a0] sm:$0xff]  ;;  %v716_v59 = vld [vmem:[%s3018_s20 + $0x3b0] sm:$0xff]  ;;  %713 = vst [vmem:[%s3023_s21 + $0x1c8] sm:$0xff] %v712_v57 }
  0x2f   : > { %715 = vst [vmem:[%s3023_s21 + $0x1d0] sm:$0xff] %v714_v58  ;;  %717 = vst [vmem:[%s3023_s21 + $0x1d8] sm:$0xff] %v716_v59  ;;  %v718_v60 = vld [vmem:[%s3018_s20 + $0x3c0] sm:$0xff]  ;;  %v720_v61 = vld [vmem:[%s3018_s20 + $0x3d0] sm:$0xff] }
  0x30   : > { %v722_v62 = vld [vmem:[%s3018_s20 + $0x3e0] sm:$0xff]  ;;  %719 = vst [vmem:[%s3023_s21 + $0x1e0] sm:$0xff] %v718_v60  ;;  %721 = vst [vmem:[%s3023_s21 + $0x1e8] sm:$0xff] %v720_v61  ;;  %v724_v63 = vld [vmem:[%s3018_s20 + $0x3f0] sm:$0xff] }
  0x31   : > { %723 = vst [vmem:[%s3023_s21 + $0x1f0] sm:$0xff] %v722_v62  ;;  %v726_v0 = vld [vmem:[%s3018_s20 + $0x400] sm:$0xff]  ;;  %v728_v1 = vld [vmem:[%s3018_s20 + $0x410] sm:$0xff]  ;;  %725 = vst [vmem:[%s3023_s21 + $0x1f8] sm:$0xff] %v724_v63 }
  0x32   : > { %727 = vst [vmem:[%s3023_s21 + $0x200] sm:$0xff] %v726_v0  ;;  %729 = vst [vmem:[%s3023_s21 + $0x208] sm:$0xff] %v728_v1  ;;  %v730_v2 = vld [vmem:[%s3018_s20 + $0x420] sm:$0xff]  ;;  %v732_v3 = vld [vmem:[%s3018_s20 + $0x430] sm:$0xff] }
  0x33   : > { %v734_v4 = vld [vmem:[%s3018_s20 + $0x440] sm:$0xff]  ;;  %731 = vst [vmem:[%s3023_s21 + $0x210] sm:$0xff] %v730_v2  ;;  %733 = vst [vmem:[%s3023_s21 + $0x218] sm:$0xff] %v732_v3  ;;  %v736_v5 = vld [vmem:[%s3018_s20 + $0x450] sm:$0xff] }
  0x34   : > { %735 = vst [vmem:[%s3023_s21 + $0x220] sm:$0xff] %v734_v4  ;;  %v738_v6 = vld [vmem:[%s3018_s20 + $0x460] sm:$0xff]  ;;  %v740_v7 = vld [vmem:[%s3018_s20 + $0x470] sm:$0xff]  ;;  %737 = vst [vmem:[%s3023_s21 + $0x228] sm:$0xff] %v736_v5 }
  0x35   : > { %739 = vst [vmem:[%s3023_s21 + $0x230] sm:$0xff] %v738_v6  ;;  %741 = vst [vmem:[%s3023_s21 + $0x238] sm:$0xff] %v740_v7  ;;  %v742_v8 = vld [vmem:[%s3018_s20 + $0x480] sm:$0xff]  ;;  %v744_v9 = vld [vmem:[%s3018_s20 + $0x490] sm:$0xff] }
  0x36   : > { %v746_v10 = vld [vmem:[%s3018_s20 + $0x4a0] sm:$0xff]  ;;  %743 = vst [vmem:[%s3023_s21 + $0x240] sm:$0xff] %v742_v8  ;;  %745 = vst [vmem:[%s3023_s21 + $0x248] sm:$0xff] %v744_v9  ;;  %v748_v11 = vld [vmem:[%s3018_s20 + $0x4b0] sm:$0xff] }
  0x37   : > { %747 = vst [vmem:[%s3023_s21 + $0x250] sm:$0xff] %v746_v10  ;;  %v750_v12 = vld [vmem:[%s3018_s20 + $0x4c0] sm:$0xff]  ;;  %v752_v13 = vld [vmem:[%s3018_s20 + $0x4d0] sm:$0xff]  ;;  %749 = vst [vmem:[%s3023_s21 + $0x258] sm:$0xff] %v748_v11 }
  0x38   : > { %751 = vst [vmem:[%s3023_s21 + $0x260] sm:$0xff] %v750_v12  ;;  %753 = vst [vmem:[%s3023_s21 + $0x268] sm:$0xff] %v752_v13  ;;  %v754_v14 = vld [vmem:[%s3018_s20 + $0x4e0] sm:$0xff]  ;;  %v756_v15 = vld [vmem:[%s3018_s20 + $0x4f0] sm:$0xff] }
  0x39   : > { %v758_v16 = vld [vmem:[%s3018_s20 + $0x500] sm:$0xff]  ;;  %755 = vst [vmem:[%s3023_s21 + $0x270] sm:$0xff] %v754_v14  ;;  %757 = vst [vmem:[%s3023_s21 + $0x278] sm:$0xff] %v756_v15  ;;  %v760_v17 = vld [vmem:[%s3018_s20 + $0x510] sm:$0xff] }
  0x3a   : > { %759 = vst [vmem:[%s3023_s21 + $0x280] sm:$0xff] %v758_v16  ;;  %v762_v18 = vld [vmem:[%s3018_s20 + $0x520] sm:$0xff]  ;;  %v764_v19 = vld [vmem:[%s3018_s20 + $0x530] sm:$0xff]  ;;  %761 = vst [vmem:[%s3023_s21 + $0x288] sm:$0xff] %v760_v17 }
  0x3b   : > { %763 = vst [vmem:[%s3023_s21 + $0x290] sm:$0xff] %v762_v18  ;;  %765 = vst [vmem:[%s3023_s21 + $0x298] sm:$0xff] %v764_v19  ;;  %v766_v20 = vld [vmem:[%s3018_s20 + $0x540] sm:$0xff]  ;;  %v768_v21 = vld [vmem:[%s3018_s20 + $0x550] sm:$0xff] }
  0x3c   : > { %v770_v22 = vld [vmem:[%s3018_s20 + $0x560] sm:$0xff]  ;;  %767 = vst [vmem:[%s3023_s21 + $0x2a0] sm:$0xff] %v766_v20  ;;  %769 = vst [vmem:[%s3023_s21 + $0x2a8] sm:$0xff] %v768_v21  ;;  %v772_v23 = vld [vmem:[%s3018_s20 + $0x570] sm:$0xff] }
  0x3d   : > { %771 = vst [vmem:[%s3023_s21 + $0x2b0] sm:$0xff] %v770_v22  ;;  %v774_v24 = vld [vmem:[%s3018_s20 + $0x580] sm:$0xff]  ;;  %v776_v25 = vld [vmem:[%s3018_s20 + $0x590] sm:$0xff]  ;;  %773 = vst [vmem:[%s3023_s21 + $0x2b8] sm:$0xff] %v772_v23 }
  0x3e   : > { %775 = vst [vmem:[%s3023_s21 + $0x2c0] sm:$0xff] %v774_v24  ;;  %777 = vst [vmem:[%s3023_s21 + $0x2c8] sm:$0xff] %v776_v25  ;;  %v778_v26 = vld [vmem:[%s3018_s20 + $0x5a0] sm:$0xff]  ;;  %v780_v27 = vld [vmem:[%s3018_s20 + $0x5b0] sm:$0xff] }
  0x3f   : > { %v782_v28 = vld [vmem:[%s3018_s20 + $0x5c0] sm:$0xff]  ;;  %779 = vst [vmem:[%s3023_s21 + $0x2d0] sm:$0xff] %v778_v26  ;;  %781 = vst [vmem:[%s3023_s21 + $0x2d8] sm:$0xff] %v780_v27  ;;  %v784_v29 = vld [vmem:[%s3018_s20 + $0x5d0] sm:$0xff] }
  0x40   : > { %783 = vst [vmem:[%s3023_s21 + $0x2e0] sm:$0xff] %v782_v28  ;;  %v786_v30 = vld [vmem:[%s3018_s20 + $0x5e0] sm:$0xff]  ;;  %v788_v31 = vld [vmem:[%s3018_s20 + $0x5f0] sm:$0xff]  ;;  %785 = vst [vmem:[%s3023_s21 + $0x2e8] sm:$0xff] %v784_v29 }
  0x41   : > { %787 = vst [vmem:[%s3023_s21 + $0x2f0] sm:$0xff] %v786_v30  ;;  %789 = vst [vmem:[%s3023_s21 + $0x2f8] sm:$0xff] %v788_v31  ;;  %v790_v32 = vld [vmem:[%s3018_s20 + $0x600] sm:$0xff]  ;;  %v792_v33 = vld [vmem:[%s3018_s20 + $0x610] sm:$0xff] }
  0x42   : > { %v794_v34 = vld [vmem:[%s3018_s20 + $0x620] sm:$0xff]  ;;  %791 = vst [vmem:[%s3023_s21 + $0x300] sm:$0xff] %v790_v32  ;;  %793 = vst [vmem:[%s3023_s21 + $0x308] sm:$0xff] %v792_v33  ;;  %v796_v35 = vld [vmem:[%s3018_s20 + $0x630] sm:$0xff] }
  0x43   : > { %795 = vst [vmem:[%s3023_s21 + $0x310] sm:$0xff] %v794_v34  ;;  %v798_v36 = vld [vmem:[%s3018_s20 + $0x640] sm:$0xff]  ;;  %v800_v37 = vld [vmem:[%s3018_s20 + $0x650] sm:$0xff]  ;;  %797 = vst [vmem:[%s3023_s21 + $0x318] sm:$0xff] %v796_v35 }
  0x44   : > { %799 = vst [vmem:[%s3023_s21 + $0x320] sm:$0xff] %v798_v36  ;;  %801 = vst [vmem:[%s3023_s21 + $0x328] sm:$0xff] %v800_v37  ;;  %v802_v38 = vld [vmem:[%s3018_s20 + $0x660] sm:$0xff]  ;;  %v804_v39 = vld [vmem:[%s3018_s20 + $0x670] sm:$0xff] }
  0x45   : > { %v806_v40 = vld [vmem:[%s3018_s20 + $0x680] sm:$0xff]  ;;  %803 = vst [vmem:[%s3023_s21 + $0x330] sm:$0xff] %v802_v38  ;;  %805 = vst [vmem:[%s3023_s21 + $0x338] sm:$0xff] %v804_v39  ;;  %v808_v41 = vld [vmem:[%s3018_s20 + $0x690] sm:$0xff] }
  0x46   : > { %807 = vst [vmem:[%s3023_s21 + $0x340] sm:$0xff] %v806_v40  ;;  %v810_v42 = vld [vmem:[%s3018_s20 + $0x6a0] sm:$0xff]  ;;  %v812_v43 = vld [vmem:[%s3018_s20 + $0x6b0] sm:$0xff]  ;;  %809 = vst [vmem:[%s3023_s21 + $0x348] sm:$0xff] %v808_v41 }
  0x47   : > { %811 = vst [vmem:[%s3023_s21 + $0x350] sm:$0xff] %v810_v42  ;;  %813 = vst [vmem:[%s3023_s21 + $0x358] sm:$0xff] %v812_v43  ;;  %v814_v44 = vld [vmem:[%s3018_s20 + $0x6c0] sm:$0xff]  ;;  %v816_v45 = vld [vmem:[%s3018_s20 + $0x6d0] sm:$0xff] }
  0x48   : > { %v818_v46 = vld [vmem:[%s3018_s20 + $0x6e0] sm:$0xff]  ;;  %815 = vst [vmem:[%s3023_s21 + $0x360] sm:$0xff] %v814_v44  ;;  %817 = vst [vmem:[%s3023_s21 + $0x368] sm:$0xff] %v816_v45  ;;  %v820_v47 = vld [vmem:[%s3018_s20 + $0x6f0] sm:$0xff] }
  0x49   : > { %819 = vst [vmem:[%s3023_s21 + $0x370] sm:$0xff] %v818_v46  ;;  %v822_v48 = vld [vmem:[%s3018_s20 + $0x700] sm:$0xff]  ;;  %v824_v49 = vld [vmem:[%s3018_s20 + $0x710] sm:$0xff]  ;;  %821 = vst [vmem:[%s3023_s21 + $0x378] sm:$0xff] %v820_v47 }
  0x4a   : > { %823 = vst [vmem:[%s3023_s21 + $0x380] sm:$0xff] %v822_v48  ;;  %825 = vst [vmem:[%s3023_s21 + $0x388] sm:$0xff] %v824_v49  ;;  %v826_v50 = vld [vmem:[%s3018_s20 + $0x720] sm:$0xff]  ;;  %v828_v51 = vld [vmem:[%s3018_s20 + $0x730] sm:$0xff] }
  0x4b   : > { %v830_v52 = vld [vmem:[%s3018_s20 + $0x740] sm:$0xff]  ;;  %827 = vst [vmem:[%s3023_s21 + $0x390] sm:$0xff] %v826_v50  ;;  %829 = vst [vmem:[%s3023_s21 + $0x398] sm:$0xff] %v828_v51  ;;  %v832_v53 = vld [vmem:[%s3018_s20 + $0x750] sm:$0xff] }
  0x4c   : > { %831 = vst [vmem:[%s3023_s21 + $0x3a0] sm:$0xff] %v830_v52  ;;  %v834_v54 = vld [vmem:[%s3018_s20 + $0x760] sm:$0xff]  ;;  %v836_v55 = vld [vmem:[%s3018_s20 + $0x770] sm:$0xff]  ;;  %833 = vst [vmem:[%s3023_s21 + $0x3a8] sm:$0xff] %v832_v53 }
  0x4d   : > { %835 = vst [vmem:[%s3023_s21 + $0x3b0] sm:$0xff] %v834_v54  ;;  %837 = vst [vmem:[%s3023_s21 + $0x3b8] sm:$0xff] %v836_v55  ;;  %v838_v56 = vld [vmem:[%s3018_s20 + $0x780] sm:$0xff]  ;;  %v840_v57 = vld [vmem:[%s3018_s20 + $0x790] sm:$0xff] }
  0x4e   : > { %v842_v58 = vld [vmem:[%s3018_s20 + $0x7a0] sm:$0xff]  ;;  %839 = vst [vmem:[%s3023_s21 + $0x3c0] sm:$0xff] %v838_v56  ;;  %841 = vst [vmem:[%s3023_s21 + $0x3c8] sm:$0xff] %v840_v57  ;;  %v844_v59 = vld [vmem:[%s3018_s20 + $0x7b0] sm:$0xff] }
  0x4f   : > { %843 = vst [vmem:[%s3023_s21 + $0x3d0] sm:$0xff] %v842_v58  ;;  %v846_v60 = vld [vmem:[%s3018_s20 + $0x7c0] sm:$0xff]  ;;  %v848_v61 = vld [vmem:[%s3018_s20 + $0x7d0] sm:$0xff]  ;;  %845 = vst [vmem:[%s3023_s21 + $0x3d8] sm:$0xff] %v844_v59 }
  0x50   : > { %847 = vst [vmem:[%s3023_s21 + $0x3e0] sm:$0xff] %v846_v60  ;;  %849 = vst [vmem:[%s3023_s21 + $0x3e8] sm:$0xff] %v848_v61  ;;  %v850_v62 = vld [vmem:[%s3018_s20 + $0x7e0] sm:$0xff]  ;;  %v852_v63 = vld [vmem:[%s3018_s20 + $0x7f0] sm:$0xff] }
  0x51   : > { %851 = vst [vmem:[%s3023_s21 + $0x3f0] sm:$0xff] %v850_v62  ;;  %853 = vst [vmem:[%s3023_s21 + $0x3f8] sm:$0xff] %v852_v63 }
  0x52 PF: > { %859 = sbr.rel (!%p3000_p3) target bundleno = 89 (0x59), region = 74  ;;  %s861_s22 = sand.u32 (%p3000_p3), 1, %s2907_s28  }
  0x53   : > { %s2629_s23 = sshll.u32 (%p3000_p3), %s2915_s30, 4  ;;  %s2486_s24 = sshll.u32 (%p3000_p3), %s861_s22, 5 }
  0x54   : > { %s866_s12 = scalar_lea.vmem (%p3000_p3), %s3560_s5, %s2629_s23  ;;  %s863_s13 = scalar_lea.vmem (%p3000_p3), [#allocation4], %s2486_s24 }
  0x55   : > { %v879_v0 = vld [vmem:[%s866_s12] sm:$0xff] (%p3000_p3)  ;;  %v881_v1 = vld [vmem:[%s866_s12 + $0x8] sm:$0xff] (%p3000_p3) }
  0x56   : > { %v883_v2 = vld [vmem:[%s866_s12 + $0x20] sm:$0xff] (%p3000_p3)  ;;  %880 = vst [vmem:[%s863_s13] sm:$0xff] (%p3000_p3), %v879_v0  ;;  %882 = vst [vmem:[%s863_s13 + $0x8] sm:$0xff] (%p3000_p3), %v881_v1  ;;  %v885_v3 = vld [vmem:[%s866_s12 + $0x28] sm:$0xff] (%p3000_p3) }
  0x57   : > { %884 = vst [vmem:[%s863_s13 + $0x10] sm:$0xff] (%p3000_p3), %v883_v2  ;;  %886 = vst [vmem:[%s863_s13 + $0x18] sm:$0xff] (%p3000_p3), %v885_v3 }
  0x59 PF: > { %p2489_p6 = scmp.ge.s32.totalorder %s2919_s9, 1  ;;  %p907_p7 = scmp.lt.s32.totalorder %s2919_s9, 3 }
  0x5b   : > { %p908_p8 = pnand %p2489_p6, %p907_p7 }
  0x5c   : > { %s914_s11 = sand.u32 (!%p908_p8), 1, %s2903_s27   ;;  %v1020_v4 = vlaneseq (!%p908_p8)  ;;  %v2921_v5 = vmov (!%p908_p8), 1983009808   ;;  %v1018_v7 = vld [vmem:[%s3556_s1] sm:$0xff] (!%p908_p8)  ;;  %v1017_v63 = vld [vmem:[%s3555_s0 + $0x8] sm:$0xff] (!%p908_p8)  ;;  %vm2199_vm2 = vcmask (!%p908_p8), 1041408  }
  0x5d   : > { %911 = sbr.rel (%p908_p8) target bundleno = 613 (0x265), region = 105  ;;  %s2490_s15 = sshll.u32 (!%p908_p8), %s914_s11, 10  ;;  %v1055_v6 = vunpack.c.l.s4 (!%p908_p8), %v2921_v5  ;;  %v3298_v9 = vld [vmem:[%s3557_s2] sm:$0xff] (!%p908_p8)  ;;  %vm2923_vm3 = vmmov (!%p908_p8), 1   ;;  %vm2195_vm5 = vcmask (!%p908_p8), 80896   ;;  %vm2328_vm7 = vcmask (!%p908_p8), 1024  }
  0x5e   : > { %v3293_v8 = vshrl.u32 (!%p908_p8), %v1020_v4, 7  ;;  %s3300_s20 = scalar_lea.vmem (!%p908_p8), [#allocation3], %s2490_s15  ;;  %v1016_v55 = vld [vmem:[%s3555_s0] sm:$0xff] (!%p908_p8)  ;;  %s2491_s25 = sshll.u32 (!%p908_p8), %s914_s11, 5  ;;  %vm2631_vm4 = vmpackc.low (!%p908_p8), %vm2199_vm2, %vm2923_vm3 }
  0x5f   : > { %v2689_v10 = vld [vmem:[%s3300_s20 + $0x4] ss:$8 sps:$4 sm:$0xff] (!%p908_p8)   ;;  %v1056_v11 = vunpack.c.0.s8 (!%p908_p8), %v1055_v6  ;;  %v2693_v15 = vld [vmem:[%s3300_s20] ss:$8 sps:$4 sm:$0xff] (!%p908_p8)   ;;  %v2695_v19 = vld [vmem:[%s3300_s20 + $0x14] ss:$8 sps:$4 sm:$0xff] (!%p908_p8)  }
  0x60   : > { %v2691_v12 = vld [vmem:[%s3300_s20 + $0x204] ss:$8 sps:$4 sm:$0xff] (!%p908_p8)   ;;  %v3305_v13 = vsub.s32 (!%p908_p8), 0, %v3293_v8  ;;  %v3308_v14 = vsub.s32 (!%p908_p8), 1, %v3293_v8  ;;  %1989 = vmatprep.subr.bf16.mxu1 (!%p908_p8), %v2689_v10  ;;  %v2694_v16 = vld [vmem:[%s3300_s20 + $0x200] ss:$8 sps:$4 sm:$0xff] (!%p908_p8)  }
  0x61   : > { %v1030_v17 = vsub.s32 (!%p908_p8), 2, %v3293_v8  ;;  %v3314_v18 = vsub.s32 (!%p908_p8), %v1056_v11, %v3293_v8  ;;  %2071 = vmatprep.subr.bf16.mxu0 (!%p908_p8), %v2691_v12  ;;  %v1034_v22 = vsub.s32 (!%p908_p8), 3, %v3293_v8  ;;  %1990 = vmatpush1.bf16.msra.mxu1 (!%p908_p8), %v2693_v15  ;;  %v2697_v24 = vld [vmem:[%s3300_s20 + $0x214] ss:$8 sps:$4 sm:$0xff] (!%p908_p8)   ;;  %v2699_v25 = vld [vmem:[%s3300_s20 + $0x10] ss:$8 sps:$4 sm:$0xff] (!%p908_p8)  }
  0x62   : > { %v1023_v20 = vrot.slane (!%p908_p8), %v1018_v7, %v3305_v13  ;;  %v1027_v21 = vrot.slane (!%p908_p8), %v1018_v7, %v3308_v14  ;;  %v1095_v23 = vrot.slane (!%p908_p8), %v3298_v9, %v3305_v13  ;;  %2072 = vmatpush1.bf16.msra.mxu0 (!%p908_p8), %v2694_v16  ;;  %v1099_v27 = vrot.slane (!%p908_p8), %v3298_v9, %v3308_v14  ;;  %v2700_v30 = vld [vmem:[%s3300_s20 + $0x210] ss:$8 sps:$4 sm:$0xff] (!%p908_p8)   ;;  %v2701_v35 = vld [vmem:[%s3300_s20 + $0x24] ss:$8 sps:$4 sm:$0xff] (!%p908_p8)   ;;  %v2705_v41 = vld [vmem:[%s3300_s20 + $0x20] ss:$8 sps:$4 sm:$0xff] (!%p908_p8)  }
  0x63   : > { %v1031_v26 = vrot.slane (!%p908_p8), %v1018_v7, %v1030_v17  ;;  %v1103_v28 = vrot.slane (!%p908_p8), %v3298_v9, %v1030_v17  ;;  %v1038_v29 = vsub.s32 (!%p908_p8), 4, %v3293_v8  ;;  %1991 = vmatprep.subr.bf16.mxu1 (!%p908_p8), %v2695_v19  ;;  %v1035_v31 = vrot.slane (!%p908_p8), %v1018_v7, %v1034_v22  ;;  %2073 = vmatprep.subr.bf16.mxu0 (!%p908_p8), %v2697_v24  ;;  %v2703_v40 = vld [vmem:[%s3300_s20 + $0x224] ss:$8 sps:$4 sm:$0xff] (!%p908_p8)   ;;  %v2706_v42 = vld [vmem:[%s3300_s20 + $0x220] ss:$8 sps:$4 sm:$0xff] (!%p908_p8)   ;;  %s923_s26 = scalar_lea.vmem (!%p908_p8), [#allocation4], %s2491_s25 }
  0x64   : > { %v1052_v32 = vcombine.low %v1023_v20, %v1027_v21  ;;  %v1107_v33 = vrot.slane %v3298_v9, %v1034_v22  ;;  %v1042_v34 = vsub.s32 5, %v3293_v8  ;;  %v1124_v36 = vcombine.low %v1095_v23, %v1099_v27  ;;  %v2707_v47 = vld [vmem:[%s3300_s20 + $0x34] ss:$8 sps:$4 sm:$0xff]   ;;  %v2711_v60 = vld [vmem:[%s3300_s20 + $0x30] ss:$8 sps:$4 sm:$0xff]   ;;  %s2492_s13 = sshll.u32 %s2911_s29, 1 }
  0x65   : > { %v1039_v37 = vrot.slane %v1018_v7, %v1038_v29  ;;  %v1046_v38 = vsub.s32 6, %v3293_v8  ;;  %v1050_v39 = vsub.s32 7, %v3293_v8  ;;  %v1053_v43 = vcombine.low %v1031_v26, %v1035_v31  ;;  %1992 = vmatpush1.bf16.msra.mxu1 %v2699_v25  ;;  %v2709_v51 = vld [vmem:[%s3300_s20 + $0x234] ss:$8 sps:$4 sm:$0xff]   ;;  %v2712_v2 = vld [vmem:[%s3300_s20 + $0x230] ss:$8 sps:$4 sm:$0xff]  }
  0x66   : > { %v1060_v44 = vrot.slane %v1052_v32, %v3314_v18  ;;  %v1125_v45 = vcombine.low %v1103_v28, %v1107_v33  ;;  %v1043_v46 = vrot.slane %v1018_v7, %v1042_v34  ;;  %2074 = vmatpush1.bf16.msra.mxu0 %v2700_v30  ;;  %v1132_v48 = vrot.slane %v1124_v36, %v3314_v18  ;;  %v2713_v3 = vld [vmem:[%s3300_s20 + $0x44] ss:$8 sps:$4 sm:$0xff]   ;;  %v2717_v12 = vld [vmem:[%s3300_s20 + $0x40] ss:$8 sps:$4 sm:$0xff]   ;;  %v2719_v19 = vld [vmem:[%s3300_s20 + $0x54] ss:$8 sps:$4 sm:$0xff]  }
  0x67   : > { %v1047_v49 = vrot.slane %v1018_v7, %v1046_v38  ;;  %v1051_v50 = vrot.slane %v1018_v7, %v1050_v39  ;;  %1993 = vmatprep.subr.bf16.mxu1 %v2701_v35  ;;  %2075 = vmatprep.subr.bf16.mxu0 %v2703_v40  ;;  %v1067_v52 = vrot.slane %v1053_v43, %v3314_v18  ;;  %v2715_v6 = vld [vmem:[%s3300_s20 + $0x244] ss:$8 sps:$4 sm:$0xff]   ;;  %v2922_v10 = vmov 0.0   ;;  %v2718_v15 = vld [vmem:[%s3300_s20 + $0x240] ss:$8 sps:$4 sm:$0xff]   ;;  %p998_p9 = scmp.lt.s32.totalorder %s2492_s13, 3 }
  0x68   : > { %v1139_v53 = vrot.slane %v1125_v45, %v3314_v18  ;;  %v1069_v54 = vcombine.low %v1039_v37, %v1043_v46  ;;  %v1111_v57 = vrot.slane %v3298_v9, %v1038_v29  ;;  %v1115_v58 = vrot.slane %v3298_v9, %v1042_v34  ;;  %1015 = vst [vmem:[#allocation2] sm:$0xf] %v2922_v10  ;;  %v2721_v21 = vld [vmem:[%s3300_s20 + $0x254] ss:$8 sps:$4 sm:$0xff]   ;;  %v2723_v23 = vld [vmem:[%s3300_s20 + $0x50] ss:$8 sps:$4 sm:$0xff]  }
  0x69   : > { %v1070_v56 = vcombine.low %v1047_v49, %v1051_v50  ;;  %v1119_v59 = vrot.slane %v3298_v9, %v1046_v38  ;;  %v1068_v61 = vcombine.low %v1060_v44, %v1067_v52  ;;  %v1123_v1 = vrot.slane %v3298_v9, %v1050_v39  ;;  %1994 = vmatpush1.bf16.msra.mxu1 %v2705_v41  ;;  %v2724_v26 = vld [vmem:[%s3300_s20 + $0x250] ss:$8 sps:$4 sm:$0xff]   ;;  %v2725_v27 = vld [vmem:[%s3300_s20 + $0x64] ss:$8 sps:$4 sm:$0xff]   ;;  %v2729_v32 = vld [vmem:[%s3300_s20 + $0x60] ss:$8 sps:$4 sm:$0xff]  }
  0x6a   : > { %v1140_v62 = vcombine.low %v1132_v48, %v1139_v53  ;;  %v1077_v0 = vrot.slane %v1069_v54, %v3314_v18  ;;  %2076 = vmatpush1.bf16.msra.mxu0 %v2706_v42  ;;  %v1141_v5 = vcombine.low %v1111_v57, %v1115_v58  ;;  %1995 = vmatprep.subr.bf16.mxu1 %v2707_v47  ;;  %v2727_v28 = vld [vmem:[%s3300_s20 + $0x264] ss:$8 sps:$4 sm:$0xff]   ;;  %v2730_v33 = vld [vmem:[%s3300_s20 + $0x260] ss:$8 sps:$4 sm:$0xff]   ;;  %v2731_v34 = vld [vmem:[%s3300_s20 + $0x74] ss:$8 sps:$4 sm:$0xff]  }
  0x6b   : > { %v1084_v4 = vrot.slane %v1070_v56, %v3314_v18  ;;  %2077 = vmatprep.subr.bf16.mxu0 %v2709_v51  ;;  %v1088_v7 = vmul.f32 %v1068_v61, %v1016_v55  ;;  %v1142_v8 = vcombine.low %v1119_v59, %v1123_v1  ;;  %v2733_v37 = vld [vmem:[%s3300_s20 + $0x274] ss:$8 sps:$4 sm:$0xff]   ;;  %v2735_v40 = vld [vmem:[%s3300_s20 + $0x70] ss:$8 sps:$4 sm:$0xff]   ;;  %v2737_v43 = vld [vmem:[%s3300_s20 + $0x84] ss:$8 sps:$4 sm:$0xff]  }
  0x6c   : > { %v1149_v11 = vrot.slane %v1141_v5, %v3314_v18  ;;  %v2736_v42 = vld [vmem:[%s3300_s20 + $0x270] ss:$8 sps:$4 sm:$0xff]   ;;  %v2739_v44 = vld [vmem:[%s3300_s20 + $0x284] ss:$8 sps:$4 sm:$0xff]   ;;  %v2741_v46 = vld [vmem:[%s3300_s20 + $0x80] ss:$8 sps:$4 sm:$0xff]  }
  0x6d   : > { %v1085_v9 = vcombine.low %v1077_v0, %v1084_v4  ;;  %v1160_v16 = vadd.f32 %v1140_v62, %v1088_v7  ;;  %v1156_v17 = vrot.slane %v1142_v8, %v3314_v18  ;;  %1996 = vmatpush1.bf16.msra.mxu1 %v2711_v60  ;;  %v2742_v47 = vld [vmem:[%s3300_s20 + $0x280] ss:$8 sps:$4 sm:$0xff]   ;;  %v2743_v48 = vld [vmem:[%s3300_s20 + $0x94] ss:$8 sps:$4 sm:$0xff]   ;;  %v2747_v50 = vld [vmem:[%s3300_s20 + $0x90] ss:$8 sps:$4 sm:$0xff]  }
  0x6e   : > { %2078 = vmatpush1.bf16.msra.mxu0 %v2712_v2  ;;  %1997 = vmatprep.subr.bf16.mxu1 %v2713_v3  ;;  %v2745_v49 = vld [vmem:[%s3300_s20 + $0x294] ss:$8 sps:$4 sm:$0xff]   ;;  %v2748_v51 = vld [vmem:[%s3300_s20 + $0x290] ss:$8 sps:$4 sm:$0xff]   ;;  %v2749_v52 = vld [vmem:[%s3300_s20 + $0xa4] ss:$8 sps:$4 sm:$0xff]  }
  0x6f   : > { %v1089_v20 = vmul.f32 %v1085_v9, %v1017_v63  ;;  %2079 = vmatprep.subr.bf16.mxu0 %v2715_v6  ;;  %v1157_v22 = vcombine.low %v1149_v11, %v1156_v17  ;;  %vm1162_vm0 = vcmp.ge.f32.partialorder %v1160_v16, 0.0  ;;  %v1164_v24 = vmul.f32 0.2, %v1160_v16  ;;  %v2751_v53 = vld [vmem:[%s3300_s20 + $0x2a4] ss:$8 sps:$4 sm:$0xff]   ;;  %s3572_s13 = smov (!%p998_p9, %s2492_s13), 3 }
  0x70   : > { %v2753_v54 = vld [vmem:[%s3300_s20 + $0xa0] ss:$8 sps:$4 sm:$0xff]   ;;  %v2755_v56 = vld [vmem:[%s3300_s20 + $0xb4] ss:$8 sps:$4 sm:$0xff]   ;;  %v2759_v58 = vld [vmem:[%s3300_s20 + $0xb0] ss:$8 sps:$4 sm:$0xff]   ;;  %s1000_s16 = scalar_lea.vmem %s3561_s6, %s3572_s13  ;;  %s1005_s19 = scalar_lea.vmem %s3562_s7, %s3572_s13 }
  0x71   : > { %v1161_v25 = vadd.f32 %v1157_v22, %v1089_v20  ;;  %1998 = vmatpush1.bf16.msra.mxu1 %v2717_v12  ;;  %v3370_v29 = vsel %vm1162_vm0, %v1160_v16, %v1164_v24  ;;  %v2754_v55 = vld [vmem:[%s3300_s20 + $0x2a0] ss:$8 sps:$4 sm:$0xff]   ;;  %v2757_v57 = vld [vmem:[%s3300_s20 + $0x2b4] ss:$8 sps:$4 sm:$0xff]   ;;  %v2760_v59 = vld [vmem:[%s3300_s20 + $0x2b0] ss:$8 sps:$4 sm:$0xff]  }
  0x72   : > { %2080 = vmatpush1.bf16.msra.mxu0 %v2718_v15  ;;  %1999 = vmatprep.subr.bf16.mxu1 %v2719_v19  ;;  %v3374_v30 = vrot.slane %v3370_v29, %v3314_v18  ;;  %v2761_v60 = vld [vmem:[%s3300_s20 + $0xc4] ss:$8 sps:$4 sm:$0xff]   ;;  %v2765_v62 = vld [vmem:[%s3300_s20 + $0xc0] ss:$8 sps:$4 sm:$0xff]   ;;  %v2767_v0 = vld [vmem:[%s3300_s20 + $0xd4] ss:$8 sps:$4 sm:$0xff]   ;;  %v1171_v6 = vcombine.high %v3370_v29, %v3370_v29 }
  0x73   : > { %2081 = vmatprep.subr.bf16.mxu0 %v2721_v21  ;;  %vm1163_vm1 = vcmp.ge.f32.partialorder %v1161_v25, 0.0  ;;  %v1165_v31 = vmul.f32 0.2, %v1161_v25  ;;  %v2763_v61 = vld [vmem:[%s3300_s20 + $0x2c4] ss:$8 sps:$4 sm:$0xff]   ;;  %p1007_p10 = scmp.lt.s32.totalorder %s2911_s29, 1 }
  0x74   : > { %v1186_v35 = vcombine.high %v3374_v30, %v3374_v30  ;;  %v2766_v63 = vld [vmem:[%s3300_s20 + $0x2c0] ss:$8 sps:$4 sm:$0xff]   ;;  %v2769_v1 = vld [vmem:[%s3300_s20 + $0x2d4] ss:$8 sps:$4 sm:$0xff]   ;;  %v2771_v2 = vld [vmem:[%s3300_s20 + $0xd0] ss:$8 sps:$4 sm:$0xff]   ;;  %v3427_v15 = vrot.slane %v1171_v6, %v3314_v18 }
  0x75   : > { %2000 = vmatpush1.bf16.msra.mxu1 %v2723_v23  ;;  %v3381_v36 = vsel %vm1163_vm1, %v1161_v25, %v1165_v31  ;;  %v2772_v3 = vld [vmem:[%s3300_s20 + $0x2d0] ss:$8 sps:$4 sm:$0xff]   ;;  %v2773_v4 = vld [vmem:[%s3300_s20 + $0xe4] ss:$8 sps:$4 sm:$0xff]   ;;  %v2777_v8 = vld [vmem:[%s3300_s20 + $0xe0] ss:$8 sps:$4 sm:$0xff]  }
  0x76   : > { %2082 = vmatpush1.bf16.msra.mxu0 %v2724_v26  ;;  %2001 = vmatprep.subr.bf16.mxu1 %v2725_v27  ;;  %v3386_v38 = vrot.slane %v3381_v36, %v3314_v18  ;;  %v1214_v39 = vpack.c.bf16 %v1186_v35, %v1186_v35  ;;  %v2775_v5 = vld [vmem:[%s3300_s20 + $0x2e4] ss:$8 sps:$4 sm:$0xff]   ;;  %v1188_v7 = vcombine.high %v3381_v36, %v3381_v36  ;;  %v2778_v9 = vld [vmem:[%s3300_s20 + $0x2e0] ss:$8 sps:$4 sm:$0xff]   ;;  %v2779_v11 = vld [vmem:[%s3300_s20 + $0xf4] ss:$8 sps:$4 sm:$0xff]  }
  0x77   : > { %2083 = vmatprep.subr.bf16.mxu0 %v2727_v28  ;;  %v2781_v12 = vld [vmem:[%s3300_s20 + $0x2f4] ss:$8 sps:$4 sm:$0xff]   ;;  %v2783_v17 = vld [vmem:[%s3300_s20 + $0xf0] ss:$8 sps:$4 sm:$0xff]   ;;  %v2787_v20 = vld [vmem:[%s3300_s20 + $0x104] ss:$8 sps:$4 sm:$0xff]   ;;  %v1187_v22 = vcombine.high %v3427_v15, %v3427_v15  ;;  %v1213_v26 = vpack.c.bf16 %v3374_v30, %v3374_v30 }
  0x78   : > { %v1203_v41 = vcombine.high %v3386_v38, %v3386_v38  ;;  %2021 = vmatprep.mubr.bf16.mxu1 %v1214_v39  ;;  %v3430_v16 = vrot.slane %v1188_v7, %v3314_v18  ;;  %v2784_v19 = vld [vmem:[%s3300_s20 + $0x2f0] ss:$8 sps:$4 sm:$0xff]   ;;  %v2790_v21 = vld [vmem:[%s3300_s20 + $0x304] ss:$8 sps:$4 sm:$0xff]   ;;  %v2785_v24 = vld [vmem:[%s3300_s20 + $0x100] ss:$8 sps:$4 sm:$0xff]   ;;  %v1217_v27 = vpack.c.bf16 %v3386_v38, %v3386_v38 }
  0x79   : > { %2002 = vmatpush1.bf16.msra.mxu1 %v2729_v32  ;;  %v2788_v25 = vld [vmem:[%s3300_s20 + $0x300] ss:$8 sps:$4 sm:$0xff]   ;;  %v2793_v28 = vld [vmem:[%s3300_s20 + $0x114] ss:$8 sps:$4 sm:$0xff]   ;;  %v1216_v31 = vpack.c.bf16 %v1187_v22, %v1187_v22  ;;  %v2794_v30 = vld [vmem:[%s3300_s20 + $0x310] ss:$8 sps:$4 sm:$0xff]  }
  0x7a   : > { %2084 = vmatpush1.bf16.msra.mxu0 %v2730_v33  ;;  %2003 = vmatprep.subr.bf16.mxu1 %v2731_v34  ;;  %v1218_v45 = vpack.c.bf16 %v1203_v41, %v1203_v41  ;;  %v1204_v23 = vcombine.high %v3430_v16, %v3430_v16  ;;  %v2796_v29 = vld [vmem:[%s3300_s20 + $0x314] ss:$8 sps:$4 sm:$0xff]   ;;  %v2791_v33 = vld [vmem:[%s3300_s20 + $0x110] ss:$8 sps:$4 sm:$0xff]   ;;  %v2799_v34 = vld [vmem:[%s3300_s20 + $0x124] ss:$8 sps:$4 sm:$0xff]  }
  0x7b   : > { %2085 = vmatprep.subr.bf16.mxu0 %v2733_v37  ;;  %v2802_v35 = vld [vmem:[%s3300_s20 + $0x324] ss:$8 sps:$4 sm:$0xff]   ;;  %v2797_v36 = vld [vmem:[%s3300_s20 + $0x120] ss:$8 sps:$4 sm:$0xff]   ;;  %v2805_v38 = vld [vmem:[%s3300_s20 + $0x134] ss:$8 sps:$4 sm:$0xff]  }
  0x7c   : > { %2103 = vmatprep.mubr.bf16.mxu0 %v1218_v45  ;;  %v1220_v32 = vpack.c.bf16 %v1204_v23, %v1204_v23  ;;  %v2800_v37 = vld [vmem:[%s3300_s20 + $0x320] ss:$8 sps:$4 sm:$0xff]   ;;  %v2808_v39 = vld [vmem:[%s3300_s20 + $0x334] ss:$8 sps:$4 sm:$0xff]   ;;  %v2806_v41 = vld [vmem:[%s3300_s20 + $0x330] ss:$8 sps:$4 sm:$0xff]  }
  0x7d   : > { %2004 = vmatpush1.bf16.msra.mxu1 %v2735_v40  ;;  %v2803_v40 = vld [vmem:[%s3300_s20 + $0x130] ss:$8 sps:$4 sm:$0xff]   ;;  %v2812_v45 = vld [vmem:[%s3300_s20 + $0x340] ss:$8 sps:$4 sm:$0xff]   ;;  %v2853_v6 = vld [vmem:[%s3300_s20 + $0x1b4] ss:$8 sps:$4 sm:$0xff]  }
  0x7e   : > { %2086 = vmatpush1.bf16.msra.mxu0 %v2736_v42  ;;  %2005 = vmatprep.subr.bf16.mxu1 %v2737_v43  ;;  %v2811_v42 = vld [vmem:[%s3300_s20 + $0x144] ss:$8 sps:$4 sm:$0xff]   ;;  %v2856_v7 = vld [vmem:[%s3300_s20 + $0x3b4] ss:$8 sps:$4 sm:$0xff]   ;;  %v2863_v22 = vld [vmem:[%s3300_s20 + $0x1d0] ss:$8 sps:$4 sm:$0xff]  }
  0x7f   : > { %2087 = vmatprep.subr.bf16.mxu0 %v2739_v44  ;;  %v2814_v43 = vld [vmem:[%s3300_s20 + $0x344] ss:$8 sps:$4 sm:$0xff]   ;;  %v2809_v44 = vld [vmem:[%s3300_s20 + $0x140] ss:$8 sps:$4 sm:$0xff]   ;;  %v2866_v23 = vld [vmem:[%s3300_s20 + $0x3d0] ss:$8 sps:$4 sm:$0xff]  }
  0x80   : > { %s3574_s29 = smov (!%p1007_p10, %s2911_s29), 1 }
  0x81   : > { %2006 = vmatpush1.bf16.msra.mxu1 %v2741_v46  ;;  %v2817_v46 = vld [vmem:[%s3300_s20 + $0x154] ss:$8 sps:$4 sm:$0xff]  }
  0x82   : > { %2088 = vmatpush1.bf16.msra.mxu0 %v2742_v47  ;;  %2007 = vmatprep.subr.bf16.mxu1 %v2743_v48  ;;  %v2820_v47 = vld [vmem:[%s3300_s20 + $0x354] ss:$8 sps:$4 sm:$0xff]   ;;  %v2815_v48 = vld [vmem:[%s3300_s20 + $0x150] ss:$8 sps:$4 sm:$0xff]  }
  0x83   : > { %2089 = vmatprep.subr.bf16.mxu0 %v2745_v49  ;;  %v2818_v49 = vld [vmem:[%s3300_s20 + $0x350] ss:$8 sps:$4 sm:$0xff]  }
  0x85   : > { %2008 = vmatpush1.bf16.msra.mxu1 %v2747_v50  ;;  %v2823_v50 = vld [vmem:[%s3300_s20 + $0x164] ss:$8 sps:$4 sm:$0xff]  }
  0x86   : > { %2090 = vmatpush1.bf16.msra.mxu0 %v2748_v51  ;;  %2009 = vmatprep.subr.bf16.mxu1 %v2749_v52  ;;  %v2826_v51 = vld [vmem:[%s3300_s20 + $0x364] ss:$8 sps:$4 sm:$0xff]   ;;  %v2821_v52 = vld [vmem:[%s3300_s20 + $0x160] ss:$8 sps:$4 sm:$0xff]  }
  0x87   : > { %2091 = vmatprep.subr.bf16.mxu0 %v2751_v53  ;;  %v2824_v53 = vld [vmem:[%s3300_s20 + $0x360] ss:$8 sps:$4 sm:$0xff]  }
  0x89   : > { %2010 = vmatpush1.bf16.msra.mxu1 %v2753_v54  ;;  %v2829_v54 = vld [vmem:[%s3300_s20 + $0x174] ss:$8 sps:$4 sm:$0xff]  }
  0x8a   : > { %2092 = vmatpush1.bf16.msra.mxu0 %v2754_v55  ;;  %2011 = vmatprep.subr.bf16.mxu1 %v2755_v56  ;;  %v2832_v55 = vld [vmem:[%s3300_s20 + $0x374] ss:$8 sps:$4 sm:$0xff]   ;;  %v2827_v56 = vld [vmem:[%s3300_s20 + $0x170] ss:$8 sps:$4 sm:$0xff]  }
  0x8b   : > { %2093 = vmatprep.subr.bf16.mxu0 %v2757_v57  ;;  %v2830_v57 = vld [vmem:[%s3300_s20 + $0x370] ss:$8 sps:$4 sm:$0xff]  }
  0x8d   : > { %2012 = vmatpush1.bf16.msra.mxu1 %v2759_v58  ;;  %v2835_v58 = vld [vmem:[%s3300_s20 + $0x184] ss:$8 sps:$4 sm:$0xff]  }
  0x8e   : > { %2094 = vmatpush1.bf16.msra.mxu0 %v2760_v59  ;;  %2013 = vmatprep.subr.bf16.mxu1 %v2761_v60  ;;  %v2838_v59 = vld [vmem:[%s3300_s20 + $0x384] ss:$8 sps:$4 sm:$0xff]   ;;  %v2833_v60 = vld [vmem:[%s3300_s20 + $0x180] ss:$8 sps:$4 sm:$0xff]  }
  0x8f   : > { %2095 = vmatprep.subr.bf16.mxu0 %v2763_v61  ;;  %v2836_v61 = vld [vmem:[%s3300_s20 + $0x380] ss:$8 sps:$4 sm:$0xff]  }
  0x91   : > { %2014 = vmatpush1.bf16.msra.mxu1 %v2765_v62  ;;  %v2841_v62 = vld [vmem:[%s3300_s20 + $0x194] ss:$8 sps:$4 sm:$0xff]  }
  0x92   : > { %2096 = vmatpush1.bf16.msra.mxu0 %v2766_v63  ;;  %2015 = vmatprep.subr.bf16.mxu1 %v2767_v0  ;;  %v2844_v63 = vld [vmem:[%s3300_s20 + $0x394] ss:$8 sps:$4 sm:$0xff]   ;;  %v2839_v0 = vld [vmem:[%s3300_s20 + $0x190] ss:$8 sps:$4 sm:$0xff]  }
  0x93   : > { %2097 = vmatprep.subr.bf16.mxu0 %v2769_v1  ;;  %v2842_v1 = vld [vmem:[%s3300_s20 + $0x390] ss:$8 sps:$4 sm:$0xff]  }
  0x95   : > { %2016 = vmatpush1.bf16.msra.mxu1 %v2771_v2  ;;  %v2847_v2 = vld [vmem:[%s3300_s20 + $0x1a4] ss:$8 sps:$4 sm:$0xff]  }
  0x96   : > { %2098 = vmatpush1.bf16.msra.mxu0 %v2772_v3  ;;  %2017 = vmatprep.subr.bf16.mxu1 %v2773_v4  ;;  %v2850_v3 = vld [vmem:[%s3300_s20 + $0x3a4] ss:$8 sps:$4 sm:$0xff]   ;;  %v2845_v4 = vld [vmem:[%s3300_s20 + $0x1a0] ss:$8 sps:$4 sm:$0xff]  }
  0x97   : > { %2099 = vmatprep.subr.bf16.mxu0 %v2775_v5  ;;  %v2848_v5 = vld [vmem:[%s3300_s20 + $0x3a0] ss:$8 sps:$4 sm:$0xff]  }
  0x99   : > { %2018 = vmatpush1.bf16.msra.mxu1 %v2777_v8  ;;  %v2851_v8 = vld [vmem:[%s3300_s20 + $0x1b0] ss:$8 sps:$4 sm:$0xff]  }
  0x9a   : > { %2100 = vmatpush1.bf16.msra.mxu0 %v2778_v9  ;;  %2019 = vmatprep.subr.bf16.mxu1 %v2779_v11  ;;  %v2854_v9 = vld [vmem:[%s3300_s20 + $0x3b0] ss:$8 sps:$4 sm:$0xff]   ;;  %v2859_v11 = vld [vmem:[%s3300_s20 + $0x1c4] ss:$8 sps:$4 sm:$0xff]  }
  0x9b   : > { %2101 = vmatprep.subr.bf16.mxu0 %v2781_v12  ;;  %v2862_v12 = vld [vmem:[%s3300_s20 + $0x3c4] ss:$8 sps:$4 sm:$0xff]  }
  0x9d   : > { %2020 = vmatpush1.bf16.msra.mxu1 %v2783_v17  ;;  %v2857_v17 = vld [vmem:[%s3300_s20 + $0x1c0] ss:$8 sps:$4 sm:$0xff]  }
  0x9e   : > { %2102 = vmatpush1.bf16.msra.mxu0 %v2784_v19  ;;  %2030 = vmatprep.subr.bf16.mxu1 %v2787_v20  ;;  %v2860_v19 = vld [vmem:[%s3300_s20 + $0x3c0] ss:$8 sps:$4 sm:$0xff]   ;;  %v2865_v20 = vld [vmem:[%s3300_s20 + $0x1d4] ss:$8 sps:$4 sm:$0xff]  }
  0x9f   : > { %2112 = vmatprep.subr.bf16.mxu0 %v2790_v21  ;;  %v2868_v21 = vld [vmem:[%s3300_s20 + $0x3d4] ss:$8 sps:$4 sm:$0xff]  }
  0xa0   : > { %2022 = vmatmul.mubr.bf16.vlgmr.msra.gmra.mrb[0].mxu1 %v1213_v26  ;;  %v2869_v26 = vld [vmem:[%s3300_s20 + $0x1e0] ss:$8 sps:$4 sm:$0xff]  }
  0xa1   : > { %2104 = vmatmul.mubr.bf16.vlgmr.msra.gmra.mrb[0].mxu0 %v1217_v27  ;;  %2031 = vmatpush1.bf16.msra.mxu1 %v2785_v24  ;;  %v2871_v24 = vld [vmem:[%s3300_s20 + $0x1e4] ss:$8 sps:$4 sm:$0xff]   ;;  %v2872_v27 = vld [vmem:[%s3300_s20 + $0x3e0] ss:$8 sps:$4 sm:$0xff]  }
  0xa2   : > { %2113 = vmatpush1.bf16.msra.mxu0 %v2788_v25  ;;  %2032 = vmatprep.subr.bf16.mxu1 %v2793_v28  ;;  %v2874_v25 = vld [vmem:[%s3300_s20 + $0x3e4] ss:$8 sps:$4 sm:$0xff]   ;;  %v2877_v28 = vld [vmem:[%s3300_s20 + $0x1f4] ss:$8 sps:$4 sm:$0xff]  }
  0xa3   : > { %2114 = vmatprep.subr.bf16.mxu0 %v2796_v29  ;;  %2062 = vmatprep.mubr.bf16.mxu1 %v1216_v31  ;;  %v2880_v29 = vld [vmem:[%s3300_s20 + $0x3f4] ss:$8 sps:$4 sm:$0xff]   ;;  %v2192_v31 = vld [vmem:[%s923_s26 + $0x8] sm:$0xff] }
  0xa4   : > { %2144 = vmatprep.mubr.bf16.mxu0 %v1220_v32  ;;  %v2194_v32 = vld [vmem:[%s923_s26 + $0x18] sm:$0x3] }
  0xa5   : > { %2033 = vmatpush1.bf16.msra.mxu1 %v2791_v33  ;;  %v2875_v33 = vld [vmem:[%s3300_s20 + $0x1f0] ss:$8 sps:$4 sm:$0xff]  }
  0xa6   : > { %2115 = vmatpush1.bf16.msra.mxu0 %v2794_v30  ;;  %2034 = vmatprep.subr.bf16.mxu1 %v2799_v34  ;;  %v2878_v30 = vld [vmem:[%s3300_s20 + $0x3f0] ss:$8 sps:$4 sm:$0xff]   ;;  %v2630_v34 = vpack.c.bf16 %v2194_v32, %v2192_v31  ;;  %s2494_s20 = sshll.u32 %s3574_s29, 1 }
  0xa7   : > { %2116 = vmatprep.subr.bf16.mxu0 %v2802_v35  ;;  %v2191_v35 = vld [vmem:[%s923_s26] sm:$0xff]  ;;  %s1010_s23 = scalar_lea.vmem %s3563_s8, %s2494_s20 }
  0xa9   : > { %2035 = vmatpush1.bf16.msra.mxu1 %v2797_v36  ;;  %v2193_v36 = vld [vmem:[%s923_s26 + $0x10] sm:$0x3] }
  0xaa   : > { %2117 = vmatpush1.bf16.msra.mxu0 %v2800_v37  ;;  %2036 = vmatprep.subr.bf16.mxu1 %v2805_v38  ;;  %v1215_v37 = vpack.c.bf16 %v3427_v15, %v3427_v15  ;;  %v1219_v38 = vpack.c.bf16 %v3430_v16, %v3430_v16 }
  0xab   : > { %2118 = vmatprep.subr.bf16.mxu0 %v2808_v39  ;;  %v2633_v39 = vpack.c.bf16 %v2193_v36, %v2191_v35 }
  0xad   : > { %2037 = vmatpush1.bf16.msra.mxu1 %v2803_v40  ;;  %v2190_v40 = vld [vmem:[%s3559_s4] sm:$0x3] }
  0xae   : > { %2119 = vmatpush1.bf16.msra.mxu0 %v2806_v41  ;;  %2038 = vmatprep.subr.bf16.mxu1 %v2811_v42 }
  0xaf   : > { %2120 = vmatprep.subr.bf16.mxu0 %v2814_v43 }
  0xb1   : > { %2039 = vmatpush1.bf16.msra.mxu1 %v2809_v44 }
  0xb2   : > { %2121 = vmatpush1.bf16.msra.mxu0 %v2812_v45  ;;  %2040 = vmatprep.subr.bf16.mxu1 %v2817_v46 }
  0xb3   : > { %2122 = vmatprep.subr.bf16.mxu0 %v2820_v47 }
  0xb5   : > { %2041 = vmatpush1.bf16.msra.mxu1 %v2815_v48  ;;  %v2170_v48 = vld [vmem:[%s1000_s16] sm:$0x3] }
  0xb6   : > { %2123 = vmatpush1.bf16.msra.mxu0 %v2818_v49  ;;  %2042 = vmatprep.subr.bf16.mxu1 %v2823_v50  ;;  %v1168_v50 = vld [vmem:[#allocation2] sm:$0xf] }
  0xb7   : > { %2124 = vmatprep.subr.bf16.mxu0 %v2826_v51 }
  0xb9   : > { %2043 = vmatpush1.bf16.msra.mxu1 %v2821_v52  ;;  %v2175_v52 = vrot.slane %v2170_v48, %v3305_v13 }
  0xba   : > { %2125 = vmatpush1.bf16.msra.mxu0 %v2824_v53  ;;  %2044 = vmatprep.subr.bf16.mxu1 %v2829_v54  ;;  %v2179_v53 = vrot.slane %v2170_v48, %v3308_v14 }
  0xbb   : > { %2126 = vmatprep.subr.bf16.mxu0 %v2832_v55 }
  0xbd   : > { %2045 = vmatpush1.bf16.msra.mxu1 %v2827_v56 }
  0xbe   : > { %2127 = vmatpush1.bf16.msra.mxu0 %v2830_v57  ;;  %2046 = vmatprep.subr.bf16.mxu1 %v2835_v58  ;;  %v2180_v57 = vcombine.low %v2175_v52, %v2179_v53 }
  0xbf   : > { %2128 = vmatprep.subr.bf16.mxu0 %v2838_v59  ;;  %v2292_v59 = vld [vmem:[%s1005_s19] sm:$0x3] }
  0xc1   : > { %2047 = vmatpush1.bf16.msra.mxu1 %v2833_v60  ;;  %v2297_v60 = vrot.slane %v2292_v59, %v3305_v13 }
  0xc2   : > { %2129 = vmatpush1.bf16.msra.mxu0 %v2836_v61  ;;  %2048 = vmatprep.subr.bf16.mxu1 %v2841_v62  ;;  %v2301_v61 = vrot.slane %v2292_v59, %v3308_v14  ;;  %v2187_v62 = vrot.slane %v2180_v57, %v3314_v18 }
  0xc3   : > { %2130 = vmatprep.subr.bf16.mxu0 %v2844_v63 }
  0xc5   : > { %2049 = vmatpush1.bf16.msra.mxu1 %v2839_v0 }
  0xc6   : > { %2131 = vmatpush1.bf16.msra.mxu0 %v2842_v1  ;;  %2050 = vmatprep.subr.bf16.mxu1 %v2847_v2  ;;  %v2302_v1 = vcombine.low %v2297_v60, %v2301_v61 }
  0xc7   : > { %2132 = vmatprep.subr.bf16.mxu0 %v2850_v3 }
  0xc9   : > { %2051 = vmatpush1.bf16.msra.mxu1 %v2845_v4  ;;  %v2309_v4 = vrot.slane %v2302_v1, %v3314_v18 }
  0xca   : > { %2133 = vmatpush1.bf16.msra.mxu0 %v2848_v5  ;;  %2052 = vmatprep.subr.bf16.mxu1 %v2853_v6 }
  0xcb   : > { %2134 = vmatprep.subr.bf16.mxu0 %v2856_v7 }
  0xcd   : > { %2053 = vmatpush1.bf16.msra.mxu1 %v2851_v8 }
  0xce   : > { %2135 = vmatpush1.bf16.msra.mxu0 %v2854_v9  ;;  %2054 = vmatprep.subr.bf16.mxu1 %v2859_v11 }
  0xcf   : > { %2136 = vmatprep.subr.bf16.mxu0 %v2862_v12 }
  0xd1   : > { %2055 = vmatpush1.bf16.msra.mxu1 %v2857_v17 }
  0xd2   : > { %2137 = vmatpush1.bf16.msra.mxu0 %v2860_v19  ;;  %2056 = vmatprep.subr.bf16.mxu1 %v2865_v20 }
  0xd3   : > { %2138 = vmatprep.subr.bf16.mxu0 %v2868_v21 }
  0xd5   : > { %2057 = vmatpush1.bf16.msra.mxu1 %v2863_v22 }
  0xd6   : > { %2139 = vmatpush1.bf16.msra.mxu0 %v2866_v23  ;;  %2058 = vmatprep.subr.bf16.mxu1 %v2871_v24 }
  0xd7   : > { %2140 = vmatprep.subr.bf16.mxu0 %v2874_v25 }
  0xd9   : > { %2059 = vmatpush1.bf16.msra.mxu1 %v2869_v26 }
  0xda   : > { %2141 = vmatpush1.bf16.msra.mxu0 %v2872_v27  ;;  %2060 = vmatprep.subr.bf16.mxu1 %v2877_v28 }
  0xdb   : > { %2142 = vmatprep.subr.bf16.mxu0 %v2880_v29 }
  0xdd   : > { %2061 = vmatpush1.bf16.msra.mxu1 %v2875_v33 }
  0xde   : > { %2143 = vmatpush1.bf16.msra.mxu0 %v2878_v30  ;;  %2632 = vmatprep.subr.msk.bf16.mxu1 %vm2631_vm4, %v2630_v34 }
  0xe0   : > { %2063 = vmatmul.mubr.bf16.vlgmr.msra.gmra.mrb[0].mxu1 %v1215_v37 }
  0xe1   : > { %2145 = vmatmul.mubr.bf16.vlgmr.msra.gmra.mrb[0].mxu0 %v1219_v38  ;;  %2635 = vmatpush1.bf16.msk.msra.mxu1 %vm2631_vm4, %v2633_v39 }
  0xe2   : > { %2270 = vmatprep.mubr.f32.mxu1 %v2922_v10 }
  0xe8   : > { %2625 = vmatmul.mubr.msk.f32.vlgmr.msra.gmra.mrb[4].mxu1 %vm2195_vm5, %v2190_v40 }
 0x1b3   : > { %v2064_v15 = vpop.f32.mrb[0].mxu1 }
 0x1b4   : > { %v2146_v16 = vpop.f32.mrb[0].mxu0  ;;  %v2066_v42 = vpop.f32.mrb[1].mxu1 }
 0x1b5   : > { %v2636_v41 = vadd.f32 %v2146_v16, %v2064_v15  ;;  %v2148_v43 = vpop.f32.mrb[1].mxu0  ;;  %v2068_v10 = vpop.f32.mrb[2].mxu1 }
 0x1b6   : > { %v2637_v44 = vadd.f32 %v2148_v43, %v2066_v42  ;;  %v2150_v45 = vpop.f32.mrb[2].mxu0  ;;  %v2069_v46 = vpop.f32.mrb[3].mxu1 }
 0x1b7   : > { %v2151_v47 = vpop.f32.mrb[3].mxu0 }
 0x1b8   : > { %v2155_v49 = vcombine.low %v2636_v41, %v2637_v44 }
 0x1ba   : > { %v2162_v51 = vrot.slane %v2155_v49, %v3314_v18 }
 0x1bb   : > { %v2272_v55 = vpop.f32.mrb[4].mxu1 }
 0x1bc   : > { %v2164_v54 = vadd.f32 %v2162_v51, %v1168_v50  ;;  %v2274_v56 = vpop.f32.mrb[5].mxu1 }
 0x1bd   : > { %v2279_v58 = vcombine.low %v2272_v55, %v2274_v56 }
 0x1be   : > { %2165 = vst [vmem:[#allocation2] sm:$0xf] %v2164_v54 }
 0x1bf   : > { %v2286_v63 = vrot.slane %v2279_v58, %v3314_v18 }
 0x1c5   : > { %v2169_v0 = vld [vmem:[#allocation2] sm:$0xf] }
 0x1c6   : > { %v2189_v2 = vadd.f32 %v2187_v62, %v2169_v0 }
 0x1c8   : > { %v2288_v3 = vadd.f32 %v2286_v63, %v2189_v2 }
 0x1ca   : > { %v2290_v5 = vmul.f32 0.2, %v2288_v3  ;;  %vm2289_vm6 = vcmp.ge.f32.partialorder %v2288_v3, 0.0 }
 0x1cc   : > { %v2291_v6 = vsel %vm2289_vm6, %v2288_v3, %v2290_v5 }
 0x1cd   : > { %v2311_v7 = vmul.f32 %v2309_v4, %v2291_v6 }
 0x1cf   : > { %v2319_v13 = vrot.slane %v2311_v7, %v3314_v18 }
 0x1d1   : > { %v2320_v8 = vcombine.high %v2319_v13, %v2319_v13  ;;  %v2323_v14 = vsel %vm2199_vm2, %v2319_v13, 0.0 }
 0x1d3   : > { %v2324_v9 = vsel %vm2199_vm2, %v2320_v8, 0.0 }
 0x1d4   : > { %v2325_v11 = vadd.f32 %v2324_v9, %v2323_v14 }
 0x1d6   : > { %2326 = vadd.xlane.f32.xlu0 %v2325_v11 }
 0x263   : > { %v2327_v12 = vpop.xlane.xlu0 %2326 }
 0x264   : > { %2329 = vst.msk [vmem:[%s1010_s23] sm:$0x3] %vm2328_vm7, %v2327_v12 }
 0x265 PF: > { %s18_s9 = sadd.s32 1, %s2919_s9   ;;  %s3565_s27 = smov %s2907_s28 }
 0x266   : > { %p15_p11 = scmp.ge.s32.totalorder %s18_s9, 4   ;;  %s3566_s28 = smov %s3008_s14 }
 0x267   : > { %s3567_s29 = smov %s2915_s30  ;;  %s3568_s30 = smov %s3570_s10 }
 0x268   :  { %17 = sbr.rel (!%p15_p11) target bundleno = 3 (0x3), region = 179 }

</bundles_post_ra>
